<compile_context>
chip_gen: v7x
topology: tpu7x:2x2x1
jax: 0.10.0
libtpu: 0.0.40
codegen_flags: <defaults>
</compile_context>

<pallas_src>
import jax
import jax.numpy as jnp
from jax.experimental import pallas as pl
from jax.experimental.pallas import tpu as pltpu

# Concrete backbone dimensions (match the original example instantiation).
CIN, COUT, KH, KW = 4, 8, 3, 3
H, W = 16, 16
EMB_DIM = 32


# ----------------------------------------------------------------------------
# Fused kernel: conv3x3(SAME) + bias + ReLU + global-avg-pool + fc
# One grid step == one image.
# ----------------------------------------------------------------------------
def _embedding_net_kernel(x_ref, cw_ref, cb_ref, fcw_ref, fcb_ref, o_ref, xpad):
    # x_ref   : [CIN, H, W]            bf16  (one image, NCHW block)
    # cw_ref  : [COUT*CIN*KH*KW]       f32   SMEM (PyTorch OIHW order, flattened)
    # cb_ref  : [COUT]                 f32   SMEM
    # fcw_ref : [COUT, EMB_DIM]        f32   VMEM
    # fcb_ref : [1, EMB_DIM]           f32   VMEM
    # o_ref   : [1, EMB_DIM]           f32   output block
    # xpad    : [CIN, H+2, W+2]        f32   VMEM scratch (zero border = SAME pad)

    # In-kernel SAME padding: zero the scratch, write the image interior.
    # (Re-zeroed every step -> no cross-iteration state -> safe with "parallel".)
    xpad[...] = jnp.zeros_like(xpad)
    xpad[:, pl.ds(1, H), pl.ds(1, W)] = x_ref[...].astype(jnp.float32)

    # Direct VPU convolution: load each shifted [H, W] window once and MAC it into
    # all COUT accumulators with scalar weights read from SMEM.
    accs = [jnp.zeros((H, W), jnp.float32) for _ in range(COUT)]
    for ci in range(CIN):
        for kh in range(KH):
            for kw in range(KW):
                win = xpad[ci, pl.ds(kh, H), pl.ds(kw, W)]          # [H, W] f32
                for co in range(COUT):
                    idx = ((co * CIN + ci) * KH + kh) * KW + kw      # OIHW flat index
                    accs[co] = accs[co] + cw_ref[idx] * win

    # bias + ReLU + global average pool + fc, all in f32 vregs.
    inv_hw = 1.0 / float(H * W)
    emb = fcb_ref[...]                                               # [1, EMB_DIM]
    for co in range(COUT):
        act = jnp.maximum(accs[co] + cb_ref[co], 0.0)                # [H, W]
        s = jnp.sum(act, axis=1, keepdims=True)                      # [H, 1]  (lane reduce)
        s = jnp.sum(s, axis=0, keepdims=True)                        # [1, 1]  (sublane reduce)
        emb = emb + (s * inv_hw) * fcw_ref[pl.ds(co, 1), :]          # [1,1]*[1,D]
    o_ref[...] = emb.astype(o_ref.dtype)


def embedding_net_forward(x, params):
    """x: NCHW float32 [B, CIN, H, W] -> embeddings [B, EMB_DIM]."""
    conv_w, conv_b, fc_w, fc_b = params
    B, cin, h, w = x.shape
    assert (cin, h, w) == (CIN, H, W)
    assert conv_w.shape == (COUT, CIN, KH, KW)
    assert fc_w.shape == (EMB_DIM, COUT)

    x_bf16 = x.astype(jnp.bfloat16)                       # halve HBM read traffic
    cw_flat = conv_w.reshape(-1).astype(jnp.float32)      # [COUT*CIN*9] (OIHW order)
    cb = conv_b.astype(jnp.float32)                       # [COUT]
    fcw = fc_w.T.astype(jnp.float32)                      # [COUT, EMB_DIM]
    fcb = fc_b.reshape(1, EMB_DIM).astype(jnp.float32)    # [1, EMB_DIM]

    out = pl.pallas_call(
        _embedding_net_kernel,
        out_shape=jax.ShapeDtypeStruct((B, 1, EMB_DIM), jnp.float32),
        grid_spec=pltpu.PrefetchScalarGridSpec(
            num_scalar_prefetch=0,
            grid=(B,),
            in_specs=[
                # one image per grid step (batch dim squeezed)
                pl.BlockSpec((None, CIN, H, W), lambda b: (b, 0, 0, 0)),
                # tiny weight tables: conv weights/bias as scalars in SMEM,
                # fc weight/bias as small VMEM blocks (resident, loaded once/step)
                pl.BlockSpec(memory_space=pltpu.MemorySpace.SMEM),
                pl.BlockSpec(memory_space=pltpu.MemorySpace.SMEM),
                pl.BlockSpec((COUT, EMB_DIM), lambda b: (0, 0)),
                pl.BlockSpec((1, EMB_DIM), lambda b: (0, 0)),
            ],
            out_specs=pl.BlockSpec((None, 1, EMB_DIM), lambda b: (b, 0, 0)),
            scratch_shapes=[pltpu.VMEM((CIN, H + 2, W + 2), jnp.float32)],
        ),
        compiler_params=pltpu.CompilerParams(
            dimension_semantics=("parallel",)),   # batch axis -> both TCs on v7x
    )(x_bf16, cw_flat, cb, fcw, fcb)
    return out.reshape(B, EMB_DIM)


# ----------------------------------------------------------------------------
# Parameters + pure-JAX reference (f32 end-to-end)
# ----------------------------------------------------------------------------
def init_params(key, cin=CIN, cout=COUT, embedding_dim=EMB_DIM):
    k1, k2, k3, k4 = jax.random.split(key, 4)
    conv_w = jax.random.normal(k1, (cout, cin, 3, 3), jnp.float32) * 0.1
    conv_b = jax.random.normal(k2, (cout,), jnp.float32) * 0.1
    fc_w = jax.random.normal(k3, (embedding_dim, cout), jnp.float32) * 0.1
    fc_b = jax.random.normal(k4, (embedding_dim,), jnp.float32) * 0.1
    return conv_w, conv_b, fc_w, fc_b


def reference_forward(x, params):
    conv_w, conv_b, fc_w, fc_b = params
    y = jax.lax.conv_general_dilated(
        x, conv_w, window_strides=(1, 1), padding="SAME",
        dimension_numbers=("NCHW", "OIHW", "NCHW"))
    y = jnp.maximum(y + conv_b[None, :, None, None], 0.0)
    pooled = jnp.mean(y, axis=(2, 3))                          # [B, COUT]
    return pooled @ fc_w.T + fc_b


if __name__ == "__main__":
    key = jax.random.PRNGKey(0)
    kx, kp = jax.random.split(key)
    x = jax.random.normal(kx, (2, CIN, H, W), jnp.float32)     # NCHW
    params = init_params(kp)

    emb = embedding_net_forward(x, params)
    emb = jax.block_until_ready(emb)

    ref = reference_forward(x, params)
    assert emb.shape == (2, EMB_DIM)
    # Input x is stored in bf16 for HBM-traffic reasons (compute stays f32),
    # so compare against the f32 reference with a bf16-appropriate tolerance.
    assert jnp.allclose(emb, ref, atol=2e-2, rtol=2e-2), \
        float(jnp.max(jnp.abs(emb - ref)))

    print("KERNEL_OK")
</pallas_src>

<mosaic_0001>
module attributes {stable_mosaic.version = 11 : i64} {
  func.func @_embedding_net_kernel(%arg0: i32, %arg1: memref<1x4x16x16xbf16, #tpu.memory_space<vmem>>, %arg2: memref<288xf32, #tpu.memory_space<smem>>, %arg3: memref<8xf32, #tpu.memory_space<smem>>, %arg4: memref<8x32xf32, #tpu.memory_space<vmem>>, %arg5: memref<1x32xf32, #tpu.memory_space<vmem>>, %arg6: memref<1x1x32xf32, #tpu.memory_space<vmem>>, %arg7: memref<4x18x18xf32, #tpu.memory_space<vmem>>) attributes {dimension_semantics = [#tpu.dimension_semantics<parallel>], iteration_bounds = array<i64: 2>, scalar_prefetch = 0 : i64, scratch_operands = 1 : i64, tpu.core_type = #tpu.core_type<tc>, window_params = [{transform_indices = @transform_0, window_bounds = array<i64: 1, 4, 16, 16>}, {transform_indices = @transform_1, window_bounds = array<i64: 288>}, {transform_indices = @transform_2, window_bounds = array<i64: 8>}, {pipeline_mode = #tpu.pipeline_mode<synchronous>, transform_indices = @transform_3, window_bounds = array<i64: 8, 32>}, {pipeline_mode = #tpu.pipeline_mode<synchronous>, transform_indices = @transform_4, window_bounds = array<i64: 1, 32>}, {transform_indices = @transform_5, window_bounds = array<i64: 1, 1, 32>}]} {
    %cst = arith.constant 0.000000e+00 : f32
    %0 = vector.broadcast %cst : f32 to vector<4x18x18xf32>
    %c0 = arith.constant 0 : index
    %c0_0 = arith.constant 0 : index
    %c0_1 = arith.constant 0 : index
    %1 = vector.load %arg7[%c0, %c0_0, %c0_1] : memref<4x18x18xf32, #tpu.memory_space<vmem>>, vector<4x18x18xf32>
    tpu.vector_store %arg7[%c0, %c0_0, %c0_1], %0 {strides = array<i32>} : memref<4x18x18xf32, #tpu.memory_space<vmem>>, vector<4x18x18xf32>,
    %c0_2 = arith.constant 0 : index
    %c0_3 = arith.constant 0 : index
    %c0_4 = arith.constant 0 : index
    %c0_5 = arith.constant 0 : index
    %2 = vector.load %arg1[%c0_2, %c0_3, %c0_4, %c0_5] : memref<1x4x16x16xbf16, #tpu.memory_space<vmem>>, vector<1x4x16x16xbf16>
    %3 = vector.shape_cast %2 : vector<1x4x16x16xbf16> to vector<4x16x16xbf16>
    %4 = arith.extf %3 : vector<4x16x16xbf16> to vector<4x16x16xf32>
    %c0_6 = arith.constant 0 : index
    %c1 = arith.constant 1 : index
    %c1_7 = arith.constant 1 : index
    %5 = vector.load %arg7[%c0_6, %c1, %c1_7] : memref<4x18x18xf32, #tpu.memory_space<vmem>>, vector<4x16x16xf32>
    tpu.vector_store %arg7[%c0_6, %c1, %c1_7], %4 {strides = array<i32>} : memref<4x18x18xf32, #tpu.memory_space<vmem>>, vector<4x16x16xf32>,
    %cst_8 = arith.constant 0.000000e+00 : f32
    %6 = vector.broadcast %cst_8 : f32 to vector<16x16xf32>
    %cst_9 = arith.constant 0.000000e+00 : f32
    %7 = vector.broadcast %cst_9 : f32 to vector<16x16xf32>
    %cst_10 = arith.constant 0.000000e+00 : f32
    %8 = vector.broadcast %cst_10 : f32 to vector<16x16xf32>
    %cst_11 = arith.constant 0.000000e+00 : f32
    %9 = vector.broadcast %cst_11 : f32 to vector<16x16xf32>
    %cst_12 = arith.constant 0.000000e+00 : f32
    %10 = vector.broadcast %cst_12 : f32 to vector<16x16xf32>
    %cst_13 = arith.constant 0.000000e+00 : f32
    %11 = vector.broadcast %cst_13 : f32 to vector<16x16xf32>
    %cst_14 = arith.constant 0.000000e+00 : f32
    %12 = vector.broadcast %cst_14 : f32 to vector<16x16xf32>
    %cst_15 = arith.constant 0.000000e+00 : f32
    %13 = vector.broadcast %cst_15 : f32 to vector<16x16xf32>
    %c0_16 = arith.constant 0 : index
    %c0_17 = arith.constant 0 : index
    %c0_18 = arith.constant 0 : index
    %14 = vector.load %arg7[%c0_16, %c0_17, %c0_18] : memref<4x18x18xf32, #tpu.memory_space<vmem>>, vector<1x16x16xf32>
    %15 = vector.shape_cast %14 : vector<1x16x16xf32> to vector<16x16xf32>
    %c0_19 = arith.constant 0 : index
    %16 = memref.load %arg2[%c0_19] : memref<288xf32, #tpu.memory_space<smem>>
    %17 = vector.broadcast %16 : f32 to vector<16x16xf32>
    %18 = arith.mulf %17, %15 : vector<16x16xf32>
    %19 = arith.addf %6, %18 : vector<16x16xf32>
    %c36 = arith.constant 36 : index
    %20 = memref.load %arg2[%c36] : memref<288xf32, #tpu.memory_space<smem>>
    %21 = vector.broadcast %20 : f32 to vector<16x16xf32>
    %22 = arith.mulf %21, %15 : vector<16x16xf32>
    %23 = arith.addf %7, %22 : vector<16x16xf32>
    %c72 = arith.constant 72 : index
    %24 = memref.load %arg2[%c72] : memref<288xf32, #tpu.memory_space<smem>>
    %25 = vector.broadcast %24 : f32 to vector<16x16xf32>
    %26 = arith.mulf %25, %15 : vector<16x16xf32>
    %27 = arith.addf %8, %26 : vector<16x16xf32>
    %c108 = arith.constant 108 : index
    %28 = memref.load %arg2[%c108] : memref<288xf32, #tpu.memory_space<smem>>
    %29 = vector.broadcast %28 : f32 to vector<16x16xf32>
    %30 = arith.mulf %29, %15 : vector<16x16xf32>
    %31 = arith.addf %9, %30 : vector<16x16xf32>
    %c144 = arith.constant 144 : index
    %32 = memref.load %arg2[%c144] : memref<288xf32, #tpu.memory_space<smem>>
    %33 = vector.broadcast %32 : f32 to vector<16x16xf32>
    %34 = arith.mulf %33, %15 : vector<16x16xf32>
    %35 = arith.addf %10, %34 : vector<16x16xf32>
    %c180 = arith.constant 180 : index
    %36 = memref.load %arg2[%c180] : memref<288xf32, #tpu.memory_space<smem>>
    %37 = vector.broadcast %36 : f32 to vector<16x16xf32>
    %38 = arith.mulf %37, %15 : vector<16x16xf32>
    %39 = arith.addf %11, %38 : vector<16x16xf32>
    %c216 = arith.constant 216 : index
    %40 = memref.load %arg2[%c216] : memref<288xf32, #tpu.memory_space<smem>>
    %41 = vector.broadcast %40 : f32 to vector<16x16xf32>
    %42 = arith.mulf %41, %15 : vector<16x16xf32>
    %43 = arith.addf %12, %42 : vector<16x16xf32>
    %c252 = arith.constant 252 : index
    %44 = memref.load %arg2[%c252] : memref<288xf32, #tpu.memory_space<smem>>
    %45 = vector.broadcast %44 : f32 to vector<16x16xf32>
    %46 = arith.mulf %45, %15 : vector<16x16xf32>
    %47 = arith.addf %13, %46 : vector<16x16xf32>
    %c0_20 = arith.constant 0 : index
    %c0_21 = arith.constant 0 : index
    %c1_22 = arith.constant 1 : index
    %48 = vector.load %arg7[%c0_20, %c0_21, %c1_22] : memref<4x18x18xf32, #tpu.memory_space<vmem>>, vector<1x16x16xf32>
    %49 = vector.shape_cast %48 : vector<1x16x16xf32> to vector<16x16xf32>
    %c1_23 = arith.constant 1 : index
    %50 = memref.load %arg2[%c1_23] : memref<288xf32, #tpu.memory_space<smem>>
    %51 = vector.broadcast %50 : f32 to vector<16x16xf32>
    %52 = arith.mulf %51, %49 : vector<16x16xf32>
    %53 = arith.addf %19, %52 : vector<16x16xf32>
    %c37 = arith.constant 37 : index
    %54 = memref.load %arg2[%c37] : memref<288xf32, #tpu.memory_space<smem>>
    %55 = vector.broadcast %54 : f32 to vector<16x16xf32>
    %56 = arith.mulf %55, %49 : vector<16x16xf32>
    %57 = arith.addf %23, %56 : vector<16x16xf32>
    %c73 = arith.constant 73 : index
    %58 = memref.load %arg2[%c73] : memref<288xf32, #tpu.memory_space<smem>>
    %59 = vector.broadcast %58 : f32 to vector<16x16xf32>
    %60 = arith.mulf %59, %49 : vector<16x16xf32>
    %61 = arith.addf %27, %60 : vector<16x16xf32>
    %c109 = arith.constant 109 : index
    %62 = memref.load %arg2[%c109] : memref<288xf32, #tpu.memory_space<smem>>
    %63 = vector.broadcast %62 : f32 to vector<16x16xf32>
    %64 = arith.mulf %63, %49 : vector<16x16xf32>
    %65 = arith.addf %31, %64 : vector<16x16xf32>
    %c145 = arith.constant 145 : index
    %66 = memref.load %arg2[%c145] : memref<288xf32, #tpu.memory_space<smem>>
    %67 = vector.broadcast %66 : f32 to vector<16x16xf32>
    %68 = arith.mulf %67, %49 : vector<16x16xf32>
    %69 = arith.addf %35, %68 : vector<16x16xf32>
    %c181 = arith.constant 181 : index
    %70 = memref.load %arg2[%c181] : memref<288xf32, #tpu.memory_space<smem>>
    %71 = vector.broadcast %70 : f32 to vector<16x16xf32>
    %72 = arith.mulf %71, %49 : vector<16x16xf32>
    %73 = arith.addf %39, %72 : vector<16x16xf32>
    %c217 = arith.constant 217 : index
    %74 = memref.load %arg2[%c217] : memref<288xf32, #tpu.memory_space<smem>>
    %75 = vector.broadcast %74 : f32 to vector<16x16xf32>
    %76 = arith.mulf %75, %49 : vector<16x16xf32>
    %77 = arith.addf %43, %76 : vector<16x16xf32>
    %c253 = arith.constant 253 : index
    %78 = memref.load %arg2[%c253] : memref<288xf32, #tpu.memory_space<smem>>
    %79 = vector.broadcast %78 : f32 to vector<16x16xf32>
    %80 = arith.mulf %79, %49 : vector<16x16xf32>
    %81 = arith.addf %47, %80 : vector<16x16xf32>
    %c0_24 = arith.constant 0 : index
    %c0_25 = arith.constant 0 : index
    %c2 = arith.constant 2 : index
    %82 = vector.load %arg7[%c0_24, %c0_25, %c2] : memref<4x18x18xf32, #tpu.memory_space<vmem>>, vector<1x16x16xf32>
    %83 = vector.shape_cast %82 : vector<1x16x16xf32> to vector<16x16xf32>
    %c2_26 = arith.constant 2 : index
    %84 = memref.load %arg2[%c2_26] : memref<288xf32, #tpu.memory_space<smem>>
    %85 = vector.broadcast %84 : f32 to vector<16x16xf32>
    %86 = arith.mulf %85, %83 : vector<16x16xf32>
    %87 = arith.addf %53, %86 : vector<16x16xf32>
    %c38 = arith.constant 38 : index
    %88 = memref.load %arg2[%c38] : memref<288xf32, #tpu.memory_space<smem>>
    %89 = vector.broadcast %88 : f32 to vector<16x16xf32>
    %90 = arith.mulf %89, %83 : vector<16x16xf32>
    %91 = arith.addf %57, %90 : vector<16x16xf32>
    %c74 = arith.constant 74 : index
    %92 = memref.load %arg2[%c74] : memref<288xf32, #tpu.memory_space<smem>>
    %93 = vector.broadcast %92 : f32 to vector<16x16xf32>
    %94 = arith.mulf %93, %83 : vector<16x16xf32>
    %95 = arith.addf %61, %94 : vector<16x16xf32>
    %c110 = arith.constant 110 : index
    %96 = memref.load %arg2[%c110] : memref<288xf32, #tpu.memory_space<smem>>
    %97 = vector.broadcast %96 : f32 to vector<16x16xf32>
    %98 = arith.mulf %97, %83 : vector<16x16xf32>
    %99 = arith.addf %65, %98 : vector<16x16xf32>
    %c146 = arith.constant 146 : index
    %100 = memref.load %arg2[%c146] : memref<288xf32, #tpu.memory_space<smem>>
    %101 = vector.broadcast %100 : f32 to vector<16x16xf32>
    %102 = arith.mulf %101, %83 : vector<16x16xf32>
    %103 = arith.addf %69, %102 : vector<16x16xf32>
    %c182 = arith.constant 182 : index
    %104 = memref.load %arg2[%c182] : memref<288xf32, #tpu.memory_space<smem>>
    %105 = vector.broadcast %104 : f32 to vector<16x16xf32>
    %106 = arith.mulf %105, %83 : vector<16x16xf32>
    %107 = arith.addf %73, %106 : vector<16x16xf32>
    %c218 = arith.constant 218 : index
    %108 = memref.load %arg2[%c218] : memref<288xf32, #tpu.memory_space<smem>>
    %109 = vector.broadcast %108 : f32 to vector<16x16xf32>
    %110 = arith.mulf %109, %83 : vector<16x16xf32>
    %111 = arith.addf %77, %110 : vector<16x16xf32>
    %c254 = arith.constant 254 : index
    %112 = memref.load %arg2[%c254] : memref<288xf32, #tpu.memory_space<smem>>
    %113 = vector.broadcast %112 : f32 to vector<16x16xf32>
    %114 = arith.mulf %113, %83 : vector<16x16xf32>
    %115 = arith.addf %81, %114 : vector<16x16xf32>
    %c0_27 = arith.constant 0 : index
    %c1_28 = arith.constant 1 : index
    %c0_29 = arith.constant 0 : index
    %116 = vector.load %arg7[%c0_27, %c1_28, %c0_29] : memref<4x18x18xf32, #tpu.memory_space<vmem>>, vector<1x16x16xf32>
    %117 = vector.shape_cast %116 : vector<1x16x16xf32> to vector<16x16xf32>
    %c3 = arith.constant 3 : index
    %118 = memref.load %arg2[%c3] : memref<288xf32, #tpu.memory_space<smem>>
    %119 = vector.broadcast %118 : f32 to vector<16x16xf32>
    %120 = arith.mulf %119, %117 : vector<16x16xf32>
    %121 = arith.addf %87, %120 : vector<16x16xf32>
    %c39 = arith.constant 39 : index
    %122 = memref.load %arg2[%c39] : memref<288xf32, #tpu.memory_space<smem>>
    %123 = vector.broadcast %122 : f32 to vector<16x16xf32>
    %124 = arith.mulf %123, %117 : vector<16x16xf32>
    %125 = arith.addf %91, %124 : vector<16x16xf32>
    %c75 = arith.constant 75 : index
    %126 = memref.load %arg2[%c75] : memref<288xf32, #tpu.memory_space<smem>>
    %127 = vector.broadcast %126 : f32 to vector<16x16xf32>
    %128 = arith.mulf %127, %117 : vector<16x16xf32>
    %129 = arith.addf %95, %128 : vector<16x16xf32>
    %c111 = arith.constant 111 : index
    %130 = memref.load %arg2[%c111] : memref<288xf32, #tpu.memory_space<smem>>
    %131 = vector.broadcast %130 : f32 to vector<16x16xf32>
    %132 = arith.mulf %131, %117 : vector<16x16xf32>
    %133 = arith.addf %99, %132 : vector<16x16xf32>
    %c147 = arith.constant 147 : index
    %134 = memref.load %arg2[%c147] : memref<288xf32, #tpu.memory_space<smem>>
    %135 = vector.broadcast %134 : f32 to vector<16x16xf32>
    %136 = arith.mulf %135, %117 : vector<16x16xf32>
    %137 = arith.addf %103, %136 : vector<16x16xf32>
    %c183 = arith.constant 183 : index
    %138 = memref.load %arg2[%c183] : memref<288xf32, #tpu.memory_space<smem>>
    %139 = vector.broadcast %138 : f32 to vector<16x16xf32>
    %140 = arith.mulf %139, %117 : vector<16x16xf32>
    %141 = arith.addf %107, %140 : vector<16x16xf32>
    %c219 = arith.constant 219 : index
    %142 = memref.load %arg2[%c219] : memref<288xf32, #tpu.memory_space<smem>>
    %143 = vector.broadcast %142 : f32 to vector<16x16xf32>
    %144 = arith.mulf %143, %117 : vector<16x16xf32>
    %145 = arith.addf %111, %144 : vector<16x16xf32>
    %c255 = arith.constant 255 : index
    %146 = memref.load %arg2[%c255] : memref<288xf32, #tpu.memory_space<smem>>
    %147 = vector.broadcast %146 : f32 to vector<16x16xf32>
    %148 = arith.mulf %147, %117 : vector<16x16xf32>
    %149 = arith.addf %115, %148 : vector<16x16xf32>
    %c0_30 = arith.constant 0 : index
    %c1_31 = arith.constant 1 : index
    %c1_32 = arith.constant 1 : index
    %150 = vector.load %arg7[%c0_30, %c1_31, %c1_32] : memref<4x18x18xf32, #tpu.memory_space<vmem>>, vector<1x16x16xf32>
    %151 = vector.shape_cast %150 : vector<1x16x16xf32> to vector<16x16xf32>
    %c4 = arith.constant 4 : index
    %152 = memref.load %arg2[%c4] : memref<288xf32, #tpu.memory_space<smem>>
    %153 = vector.broadcast %152 : f32 to vector<16x16xf32>
    %154 = arith.mulf %153, %151 : vector<16x16xf32>
    %155 = arith.addf %121, %154 : vector<16x16xf32>
    %c40 = arith.constant 40 : index
    %156 = memref.load %arg2[%c40] : memref<288xf32, #tpu.memory_space<smem>>
    %157 = vector.broadcast %156 : f32 to vector<16x16xf32>
    %158 = arith.mulf %157, %151 : vector<16x16xf32>
    %159 = arith.addf %125, %158 : vector<16x16xf32>
    %c76 = arith.constant 76 : index
    %160 = memref.load %arg2[%c76] : memref<288xf32, #tpu.memory_space<smem>>
    %161 = vector.broadcast %160 : f32 to vector<16x16xf32>
    %162 = arith.mulf %161, %151 : vector<16x16xf32>
    %163 = arith.addf %129, %162 : vector<16x16xf32>
    %c112 = arith.constant 112 : index
    %164 = memref.load %arg2[%c112] : memref<288xf32, #tpu.memory_space<smem>>
    %165 = vector.broadcast %164 : f32 to vector<16x16xf32>
    %166 = arith.mulf %165, %151 : vector<16x16xf32>
    %167 = arith.addf %133, %166 : vector<16x16xf32>
    %c148 = arith.constant 148 : index
    %168 = memref.load %arg2[%c148] : memref<288xf32, #tpu.memory_space<smem>>
    %169 = vector.broadcast %168 : f32 to vector<16x16xf32>
    %170 = arith.mulf %169, %151 : vector<16x16xf32>
    %171 = arith.addf %137, %170 : vector<16x16xf32>
    %c184 = arith.constant 184 : index
    %172 = memref.load %arg2[%c184] : memref<288xf32, #tpu.memory_space<smem>>
    %173 = vector.broadcast %172 : f32 to vector<16x16xf32>
    %174 = arith.mulf %173, %151 : vector<16x16xf32>
    %175 = arith.addf %141, %174 : vector<16x16xf32>
    %c220 = arith.constant 220 : index
    %176 = memref.load %arg2[%c220] : memref<288xf32, #tpu.memory_space<smem>>
    %177 = vector.broadcast %176 : f32 to vector<16x16xf32>
    %178 = arith.mulf %177, %151 : vector<16x16xf32>
    %179 = arith.addf %145, %178 : vector<16x16xf32>
    %c256 = arith.constant 256 : index
    %180 = memref.load %arg2[%c256] : memref<288xf32, #tpu.memory_space<smem>>
    %181 = vector.broadcast %180 : f32 to vector<16x16xf32>
    %182 = arith.mulf %181, %151 : vector<16x16xf32>
    %183 = arith.addf %149, %182 : vector<16x16xf32>
    %c0_33 = arith.constant 0 : index
    %c1_34 = arith.constant 1 : index
    %c2_35 = arith.constant 2 : index
    %184 = vector.load %arg7[%c0_33, %c1_34, %c2_35] : memref<4x18x18xf32, #tpu.memory_space<vmem>>, vector<1x16x16xf32>
    %185 = vector.shape_cast %184 : vector<1x16x16xf32> to vector<16x16xf32>
    %c5 = arith.constant 5 : index
    %186 = memref.load %arg2[%c5] : memref<288xf32, #tpu.memory_space<smem>>
    %187 = vector.broadcast %186 : f32 to vector<16x16xf32>
    %188 = arith.mulf %187, %185 : vector<16x16xf32>
    %189 = arith.addf %155, %188 : vector<16x16xf32>
    %c41 = arith.constant 41 : index
    %190 = memref.load %arg2[%c41] : memref<288xf32, #tpu.memory_space<smem>>
    %191 = vector.broadcast %190 : f32 to vector<16x16xf32>
    %192 = arith.mulf %191, %185 : vector<16x16xf32>
    %193 = arith.addf %159, %192 : vector<16x16xf32>
    %c77 = arith.constant 77 : index
    %194 = memref.load %arg2[%c77] : memref<288xf32, #tpu.memory_space<smem>>
    %195 = vector.broadcast %194 : f32 to vector<16x16xf32>
    %196 = arith.mulf %195, %185 : vector<16x16xf32>
    %197 = arith.addf %163, %196 : vector<16x16xf32>
    %c113 = arith.constant 113 : index
    %198 = memref.load %arg2[%c113] : memref<288xf32, #tpu.memory_space<smem>>
    %199 = vector.broadcast %198 : f32 to vector<16x16xf32>
    %200 = arith.mulf %199, %185 : vector<16x16xf32>
    %201 = arith.addf %167, %200 : vector<16x16xf32>
    %c149 = arith.constant 149 : index
    %202 = memref.load %arg2[%c149] : memref<288xf32, #tpu.memory_space<smem>>
    %203 = vector.broadcast %202 : f32 to vector<16x16xf32>
    %204 = arith.mulf %203, %185 : vector<16x16xf32>
    %205 = arith.addf %171, %204 : vector<16x16xf32>
    %c185 = arith.constant 185 : index
    %206 = memref.load %arg2[%c185] : memref<288xf32, #tpu.memory_space<smem>>
    %207 = vector.broadcast %206 : f32 to vector<16x16xf32>
    %208 = arith.mulf %207, %185 : vector<16x16xf32>
    %209 = arith.addf %175, %208 : vector<16x16xf32>
    %c221 = arith.constant 221 : index
    %210 = memref.load %arg2[%c221] : memref<288xf32, #tpu.memory_space<smem>>
    %211 = vector.broadcast %210 : f32 to vector<16x16xf32>
    %212 = arith.mulf %211, %185 : vector<16x16xf32>
    %213 = arith.addf %179, %212 : vector<16x16xf32>
    %c257 = arith.constant 257 : index
    %214 = memref.load %arg2[%c257] : memref<288xf32, #tpu.memory_space<smem>>
    %215 = vector.broadcast %214 : f32 to vector<16x16xf32>
    %216 = arith.mulf %215, %185 : vector<16x16xf32>
    %217 = arith.addf %183, %216 : vector<16x16xf32>
    %c0_36 = arith.constant 0 : index
    %c2_37 = arith.constant 2 : index
    %c0_38 = arith.constant 0 : index
    %218 = vector.load %arg7[%c0_36, %c2_37, %c0_38] : memref<4x18x18xf32, #tpu.memory_space<vmem>>, vector<1x16x16xf32>
    %219 = vector.shape_cast %218 : vector<1x16x16xf32> to vector<16x16xf32>
    %c6 = arith.constant 6 : index
    %220 = memref.load %arg2[%c6] : memref<288xf32, #tpu.memory_space<smem>>
    %221 = vector.broadcast %220 : f32 to vector<16x16xf32>
    %222 = arith.mulf %221, %219 : vector<16x16xf32>
    %223 = arith.addf %189, %222 : vector<16x16xf32>
    %c42 = arith.constant 42 : index
    %224 = memref.load %arg2[%c42] : memref<288xf32, #tpu.memory_space<smem>>
    %225 = vector.broadcast %224 : f32 to vector<16x16xf32>
    %226 = arith.mulf %225, %219 : vector<16x16xf32>
    %227 = arith.addf %193, %226 : vector<16x16xf32>
    %c78 = arith.constant 78 : index
    %228 = memref.load %arg2[%c78] : memref<288xf32, #tpu.memory_space<smem>>
    %229 = vector.broadcast %228 : f32 to vector<16x16xf32>
    %230 = arith.mulf %229, %219 : vector<16x16xf32>
    %231 = arith.addf %197, %230 : vector<16x16xf32>
    %c114 = arith.constant 114 : index
    %232 = memref.load %arg2[%c114] : memref<288xf32, #tpu.memory_space<smem>>
    %233 = vector.broadcast %232 : f32 to vector<16x16xf32>
    %234 = arith.mulf %233, %219 : vector<16x16xf32>
    %235 = arith.addf %201, %234 : vector<16x16xf32>
    %c150 = arith.constant 150 : index
    %236 = memref.load %arg2[%c150] : memref<288xf32, #tpu.memory_space<smem>>
    %237 = vector.broadcast %236 : f32 to vector<16x16xf32>
    %238 = arith.mulf %237, %219 : vector<16x16xf32>
    %239 = arith.addf %205, %238 : vector<16x16xf32>
    %c186 = arith.constant 186 : index
    %240 = memref.load %arg2[%c186] : memref<288xf32, #tpu.memory_space<smem>>
    %241 = vector.broadcast %240 : f32 to vector<16x16xf32>
    %242 = arith.mulf %241, %219 : vector<16x16xf32>
    %243 = arith.addf %209, %242 : vector<16x16xf32>
    %c222 = arith.constant 222 : index
    %244 = memref.load %arg2[%c222] : memref<288xf32, #tpu.memory_space<smem>>
    %245 = vector.broadcast %244 : f32 to vector<16x16xf32>
    %246 = arith.mulf %245, %219 : vector<16x16xf32>
    %247 = arith.addf %213, %246 : vector<16x16xf32>
    %c258 = arith.constant 258 : index
    %248 = memref.load %arg2[%c258] : memref<288xf32, #tpu.memory_space<smem>>
    %249 = vector.broadcast %248 : f32 to vector<16x16xf32>
    %250 = arith.mulf %249, %219 : vector<16x16xf32>
    %251 = arith.addf %217, %250 : vector<16x16xf32>
    %c0_39 = arith.constant 0 : index
    %c2_40 = arith.constant 2 : index
    %c1_41 = arith.constant 1 : index
    %252 = vector.load %arg7[%c0_39, %c2_40, %c1_41] : memref<4x18x18xf32, #tpu.memory_space<vmem>>, vector<1x16x16xf32>
    %253 = vector.shape_cast %252 : vector<1x16x16xf32> to vector<16x16xf32>
    %c7 = arith.constant 7 : index
    %254 = memref.load %arg2[%c7] : memref<288xf32, #tpu.memory_space<smem>>
    %255 = vector.broadcast %254 : f32 to vector<16x16xf32>
    %256 = arith.mulf %255, %253 : vector<16x16xf32>
    %257 = arith.addf %223, %256 : vector<16x16xf32>
    %c43 = arith.constant 43 : index
    %258 = memref.load %arg2[%c43] : memref<288xf32, #tpu.memory_space<smem>>
    %259 = vector.broadcast %258 : f32 to vector<16x16xf32>
    %260 = arith.mulf %259, %253 : vector<16x16xf32>
    %261 = arith.addf %227, %260 : vector<16x16xf32>
    %c79 = arith.constant 79 : index
    %262 = memref.load %arg2[%c79] : memref<288xf32, #tpu.memory_space<smem>>
    %263 = vector.broadcast %262 : f32 to vector<16x16xf32>
    %264 = arith.mulf %263, %253 : vector<16x16xf32>
    %265 = arith.addf %231, %264 : vector<16x16xf32>
    %c115 = arith.constant 115 : index
    %266 = memref.load %arg2[%c115] : memref<288xf32, #tpu.memory_space<smem>>
    %267 = vector.broadcast %266 : f32 to vector<16x16xf32>
    %268 = arith.mulf %267, %253 : vector<16x16xf32>
    %269 = arith.addf %235, %268 : vector<16x16xf32>
    %c151 = arith.constant 151 : index
    %270 = memref.load %arg2[%c151] : memref<288xf32, #tpu.memory_space<smem>>
    %271 = vector.broadcast %270 : f32 to vector<16x16xf32>
    %272 = arith.mulf %271, %253 : vector<16x16xf32>
    %273 = arith.addf %239, %272 : vector<16x16xf32>
    %c187 = arith.constant 187 : index
    %274 = memref.load %arg2[%c187] : memref<288xf32, #tpu.memory_space<smem>>
    %275 = vector.broadcast %274 : f32 to vector<16x16xf32>
    %276 = arith.mulf %275, %253 : vector<16x16xf32>
    %277 = arith.addf %243, %276 : vector<16x16xf32>
    %c223 = arith.constant 223 : index
    %278 = memref.load %arg2[%c223] : memref<288xf32, #tpu.memory_space<smem>>
    %279 = vector.broadcast %278 : f32 to vector<16x16xf32>
    %280 = arith.mulf %279, %253 : vector<16x16xf32>
    %281 = arith.addf %247, %280 : vector<16x16xf32>
    %c259 = arith.constant 259 : index
    %282 = memref.load %arg2[%c259] : memref<288xf32, #tpu.memory_space<smem>>
    %283 = vector.broadcast %282 : f32 to vector<16x16xf32>
    %284 = arith.mulf %283, %253 : vector<16x16xf32>
    %285 = arith.addf %251, %284 : vector<16x16xf32>
    %c0_42 = arith.constant 0 : index
    %c2_43 = arith.constant 2 : index
    %c2_44 = arith.constant 2 : index
    %286 = vector.load %arg7[%c0_42, %c2_43, %c2_44] : memref<4x18x18xf32, #tpu.memory_space<vmem>>, vector<1x16x16xf32>
    %287 = vector.shape_cast %286 : vector<1x16x16xf32> to vector<16x16xf32>
    %c8 = arith.constant 8 : index
    %288 = memref.load %arg2[%c8] : memref<288xf32, #tpu.memory_space<smem>>
    %289 = vector.broadcast %288 : f32 to vector<16x16xf32>
    %290 = arith.mulf %289, %287 : vector<16x16xf32>
    %291 = arith.addf %257, %290 : vector<16x16xf32>
    %c44 = arith.constant 44 : index
    %292 = memref.load %arg2[%c44] : memref<288xf32, #tpu.memory_space<smem>>
    %293 = vector.broadcast %292 : f32 to vector<16x16xf32>
    %294 = arith.mulf %293, %287 : vector<16x16xf32>
    %295 = arith.addf %261, %294 : vector<16x16xf32>
    %c80 = arith.constant 80 : index
    %296 = memref.load %arg2[%c80] : memref<288xf32, #tpu.memory_space<smem>>
    %297 = vector.broadcast %296 : f32 to vector<16x16xf32>
    %298 = arith.mulf %297, %287 : vector<16x16xf32>
    %299 = arith.addf %265, %298 : vector<16x16xf32>
    %c116 = arith.constant 116 : index
    %300 = memref.load %arg2[%c116] : memref<288xf32, #tpu.memory_space<smem>>
    %301 = vector.broadcast %300 : f32 to vector<16x16xf32>
    %302 = arith.mulf %301, %287 : vector<16x16xf32>
    %303 = arith.addf %269, %302 : vector<16x16xf32>
    %c152 = arith.constant 152 : index
    %304 = memref.load %arg2[%c152] : memref<288xf32, #tpu.memory_space<smem>>
    %305 = vector.broadcast %304 : f32 to vector<16x16xf32>
    %306 = arith.mulf %305, %287 : vector<16x16xf32>
    %307 = arith.addf %273, %306 : vector<16x16xf32>
    %c188 = arith.constant 188 : index
    %308 = memref.load %arg2[%c188] : memref<288xf32, #tpu.memory_space<smem>>
    %309 = vector.broadcast %308 : f32 to vector<16x16xf32>
    %310 = arith.mulf %309, %287 : vector<16x16xf32>
    %311 = arith.addf %277, %310 : vector<16x16xf32>
    %c224 = arith.constant 224 : index
    %312 = memref.load %arg2[%c224] : memref<288xf32, #tpu.memory_space<smem>>
    %313 = vector.broadcast %312 : f32 to vector<16x16xf32>
    %314 = arith.mulf %313, %287 : vector<16x16xf32>
    %315 = arith.addf %281, %314 : vector<16x16xf32>
    %c260 = arith.constant 260 : index
    %316 = memref.load %arg2[%c260] : memref<288xf32, #tpu.memory_space<smem>>
    %317 = vector.broadcast %316 : f32 to vector<16x16xf32>
    %318 = arith.mulf %317, %287 : vector<16x16xf32>
    %319 = arith.addf %285, %318 : vector<16x16xf32>
    %c1_45 = arith.constant 1 : index
    %c0_46 = arith.constant 0 : index
    %c0_47 = arith.constant 0 : index
    %320 = vector.load %arg7[%c1_45, %c0_46, %c0_47] : memref<4x18x18xf32, #tpu.memory_space<vmem>>, vector<1x16x16xf32>
    %321 = vector.shape_cast %320 : vector<1x16x16xf32> to vector<16x16xf32>
    %c9 = arith.constant 9 : index
    %322 = memref.load %arg2[%c9] : memref<288xf32, #tpu.memory_space<smem>>
    %323 = vector.broadcast %322 : f32 to vector<16x16xf32>
    %324 = arith.mulf %323, %321 : vector<16x16xf32>
    %325 = arith.addf %291, %324 : vector<16x16xf32>
    %c45 = arith.constant 45 : index
    %326 = memref.load %arg2[%c45] : memref<288xf32, #tpu.memory_space<smem>>
    %327 = vector.broadcast %326 : f32 to vector<16x16xf32>
    %328 = arith.mulf %327, %321 : vector<16x16xf32>
    %329 = arith.addf %295, %328 : vector<16x16xf32>
    %c81 = arith.constant 81 : index
    %330 = memref.load %arg2[%c81] : memref<288xf32, #tpu.memory_space<smem>>
    %331 = vector.broadcast %330 : f32 to vector<16x16xf32>
    %332 = arith.mulf %331, %321 : vector<16x16xf32>
    %333 = arith.addf %299, %332 : vector<16x16xf32>
    %c117 = arith.constant 117 : index
    %334 = memref.load %arg2[%c117] : memref<288xf32, #tpu.memory_space<smem>>
    %335 = vector.broadcast %334 : f32 to vector<16x16xf32>
    %336 = arith.mulf %335, %321 : vector<16x16xf32>
    %337 = arith.addf %303, %336 : vector<16x16xf32>
    %c153 = arith.constant 153 : index
    %338 = memref.load %arg2[%c153] : memref<288xf32, #tpu.memory_space<smem>>
    %339 = vector.broadcast %338 : f32 to vector<16x16xf32>
    %340 = arith.mulf %339, %321 : vector<16x16xf32>
    %341 = arith.addf %307, %340 : vector<16x16xf32>
    %c189 = arith.constant 189 : index
    %342 = memref.load %arg2[%c189] : memref<288xf32, #tpu.memory_space<smem>>
    %343 = vector.broadcast %342 : f32 to vector<16x16xf32>
    %344 = arith.mulf %343, %321 : vector<16x16xf32>
    %345 = arith.addf %311, %344 : vector<16x16xf32>
    %c225 = arith.constant 225 : index
    %346 = memref.load %arg2[%c225] : memref<288xf32, #tpu.memory_space<smem>>
    %347 = vector.broadcast %346 : f32 to vector<16x16xf32>
    %348 = arith.mulf %347, %321 : vector<16x16xf32>
    %349 = arith.addf %315, %348 : vector<16x16xf32>
    %c261 = arith.constant 261 : index
    %350 = memref.load %arg2[%c261] : memref<288xf32, #tpu.memory_space<smem>>
    %351 = vector.broadcast %350 : f32 to vector<16x16xf32>
    %352 = arith.mulf %351, %321 : vector<16x16xf32>
    %353 = arith.addf %319, %352 : vector<16x16xf32>
    %c1_48 = arith.constant 1 : index
    %c0_49 = arith.constant 0 : index
    %c1_50 = arith.constant 1 : index
    %354 = vector.load %arg7[%c1_48, %c0_49, %c1_50] : memref<4x18x18xf32, #tpu.memory_space<vmem>>, vector<1x16x16xf32>
    %355 = vector.shape_cast %354 : vector<1x16x16xf32> to vector<16x16xf32>
    %c10 = arith.constant 10 : index
    %356 = memref.load %arg2[%c10] : memref<288xf32, #tpu.memory_space<smem>>
    %357 = vector.broadcast %356 : f32 to vector<16x16xf32>
    %358 = arith.mulf %357, %355 : vector<16x16xf32>
    %359 = arith.addf %325, %358 : vector<16x16xf32>
    %c46 = arith.constant 46 : index
    %360 = memref.load %arg2[%c46] : memref<288xf32, #tpu.memory_space<smem>>
    %361 = vector.broadcast %360 : f32 to vector<16x16xf32>
    %362 = arith.mulf %361, %355 : vector<16x16xf32>
    %363 = arith.addf %329, %362 : vector<16x16xf32>
    %c82 = arith.constant 82 : index
    %364 = memref.load %arg2[%c82] : memref<288xf32, #tpu.memory_space<smem>>
    %365 = vector.broadcast %364 : f32 to vector<16x16xf32>
    %366 = arith.mulf %365, %355 : vector<16x16xf32>
    %367 = arith.addf %333, %366 : vector<16x16xf32>
    %c118 = arith.constant 118 : index
    %368 = memref.load %arg2[%c118] : memref<288xf32, #tpu.memory_space<smem>>
    %369 = vector.broadcast %368 : f32 to vector<16x16xf32>
    %370 = arith.mulf %369, %355 : vector<16x16xf32>
    %371 = arith.addf %337, %370 : vector<16x16xf32>
    %c154 = arith.constant 154 : index
    %372 = memref.load %arg2[%c154] : memref<288xf32, #tpu.memory_space<smem>>
    %373 = vector.broadcast %372 : f32 to vector<16x16xf32>
    %374 = arith.mulf %373, %355 : vector<16x16xf32>
    %375 = arith.addf %341, %374 : vector<16x16xf32>
    %c190 = arith.constant 190 : index
    %376 = memref.load %arg2[%c190] : memref<288xf32, #tpu.memory_space<smem>>
    %377 = vector.broadcast %376 : f32 to vector<16x16xf32>
    %378 = arith.mulf %377, %355 : vector<16x16xf32>
    %379 = arith.addf %345, %378 : vector<16x16xf32>
    %c226 = arith.constant 226 : index
    %380 = memref.load %arg2[%c226] : memref<288xf32, #tpu.memory_space<smem>>
    %381 = vector.broadcast %380 : f32 to vector<16x16xf32>
    %382 = arith.mulf %381, %355 : vector<16x16xf32>
    %383 = arith.addf %349, %382 : vector<16x16xf32>
    %c262 = arith.constant 262 : index
    %384 = memref.load %arg2[%c262] : memref<288xf32, #tpu.memory_space<smem>>
    %385 = vector.broadcast %384 : f32 to vector<16x16xf32>
    %386 = arith.mulf %385, %355 : vector<16x16xf32>
    %387 = arith.addf %353, %386 : vector<16x16xf32>
    %c1_51 = arith.constant 1 : index
    %c0_52 = arith.constant 0 : index
    %c2_53 = arith.constant 2 : index
    %388 = vector.load %arg7[%c1_51, %c0_52, %c2_53] : memref<4x18x18xf32, #tpu.memory_space<vmem>>, vector<1x16x16xf32>
    %389 = vector.shape_cast %388 : vector<1x16x16xf32> to vector<16x16xf32>
    %c11 = arith.constant 11 : index
    %390 = memref.load %arg2[%c11] : memref<288xf32, #tpu.memory_space<smem>>
    %391 = vector.broadcast %390 : f32 to vector<16x16xf32>
    %392 = arith.mulf %391, %389 : vector<16x16xf32>
    %393 = arith.addf %359, %392 : vector<16x16xf32>
    %c47 = arith.constant 47 : index
    %394 = memref.load %arg2[%c47] : memref<288xf32, #tpu.memory_space<smem>>
    %395 = vector.broadcast %394 : f32 to vector<16x16xf32>
    %396 = arith.mulf %395, %389 : vector<16x16xf32>
    %397 = arith.addf %363, %396 : vector<16x16xf32>
    %c83 = arith.constant 83 : index
    %398 = memref.load %arg2[%c83] : memref<288xf32, #tpu.memory_space<smem>>
    %399 = vector.broadcast %398 : f32 to vector<16x16xf32>
    %400 = arith.mulf %399, %389 : vector<16x16xf32>
    %401 = arith.addf %367, %400 : vector<16x16xf32>
    %c119 = arith.constant 119 : index
    %402 = memref.load %arg2[%c119] : memref<288xf32, #tpu.memory_space<smem>>
    %403 = vector.broadcast %402 : f32 to vector<16x16xf32>
    %404 = arith.mulf %403, %389 : vector<16x16xf32>
    %405 = arith.addf %371, %404 : vector<16x16xf32>
    %c155 = arith.constant 155 : index
    %406 = memref.load %arg2[%c155] : memref<288xf32, #tpu.memory_space<smem>>
    %407 = vector.broadcast %406 : f32 to vector<16x16xf32>
    %408 = arith.mulf %407, %389 : vector<16x16xf32>
    %409 = arith.addf %375, %408 : vector<16x16xf32>
    %c191 = arith.constant 191 : index
    %410 = memref.load %arg2[%c191] : memref<288xf32, #tpu.memory_space<smem>>
    %411 = vector.broadcast %410 : f32 to vector<16x16xf32>
    %412 = arith.mulf %411, %389 : vector<16x16xf32>
    %413 = arith.addf %379, %412 : vector<16x16xf32>
    %c227 = arith.constant 227 : index
    %414 = memref.load %arg2[%c227] : memref<288xf32, #tpu.memory_space<smem>>
    %415 = vector.broadcast %414 : f32 to vector<16x16xf32>
    %416 = arith.mulf %415, %389 : vector<16x16xf32>
    %417 = arith.addf %383, %416 : vector<16x16xf32>
    %c263 = arith.constant 263 : index
    %418 = memref.load %arg2[%c263] : memref<288xf32, #tpu.memory_space<smem>>
    %419 = vector.broadcast %418 : f32 to vector<16x16xf32>
    %420 = arith.mulf %419, %389 : vector<16x16xf32>
    %421 = arith.addf %387, %420 : vector<16x16xf32>
    %c1_54 = arith.constant 1 : index
    %c1_55 = arith.constant 1 : index
    %c0_56 = arith.constant 0 : index
    %422 = vector.load %arg7[%c1_54, %c1_55, %c0_56] : memref<4x18x18xf32, #tpu.memory_space<vmem>>, vector<1x16x16xf32>
    %423 = vector.shape_cast %422 : vector<1x16x16xf32> to vector<16x16xf32>
    %c12 = arith.constant 12 : index
    %424 = memref.load %arg2[%c12] : memref<288xf32, #tpu.memory_space<smem>>
    %425 = vector.broadcast %424 : f32 to vector<16x16xf32>
    %426 = arith.mulf %425, %423 : vector<16x16xf32>
    %427 = arith.addf %393, %426 : vector<16x16xf32>
    %c48 = arith.constant 48 : index
    %428 = memref.load %arg2[%c48] : memref<288xf32, #tpu.memory_space<smem>>
    %429 = vector.broadcast %428 : f32 to vector<16x16xf32>
    %430 = arith.mulf %429, %423 : vector<16x16xf32>
    %431 = arith.addf %397, %430 : vector<16x16xf32>
    %c84 = arith.constant 84 : index
    %432 = memref.load %arg2[%c84] : memref<288xf32, #tpu.memory_space<smem>>
    %433 = vector.broadcast %432 : f32 to vector<16x16xf32>
    %434 = arith.mulf %433, %423 : vector<16x16xf32>
    %435 = arith.addf %401, %434 : vector<16x16xf32>
    %c120 = arith.constant 120 : index
    %436 = memref.load %arg2[%c120] : memref<288xf32, #tpu.memory_space<smem>>
    %437 = vector.broadcast %436 : f32 to vector<16x16xf32>
    %438 = arith.mulf %437, %423 : vector<16x16xf32>
    %439 = arith.addf %405, %438 : vector<16x16xf32>
    %c156 = arith.constant 156 : index
    %440 = memref.load %arg2[%c156] : memref<288xf32, #tpu.memory_space<smem>>
    %441 = vector.broadcast %440 : f32 to vector<16x16xf32>
    %442 = arith.mulf %441, %423 : vector<16x16xf32>
    %443 = arith.addf %409, %442 : vector<16x16xf32>
    %c192 = arith.constant 192 : index
    %444 = memref.load %arg2[%c192] : memref<288xf32, #tpu.memory_space<smem>>
    %445 = vector.broadcast %444 : f32 to vector<16x16xf32>
    %446 = arith.mulf %445, %423 : vector<16x16xf32>
    %447 = arith.addf %413, %446 : vector<16x16xf32>
    %c228 = arith.constant 228 : index
    %448 = memref.load %arg2[%c228] : memref<288xf32, #tpu.memory_space<smem>>
    %449 = vector.broadcast %448 : f32 to vector<16x16xf32>
    %450 = arith.mulf %449, %423 : vector<16x16xf32>
    %451 = arith.addf %417, %450 : vector<16x16xf32>
    %c264 = arith.constant 264 : index
    %452 = memref.load %arg2[%c264] : memref<288xf32, #tpu.memory_space<smem>>
    %453 = vector.broadcast %452 : f32 to vector<16x16xf32>
    %454 = arith.mulf %453, %423 : vector<16x16xf32>
    %455 = arith.addf %421, %454 : vector<16x16xf32>
    %c1_57 = arith.constant 1 : index
    %c1_58 = arith.constant 1 : index
    %c1_59 = arith.constant 1 : index
    %456 = vector.load %arg7[%c1_57, %c1_58, %c1_59] : memref<4x18x18xf32, #tpu.memory_space<vmem>>, vector<1x16x16xf32>
    %457 = vector.shape_cast %456 : vector<1x16x16xf32> to vector<16x16xf32>
    %c13 = arith.constant 13 : index
    %458 = memref.load %arg2[%c13] : memref<288xf32, #tpu.memory_space<smem>>
    %459 = vector.broadcast %458 : f32 to vector<16x16xf32>
    %460 = arith.mulf %459, %457 : vector<16x16xf32>
    %461 = arith.addf %427, %460 : vector<16x16xf32>
    %c49 = arith.constant 49 : index
    %462 = memref.load %arg2[%c49] : memref<288xf32, #tpu.memory_space<smem>>
    %463 = vector.broadcast %462 : f32 to vector<16x16xf32>
    %464 = arith.mulf %463, %457 : vector<16x16xf32>
    %465 = arith.addf %431, %464 : vector<16x16xf32>
    %c85 = arith.constant 85 : index
    %466 = memref.load %arg2[%c85] : memref<288xf32, #tpu.memory_space<smem>>
    %467 = vector.broadcast %466 : f32 to vector<16x16xf32>
    %468 = arith.mulf %467, %457 : vector<16x16xf32>
    %469 = arith.addf %435, %468 : vector<16x16xf32>
    %c121 = arith.constant 121 : index
    %470 = memref.load %arg2[%c121] : memref<288xf32, #tpu.memory_space<smem>>
    %471 = vector.broadcast %470 : f32 to vector<16x16xf32>
    %472 = arith.mulf %471, %457 : vector<16x16xf32>
    %473 = arith.addf %439, %472 : vector<16x16xf32>
    %c157 = arith.constant 157 : index
    %474 = memref.load %arg2[%c157] : memref<288xf32, #tpu.memory_space<smem>>
    %475 = vector.broadcast %474 : f32 to vector<16x16xf32>
    %476 = arith.mulf %475, %457 : vector<16x16xf32>
    %477 = arith.addf %443, %476 : vector<16x16xf32>
    %c193 = arith.constant 193 : index
    %478 = memref.load %arg2[%c193] : memref<288xf32, #tpu.memory_space<smem>>
    %479 = vector.broadcast %478 : f32 to vector<16x16xf32>
    %480 = arith.mulf %479, %457 : vector<16x16xf32>
    %481 = arith.addf %447, %480 : vector<16x16xf32>
    %c229 = arith.constant 229 : index
    %482 = memref.load %arg2[%c229] : memref<288xf32, #tpu.memory_space<smem>>
    %483 = vector.broadcast %482 : f32 to vector<16x16xf32>
    %484 = arith.mulf %483, %457 : vector<16x16xf32>
    %485 = arith.addf %451, %484 : vector<16x16xf32>
    %c265 = arith.constant 265 : index
    %486 = memref.load %arg2[%c265] : memref<288xf32, #tpu.memory_space<smem>>
    %487 = vector.broadcast %486 : f32 to vector<16x16xf32>
    %488 = arith.mulf %487, %457 : vector<16x16xf32>
    %489 = arith.addf %455, %488 : vector<16x16xf32>
    %c1_60 = arith.constant 1 : index
    %c1_61 = arith.constant 1 : index
    %c2_62 = arith.constant 2 : index
    %490 = vector.load %arg7[%c1_60, %c1_61, %c2_62] : memref<4x18x18xf32, #tpu.memory_space<vmem>>, vector<1x16x16xf32>
    %491 = vector.shape_cast %490 : vector<1x16x16xf32> to vector<16x16xf32>
    %c14 = arith.constant 14 : index
    %492 = memref.load %arg2[%c14] : memref<288xf32, #tpu.memory_space<smem>>
    %493 = vector.broadcast %492 : f32 to vector<16x16xf32>
    %494 = arith.mulf %493, %491 : vector<16x16xf32>
    %495 = arith.addf %461, %494 : vector<16x16xf32>
    %c50 = arith.constant 50 : index
    %496 = memref.load %arg2[%c50] : memref<288xf32, #tpu.memory_space<smem>>
    %497 = vector.broadcast %496 : f32 to vector<16x16xf32>
    %498 = arith.mulf %497, %491 : vector<16x16xf32>
    %499 = arith.addf %465, %498 : vector<16x16xf32>
    %c86 = arith.constant 86 : index
    %500 = memref.load %arg2[%c86] : memref<288xf32, #tpu.memory_space<smem>>
    %501 = vector.broadcast %500 : f32 to vector<16x16xf32>
    %502 = arith.mulf %501, %491 : vector<16x16xf32>
    %503 = arith.addf %469, %502 : vector<16x16xf32>
    %c122 = arith.constant 122 : index
    %504 = memref.load %arg2[%c122] : memref<288xf32, #tpu.memory_space<smem>>
    %505 = vector.broadcast %504 : f32 to vector<16x16xf32>
    %506 = arith.mulf %505, %491 : vector<16x16xf32>
    %507 = arith.addf %473, %506 : vector<16x16xf32>
    %c158 = arith.constant 158 : index
    %508 = memref.load %arg2[%c158] : memref<288xf32, #tpu.memory_space<smem>>
    %509 = vector.broadcast %508 : f32 to vector<16x16xf32>
    %510 = arith.mulf %509, %491 : vector<16x16xf32>
    %511 = arith.addf %477, %510 : vector<16x16xf32>
    %c194 = arith.constant 194 : index
    %512 = memref.load %arg2[%c194] : memref<288xf32, #tpu.memory_space<smem>>
    %513 = vector.broadcast %512 : f32 to vector<16x16xf32>
    %514 = arith.mulf %513, %491 : vector<16x16xf32>
    %515 = arith.addf %481, %514 : vector<16x16xf32>
    %c230 = arith.constant 230 : index
    %516 = memref.load %arg2[%c230] : memref<288xf32, #tpu.memory_space<smem>>
    %517 = vector.broadcast %516 : f32 to vector<16x16xf32>
    %518 = arith.mulf %517, %491 : vector<16x16xf32>
    %519 = arith.addf %485, %518 : vector<16x16xf32>
    %c266 = arith.constant 266 : index
    %520 = memref.load %arg2[%c266] : memref<288xf32, #tpu.memory_space<smem>>
    %521 = vector.broadcast %520 : f32 to vector<16x16xf32>
    %522 = arith.mulf %521, %491 : vector<16x16xf32>
    %523 = arith.addf %489, %522 : vector<16x16xf32>
    %c1_63 = arith.constant 1 : index
    %c2_64 = arith.constant 2 : index
    %c0_65 = arith.constant 0 : index
    %524 = vector.load %arg7[%c1_63, %c2_64, %c0_65] : memref<4x18x18xf32, #tpu.memory_space<vmem>>, vector<1x16x16xf32>
    %525 = vector.shape_cast %524 : vector<1x16x16xf32> to vector<16x16xf32>
    %c15 = arith.constant 15 : index
    %526 = memref.load %arg2[%c15] : memref<288xf32, #tpu.memory_space<smem>>
    %527 = vector.broadcast %526 : f32 to vector<16x16xf32>
    %528 = arith.mulf %527, %525 : vector<16x16xf32>
    %529 = arith.addf %495, %528 : vector<16x16xf32>
    %c51 = arith.constant 51 : index
    %530 = memref.load %arg2[%c51] : memref<288xf32, #tpu.memory_space<smem>>
    %531 = vector.broadcast %530 : f32 to vector<16x16xf32>
    %532 = arith.mulf %531, %525 : vector<16x16xf32>
    %533 = arith.addf %499, %532 : vector<16x16xf32>
    %c87 = arith.constant 87 : index
    %534 = memref.load %arg2[%c87] : memref<288xf32, #tpu.memory_space<smem>>
    %535 = vector.broadcast %534 : f32 to vector<16x16xf32>
    %536 = arith.mulf %535, %525 : vector<16x16xf32>
    %537 = arith.addf %503, %536 : vector<16x16xf32>
    %c123 = arith.constant 123 : index
    %538 = memref.load %arg2[%c123] : memref<288xf32, #tpu.memory_space<smem>>
    %539 = vector.broadcast %538 : f32 to vector<16x16xf32>
    %540 = arith.mulf %539, %525 : vector<16x16xf32>
    %541 = arith.addf %507, %540 : vector<16x16xf32>
    %c159 = arith.constant 159 : index
    %542 = memref.load %arg2[%c159] : memref<288xf32, #tpu.memory_space<smem>>
    %543 = vector.broadcast %542 : f32 to vector<16x16xf32>
    %544 = arith.mulf %543, %525 : vector<16x16xf32>
    %545 = arith.addf %511, %544 : vector<16x16xf32>
    %c195 = arith.constant 195 : index
    %546 = memref.load %arg2[%c195] : memref<288xf32, #tpu.memory_space<smem>>
    %547 = vector.broadcast %546 : f32 to vector<16x16xf32>
    %548 = arith.mulf %547, %525 : vector<16x16xf32>
    %549 = arith.addf %515, %548 : vector<16x16xf32>
    %c231 = arith.constant 231 : index
    %550 = memref.load %arg2[%c231] : memref<288xf32, #tpu.memory_space<smem>>
    %551 = vector.broadcast %550 : f32 to vector<16x16xf32>
    %552 = arith.mulf %551, %525 : vector<16x16xf32>
    %553 = arith.addf %519, %552 : vector<16x16xf32>
    %c267 = arith.constant 267 : index
    %554 = memref.load %arg2[%c267] : memref<288xf32, #tpu.memory_space<smem>>
    %555 = vector.broadcast %554 : f32 to vector<16x16xf32>
    %556 = arith.mulf %555, %525 : vector<16x16xf32>
    %557 = arith.addf %523, %556 : vector<16x16xf32>
    %c1_66 = arith.constant 1 : index
    %c2_67 = arith.constant 2 : index
    %c1_68 = arith.constant 1 : index
    %558 = vector.load %arg7[%c1_66, %c2_67, %c1_68] : memref<4x18x18xf32, #tpu.memory_space<vmem>>, vector<1x16x16xf32>
    %559 = vector.shape_cast %558 : vector<1x16x16xf32> to vector<16x16xf32>
    %c16 = arith.constant 16 : index
    %560 = memref.load %arg2[%c16] : memref<288xf32, #tpu.memory_space<smem>>
    %561 = vector.broadcast %560 : f32 to vector<16x16xf32>
    %562 = arith.mulf %561, %559 : vector<16x16xf32>
    %563 = arith.addf %529, %562 : vector<16x16xf32>
    %c52 = arith.constant 52 : index
    %564 = memref.load %arg2[%c52] : memref<288xf32, #tpu.memory_space<smem>>
    %565 = vector.broadcast %564 : f32 to vector<16x16xf32>
    %566 = arith.mulf %565, %559 : vector<16x16xf32>
    %567 = arith.addf %533, %566 : vector<16x16xf32>
    %c88 = arith.constant 88 : index
    %568 = memref.load %arg2[%c88] : memref<288xf32, #tpu.memory_space<smem>>
    %569 = vector.broadcast %568 : f32 to vector<16x16xf32>
    %570 = arith.mulf %569, %559 : vector<16x16xf32>
    %571 = arith.addf %537, %570 : vector<16x16xf32>
    %c124 = arith.constant 124 : index
    %572 = memref.load %arg2[%c124] : memref<288xf32, #tpu.memory_space<smem>>
    %573 = vector.broadcast %572 : f32 to vector<16x16xf32>
    %574 = arith.mulf %573, %559 : vector<16x16xf32>
    %575 = arith.addf %541, %574 : vector<16x16xf32>
    %c160 = arith.constant 160 : index
    %576 = memref.load %arg2[%c160] : memref<288xf32, #tpu.memory_space<smem>>
    %577 = vector.broadcast %576 : f32 to vector<16x16xf32>
    %578 = arith.mulf %577, %559 : vector<16x16xf32>
    %579 = arith.addf %545, %578 : vector<16x16xf32>
    %c196 = arith.constant 196 : index
    %580 = memref.load %arg2[%c196] : memref<288xf32, #tpu.memory_space<smem>>
    %581 = vector.broadcast %580 : f32 to vector<16x16xf32>
    %582 = arith.mulf %581, %559 : vector<16x16xf32>
    %583 = arith.addf %549, %582 : vector<16x16xf32>
    %c232 = arith.constant 232 : index
    %584 = memref.load %arg2[%c232] : memref<288xf32, #tpu.memory_space<smem>>
    %585 = vector.broadcast %584 : f32 to vector<16x16xf32>
    %586 = arith.mulf %585, %559 : vector<16x16xf32>
    %587 = arith.addf %553, %586 : vector<16x16xf32>
    %c268 = arith.constant 268 : index
    %588 = memref.load %arg2[%c268] : memref<288xf32, #tpu.memory_space<smem>>
    %589 = vector.broadcast %588 : f32 to vector<16x16xf32>
    %590 = arith.mulf %589, %559 : vector<16x16xf32>
    %591 = arith.addf %557, %590 : vector<16x16xf32>
    %c1_69 = arith.constant 1 : index
    %c2_70 = arith.constant 2 : index
    %c2_71 = arith.constant 2 : index
    %592 = vector.load %arg7[%c1_69, %c2_70, %c2_71] : memref<4x18x18xf32, #tpu.memory_space<vmem>>, vector<1x16x16xf32>
    %593 = vector.shape_cast %592 : vector<1x16x16xf32> to vector<16x16xf32>
    %c17 = arith.constant 17 : index
    %594 = memref.load %arg2[%c17] : memref<288xf32, #tpu.memory_space<smem>>
    %595 = vector.broadcast %594 : f32 to vector<16x16xf32>
    %596 = arith.mulf %595, %593 : vector<16x16xf32>
    %597 = arith.addf %563, %596 : vector<16x16xf32>
    %c53 = arith.constant 53 : index
    %598 = memref.load %arg2[%c53] : memref<288xf32, #tpu.memory_space<smem>>
    %599 = vector.broadcast %598 : f32 to vector<16x16xf32>
    %600 = arith.mulf %599, %593 : vector<16x16xf32>
    %601 = arith.addf %567, %600 : vector<16x16xf32>
    %c89 = arith.constant 89 : index
    %602 = memref.load %arg2[%c89] : memref<288xf32, #tpu.memory_space<smem>>
    %603 = vector.broadcast %602 : f32 to vector<16x16xf32>
    %604 = arith.mulf %603, %593 : vector<16x16xf32>
    %605 = arith.addf %571, %604 : vector<16x16xf32>
    %c125 = arith.constant 125 : index
    %606 = memref.load %arg2[%c125] : memref<288xf32, #tpu.memory_space<smem>>
    %607 = vector.broadcast %606 : f32 to vector<16x16xf32>
    %608 = arith.mulf %607, %593 : vector<16x16xf32>
    %609 = arith.addf %575, %608 : vector<16x16xf32>
    %c161 = arith.constant 161 : index
    %610 = memref.load %arg2[%c161] : memref<288xf32, #tpu.memory_space<smem>>
    %611 = vector.broadcast %610 : f32 to vector<16x16xf32>
    %612 = arith.mulf %611, %593 : vector<16x16xf32>
    %613 = arith.addf %579, %612 : vector<16x16xf32>
    %c197 = arith.constant 197 : index
    %614 = memref.load %arg2[%c197] : memref<288xf32, #tpu.memory_space<smem>>
    %615 = vector.broadcast %614 : f32 to vector<16x16xf32>
    %616 = arith.mulf %615, %593 : vector<16x16xf32>
    %617 = arith.addf %583, %616 : vector<16x16xf32>
    %c233 = arith.constant 233 : index
    %618 = memref.load %arg2[%c233] : memref<288xf32, #tpu.memory_space<smem>>
    %619 = vector.broadcast %618 : f32 to vector<16x16xf32>
    %620 = arith.mulf %619, %593 : vector<16x16xf32>
    %621 = arith.addf %587, %620 : vector<16x16xf32>
    %c269 = arith.constant 269 : index
    %622 = memref.load %arg2[%c269] : memref<288xf32, #tpu.memory_space<smem>>
    %623 = vector.broadcast %622 : f32 to vector<16x16xf32>
    %624 = arith.mulf %623, %593 : vector<16x16xf32>
    %625 = arith.addf %591, %624 : vector<16x16xf32>
    %c2_72 = arith.constant 2 : index
    %c0_73 = arith.constant 0 : index
    %c0_74 = arith.constant 0 : index
    %626 = vector.load %arg7[%c2_72, %c0_73, %c0_74] : memref<4x18x18xf32, #tpu.memory_space<vmem>>, vector<1x16x16xf32>
    %627 = vector.shape_cast %626 : vector<1x16x16xf32> to vector<16x16xf32>
    %c18 = arith.constant 18 : index
    %628 = memref.load %arg2[%c18] : memref<288xf32, #tpu.memory_space<smem>>
    %629 = vector.broadcast %628 : f32 to vector<16x16xf32>
    %630 = arith.mulf %629, %627 : vector<16x16xf32>
    %631 = arith.addf %597, %630 : vector<16x16xf32>
    %c54 = arith.constant 54 : index
    %632 = memref.load %arg2[%c54] : memref<288xf32, #tpu.memory_space<smem>>
    %633 = vector.broadcast %632 : f32 to vector<16x16xf32>
    %634 = arith.mulf %633, %627 : vector<16x16xf32>
    %635 = arith.addf %601, %634 : vector<16x16xf32>
    %c90 = arith.constant 90 : index
    %636 = memref.load %arg2[%c90] : memref<288xf32, #tpu.memory_space<smem>>
    %637 = vector.broadcast %636 : f32 to vector<16x16xf32>
    %638 = arith.mulf %637, %627 : vector<16x16xf32>
    %639 = arith.addf %605, %638 : vector<16x16xf32>
    %c126 = arith.constant 126 : index
    %640 = memref.load %arg2[%c126] : memref<288xf32, #tpu.memory_space<smem>>
    %641 = vector.broadcast %640 : f32 to vector<16x16xf32>
    %642 = arith.mulf %641, %627 : vector<16x16xf32>
    %643 = arith.addf %609, %642 : vector<16x16xf32>
    %c162 = arith.constant 162 : index
    %644 = memref.load %arg2[%c162] : memref<288xf32, #tpu.memory_space<smem>>
    %645 = vector.broadcast %644 : f32 to vector<16x16xf32>
    %646 = arith.mulf %645, %627 : vector<16x16xf32>
    %647 = arith.addf %613, %646 : vector<16x16xf32>
    %c198 = arith.constant 198 : index
    %648 = memref.load %arg2[%c198] : memref<288xf32, #tpu.memory_space<smem>>
    %649 = vector.broadcast %648 : f32 to vector<16x16xf32>
    %650 = arith.mulf %649, %627 : vector<16x16xf32>
    %651 = arith.addf %617, %650 : vector<16x16xf32>
    %c234 = arith.constant 234 : index
    %652 = memref.load %arg2[%c234] : memref<288xf32, #tpu.memory_space<smem>>
    %653 = vector.broadcast %652 : f32 to vector<16x16xf32>
    %654 = arith.mulf %653, %627 : vector<16x16xf32>
    %655 = arith.addf %621, %654 : vector<16x16xf32>
    %c270 = arith.constant 270 : index
    %656 = memref.load %arg2[%c270] : memref<288xf32, #tpu.memory_space<smem>>
    %657 = vector.broadcast %656 : f32 to vector<16x16xf32>
    %658 = arith.mulf %657, %627 : vector<16x16xf32>
    %659 = arith.addf %625, %658 : vector<16x16xf32>
    %c2_75 = arith.constant 2 : index
    %c0_76 = arith.constant 0 : index
    %c1_77 = arith.constant 1 : index
    %660 = vector.load %arg7[%c2_75, %c0_76, %c1_77] : memref<4x18x18xf32, #tpu.memory_space<vmem>>, vector<1x16x16xf32>
    %661 = vector.shape_cast %660 : vector<1x16x16xf32> to vector<16x16xf32>
    %c19 = arith.constant 19 : index
    %662 = memref.load %arg2[%c19] : memref<288xf32, #tpu.memory_space<smem>>
    %663 = vector.broadcast %662 : f32 to vector<16x16xf32>
    %664 = arith.mulf %663, %661 : vector<16x16xf32>
    %665 = arith.addf %631, %664 : vector<16x16xf32>
    %c55 = arith.constant 55 : index
    %666 = memref.load %arg2[%c55] : memref<288xf32, #tpu.memory_space<smem>>
    %667 = vector.broadcast %666 : f32 to vector<16x16xf32>
    %668 = arith.mulf %667, %661 : vector<16x16xf32>
    %669 = arith.addf %635, %668 : vector<16x16xf32>
    %c91 = arith.constant 91 : index
    %670 = memref.load %arg2[%c91] : memref<288xf32, #tpu.memory_space<smem>>
    %671 = vector.broadcast %670 : f32 to vector<16x16xf32>
    %672 = arith.mulf %671, %661 : vector<16x16xf32>
    %673 = arith.addf %639, %672 : vector<16x16xf32>
    %c127 = arith.constant 127 : index
    %674 = memref.load %arg2[%c127] : memref<288xf32, #tpu.memory_space<smem>>
    %675 = vector.broadcast %674 : f32 to vector<16x16xf32>
    %676 = arith.mulf %675, %661 : vector<16x16xf32>
    %677 = arith.addf %643, %676 : vector<16x16xf32>
    %c163 = arith.constant 163 : index
    %678 = memref.load %arg2[%c163] : memref<288xf32, #tpu.memory_space<smem>>
    %679 = vector.broadcast %678 : f32 to vector<16x16xf32>
    %680 = arith.mulf %679, %661 : vector<16x16xf32>
    %681 = arith.addf %647, %680 : vector<16x16xf32>
    %c199 = arith.constant 199 : index
    %682 = memref.load %arg2[%c199] : memref<288xf32, #tpu.memory_space<smem>>
    %683 = vector.broadcast %682 : f32 to vector<16x16xf32>
    %684 = arith.mulf %683, %661 : vector<16x16xf32>
    %685 = arith.addf %651, %684 : vector<16x16xf32>
    %c235 = arith.constant 235 : index
    %686 = memref.load %arg2[%c235] : memref<288xf32, #tpu.memory_space<smem>>
    %687 = vector.broadcast %686 : f32 to vector<16x16xf32>
    %688 = arith.mulf %687, %661 : vector<16x16xf32>
    %689 = arith.addf %655, %688 : vector<16x16xf32>
    %c271 = arith.constant 271 : index
    %690 = memref.load %arg2[%c271] : memref<288xf32, #tpu.memory_space<smem>>
    %691 = vector.broadcast %690 : f32 to vector<16x16xf32>
    %692 = arith.mulf %691, %661 : vector<16x16xf32>
    %693 = arith.addf %659, %692 : vector<16x16xf32>
    %c2_78 = arith.constant 2 : index
    %c0_79 = arith.constant 0 : index
    %c2_80 = arith.constant 2 : index
    %694 = vector.load %arg7[%c2_78, %c0_79, %c2_80] : memref<4x18x18xf32, #tpu.memory_space<vmem>>, vector<1x16x16xf32>
    %695 = vector.shape_cast %694 : vector<1x16x16xf32> to vector<16x16xf32>
    %c20 = arith.constant 20 : index
    %696 = memref.load %arg2[%c20] : memref<288xf32, #tpu.memory_space<smem>>
    %697 = vector.broadcast %696 : f32 to vector<16x16xf32>
    %698 = arith.mulf %697, %695 : vector<16x16xf32>
    %699 = arith.addf %665, %698 : vector<16x16xf32>
    %c56 = arith.constant 56 : index
    %700 = memref.load %arg2[%c56] : memref<288xf32, #tpu.memory_space<smem>>
    %701 = vector.broadcast %700 : f32 to vector<16x16xf32>
    %702 = arith.mulf %701, %695 : vector<16x16xf32>
    %703 = arith.addf %669, %702 : vector<16x16xf32>
    %c92 = arith.constant 92 : index
    %704 = memref.load %arg2[%c92] : memref<288xf32, #tpu.memory_space<smem>>
    %705 = vector.broadcast %704 : f32 to vector<16x16xf32>
    %706 = arith.mulf %705, %695 : vector<16x16xf32>
    %707 = arith.addf %673, %706 : vector<16x16xf32>
    %c128 = arith.constant 128 : index
    %708 = memref.load %arg2[%c128] : memref<288xf32, #tpu.memory_space<smem>>
    %709 = vector.broadcast %708 : f32 to vector<16x16xf32>
    %710 = arith.mulf %709, %695 : vector<16x16xf32>
    %711 = arith.addf %677, %710 : vector<16x16xf32>
    %c164 = arith.constant 164 : index
    %712 = memref.load %arg2[%c164] : memref<288xf32, #tpu.memory_space<smem>>
    %713 = vector.broadcast %712 : f32 to vector<16x16xf32>
    %714 = arith.mulf %713, %695 : vector<16x16xf32>
    %715 = arith.addf %681, %714 : vector<16x16xf32>
    %c200 = arith.constant 200 : index
    %716 = memref.load %arg2[%c200] : memref<288xf32, #tpu.memory_space<smem>>
    %717 = vector.broadcast %716 : f32 to vector<16x16xf32>
    %718 = arith.mulf %717, %695 : vector<16x16xf32>
    %719 = arith.addf %685, %718 : vector<16x16xf32>
    %c236 = arith.constant 236 : index
    %720 = memref.load %arg2[%c236] : memref<288xf32, #tpu.memory_space<smem>>
    %721 = vector.broadcast %720 : f32 to vector<16x16xf32>
    %722 = arith.mulf %721, %695 : vector<16x16xf32>
    %723 = arith.addf %689, %722 : vector<16x16xf32>
    %c272 = arith.constant 272 : index
    %724 = memref.load %arg2[%c272] : memref<288xf32, #tpu.memory_space<smem>>
    %725 = vector.broadcast %724 : f32 to vector<16x16xf32>
    %726 = arith.mulf %725, %695 : vector<16x16xf32>
    %727 = arith.addf %693, %726 : vector<16x16xf32>
    %c2_81 = arith.constant 2 : index
    %c1_82 = arith.constant 1 : index
    %c0_83 = arith.constant 0 : index
    %728 = vector.load %arg7[%c2_81, %c1_82, %c0_83] : memref<4x18x18xf32, #tpu.memory_space<vmem>>, vector<1x16x16xf32>
    %729 = vector.shape_cast %728 : vector<1x16x16xf32> to vector<16x16xf32>
    %c21 = arith.constant 21 : index
    %730 = memref.load %arg2[%c21] : memref<288xf32, #tpu.memory_space<smem>>
    %731 = vector.broadcast %730 : f32 to vector<16x16xf32>
    %732 = arith.mulf %731, %729 : vector<16x16xf32>
    %733 = arith.addf %699, %732 : vector<16x16xf32>
    %c57 = arith.constant 57 : index
    %734 = memref.load %arg2[%c57] : memref<288xf32, #tpu.memory_space<smem>>
    %735 = vector.broadcast %734 : f32 to vector<16x16xf32>
    %736 = arith.mulf %735, %729 : vector<16x16xf32>
    %737 = arith.addf %703, %736 : vector<16x16xf32>
    %c93 = arith.constant 93 : index
    %738 = memref.load %arg2[%c93] : memref<288xf32, #tpu.memory_space<smem>>
    %739 = vector.broadcast %738 : f32 to vector<16x16xf32>
    %740 = arith.mulf %739, %729 : vector<16x16xf32>
    %741 = arith.addf %707, %740 : vector<16x16xf32>
    %c129 = arith.constant 129 : index
    %742 = memref.load %arg2[%c129] : memref<288xf32, #tpu.memory_space<smem>>
    %743 = vector.broadcast %742 : f32 to vector<16x16xf32>
    %744 = arith.mulf %743, %729 : vector<16x16xf32>
    %745 = arith.addf %711, %744 : vector<16x16xf32>
    %c165 = arith.constant 165 : index
    %746 = memref.load %arg2[%c165] : memref<288xf32, #tpu.memory_space<smem>>
    %747 = vector.broadcast %746 : f32 to vector<16x16xf32>
    %748 = arith.mulf %747, %729 : vector<16x16xf32>
    %749 = arith.addf %715, %748 : vector<16x16xf32>
    %c201 = arith.constant 201 : index
    %750 = memref.load %arg2[%c201] : memref<288xf32, #tpu.memory_space<smem>>
    %751 = vector.broadcast %750 : f32 to vector<16x16xf32>
    %752 = arith.mulf %751, %729 : vector<16x16xf32>
    %753 = arith.addf %719, %752 : vector<16x16xf32>
    %c237 = arith.constant 237 : index
    %754 = memref.load %arg2[%c237] : memref<288xf32, #tpu.memory_space<smem>>
    %755 = vector.broadcast %754 : f32 to vector<16x16xf32>
    %756 = arith.mulf %755, %729 : vector<16x16xf32>
    %757 = arith.addf %723, %756 : vector<16x16xf32>
    %c273 = arith.constant 273 : index
    %758 = memref.load %arg2[%c273] : memref<288xf32, #tpu.memory_space<smem>>
    %759 = vector.broadcast %758 : f32 to vector<16x16xf32>
    %760 = arith.mulf %759, %729 : vector<16x16xf32>
    %761 = arith.addf %727, %760 : vector<16x16xf32>
    %c2_84 = arith.constant 2 : index
    %c1_85 = arith.constant 1 : index
    %c1_86 = arith.constant 1 : index
    %762 = vector.load %arg7[%c2_84, %c1_85, %c1_86] : memref<4x18x18xf32, #tpu.memory_space<vmem>>, vector<1x16x16xf32>
    %763 = vector.shape_cast %762 : vector<1x16x16xf32> to vector<16x16xf32>
    %c22 = arith.constant 22 : index
    %764 = memref.load %arg2[%c22] : memref<288xf32, #tpu.memory_space<smem>>
    %765 = vector.broadcast %764 : f32 to vector<16x16xf32>
    %766 = arith.mulf %765, %763 : vector<16x16xf32>
    %767 = arith.addf %733, %766 : vector<16x16xf32>
    %c58 = arith.constant 58 : index
    %768 = memref.load %arg2[%c58] : memref<288xf32, #tpu.memory_space<smem>>
    %769 = vector.broadcast %768 : f32 to vector<16x16xf32>
    %770 = arith.mulf %769, %763 : vector<16x16xf32>
    %771 = arith.addf %737, %770 : vector<16x16xf32>
    %c94 = arith.constant 94 : index
    %772 = memref.load %arg2[%c94] : memref<288xf32, #tpu.memory_space<smem>>
    %773 = vector.broadcast %772 : f32 to vector<16x16xf32>
    %774 = arith.mulf %773, %763 : vector<16x16xf32>
    %775 = arith.addf %741, %774 : vector<16x16xf32>
    %c130 = arith.constant 130 : index
    %776 = memref.load %arg2[%c130] : memref<288xf32, #tpu.memory_space<smem>>
    %777 = vector.broadcast %776 : f32 to vector<16x16xf32>
    %778 = arith.mulf %777, %763 : vector<16x16xf32>
    %779 = arith.addf %745, %778 : vector<16x16xf32>
    %c166 = arith.constant 166 : index
    %780 = memref.load %arg2[%c166] : memref<288xf32, #tpu.memory_space<smem>>
    %781 = vector.broadcast %780 : f32 to vector<16x16xf32>
    %782 = arith.mulf %781, %763 : vector<16x16xf32>
    %783 = arith.addf %749, %782 : vector<16x16xf32>
    %c202 = arith.constant 202 : index
    %784 = memref.load %arg2[%c202] : memref<288xf32, #tpu.memory_space<smem>>
    %785 = vector.broadcast %784 : f32 to vector<16x16xf32>
    %786 = arith.mulf %785, %763 : vector<16x16xf32>
    %787 = arith.addf %753, %786 : vector<16x16xf32>
    %c238 = arith.constant 238 : index
    %788 = memref.load %arg2[%c238] : memref<288xf32, #tpu.memory_space<smem>>
    %789 = vector.broadcast %788 : f32 to vector<16x16xf32>
    %790 = arith.mulf %789, %763 : vector<16x16xf32>
    %791 = arith.addf %757, %790 : vector<16x16xf32>
    %c274 = arith.constant 274 : index
    %792 = memref.load %arg2[%c274] : memref<288xf32, #tpu.memory_space<smem>>
    %793 = vector.broadcast %792 : f32 to vector<16x16xf32>
    %794 = arith.mulf %793, %763 : vector<16x16xf32>
    %795 = arith.addf %761, %794 : vector<16x16xf32>
    %c2_87 = arith.constant 2 : index
    %c1_88 = arith.constant 1 : index
    %c2_89 = arith.constant 2 : index
    %796 = vector.load %arg7[%c2_87, %c1_88, %c2_89] : memref<4x18x18xf32, #tpu.memory_space<vmem>>, vector<1x16x16xf32>
    %797 = vector.shape_cast %796 : vector<1x16x16xf32> to vector<16x16xf32>
    %c23 = arith.constant 23 : index
    %798 = memref.load %arg2[%c23] : memref<288xf32, #tpu.memory_space<smem>>
    %799 = vector.broadcast %798 : f32 to vector<16x16xf32>
    %800 = arith.mulf %799, %797 : vector<16x16xf32>
    %801 = arith.addf %767, %800 : vector<16x16xf32>
    %c59 = arith.constant 59 : index
    %802 = memref.load %arg2[%c59] : memref<288xf32, #tpu.memory_space<smem>>
    %803 = vector.broadcast %802 : f32 to vector<16x16xf32>
    %804 = arith.mulf %803, %797 : vector<16x16xf32>
    %805 = arith.addf %771, %804 : vector<16x16xf32>
    %c95 = arith.constant 95 : index
    %806 = memref.load %arg2[%c95] : memref<288xf32, #tpu.memory_space<smem>>
    %807 = vector.broadcast %806 : f32 to vector<16x16xf32>
    %808 = arith.mulf %807, %797 : vector<16x16xf32>
    %809 = arith.addf %775, %808 : vector<16x16xf32>
    %c131 = arith.constant 131 : index
    %810 = memref.load %arg2[%c131] : memref<288xf32, #tpu.memory_space<smem>>
    %811 = vector.broadcast %810 : f32 to vector<16x16xf32>
    %812 = arith.mulf %811, %797 : vector<16x16xf32>
    %813 = arith.addf %779, %812 : vector<16x16xf32>
    %c167 = arith.constant 167 : index
    %814 = memref.load %arg2[%c167] : memref<288xf32, #tpu.memory_space<smem>>
    %815 = vector.broadcast %814 : f32 to vector<16x16xf32>
    %816 = arith.mulf %815, %797 : vector<16x16xf32>
    %817 = arith.addf %783, %816 : vector<16x16xf32>
    %c203 = arith.constant 203 : index
    %818 = memref.load %arg2[%c203] : memref<288xf32, #tpu.memory_space<smem>>
    %819 = vector.broadcast %818 : f32 to vector<16x16xf32>
    %820 = arith.mulf %819, %797 : vector<16x16xf32>
    %821 = arith.addf %787, %820 : vector<16x16xf32>
    %c239 = arith.constant 239 : index
    %822 = memref.load %arg2[%c239] : memref<288xf32, #tpu.memory_space<smem>>
    %823 = vector.broadcast %822 : f32 to vector<16x16xf32>
    %824 = arith.mulf %823, %797 : vector<16x16xf32>
    %825 = arith.addf %791, %824 : vector<16x16xf32>
    %c275 = arith.constant 275 : index
    %826 = memref.load %arg2[%c275] : memref<288xf32, #tpu.memory_space<smem>>
    %827 = vector.broadcast %826 : f32 to vector<16x16xf32>
    %828 = arith.mulf %827, %797 : vector<16x16xf32>
    %829 = arith.addf %795, %828 : vector<16x16xf32>
    %c2_90 = arith.constant 2 : index
    %c2_91 = arith.constant 2 : index
    %c0_92 = arith.constant 0 : index
    %830 = vector.load %arg7[%c2_90, %c2_91, %c0_92] : memref<4x18x18xf32, #tpu.memory_space<vmem>>, vector<1x16x16xf32>
    %831 = vector.shape_cast %830 : vector<1x16x16xf32> to vector<16x16xf32>
    %c24 = arith.constant 24 : index
    %832 = memref.load %arg2[%c24] : memref<288xf32, #tpu.memory_space<smem>>
    %833 = vector.broadcast %832 : f32 to vector<16x16xf32>
    %834 = arith.mulf %833, %831 : vector<16x16xf32>
    %835 = arith.addf %801, %834 : vector<16x16xf32>
    %c60 = arith.constant 60 : index
    %836 = memref.load %arg2[%c60] : memref<288xf32, #tpu.memory_space<smem>>
    %837 = vector.broadcast %836 : f32 to vector<16x16xf32>
    %838 = arith.mulf %837, %831 : vector<16x16xf32>
    %839 = arith.addf %805, %838 : vector<16x16xf32>
    %c96 = arith.constant 96 : index
    %840 = memref.load %arg2[%c96] : memref<288xf32, #tpu.memory_space<smem>>
    %841 = vector.broadcast %840 : f32 to vector<16x16xf32>
    %842 = arith.mulf %841, %831 : vector<16x16xf32>
    %843 = arith.addf %809, %842 : vector<16x16xf32>
    %c132 = arith.constant 132 : index
    %844 = memref.load %arg2[%c132] : memref<288xf32, #tpu.memory_space<smem>>
    %845 = vector.broadcast %844 : f32 to vector<16x16xf32>
    %846 = arith.mulf %845, %831 : vector<16x16xf32>
    %847 = arith.addf %813, %846 : vector<16x16xf32>
    %c168 = arith.constant 168 : index
    %848 = memref.load %arg2[%c168] : memref<288xf32, #tpu.memory_space<smem>>
    %849 = vector.broadcast %848 : f32 to vector<16x16xf32>
    %850 = arith.mulf %849, %831 : vector<16x16xf32>
    %851 = arith.addf %817, %850 : vector<16x16xf32>
    %c204 = arith.constant 204 : index
    %852 = memref.load %arg2[%c204] : memref<288xf32, #tpu.memory_space<smem>>
    %853 = vector.broadcast %852 : f32 to vector<16x16xf32>
    %854 = arith.mulf %853, %831 : vector<16x16xf32>
    %855 = arith.addf %821, %854 : vector<16x16xf32>
    %c240 = arith.constant 240 : index
    %856 = memref.load %arg2[%c240] : memref<288xf32, #tpu.memory_space<smem>>
    %857 = vector.broadcast %856 : f32 to vector<16x16xf32>
    %858 = arith.mulf %857, %831 : vector<16x16xf32>
    %859 = arith.addf %825, %858 : vector<16x16xf32>
    %c276 = arith.constant 276 : index
    %860 = memref.load %arg2[%c276] : memref<288xf32, #tpu.memory_space<smem>>
    %861 = vector.broadcast %860 : f32 to vector<16x16xf32>
    %862 = arith.mulf %861, %831 : vector<16x16xf32>
    %863 = arith.addf %829, %862 : vector<16x16xf32>
    %c2_93 = arith.constant 2 : index
    %c2_94 = arith.constant 2 : index
    %c1_95 = arith.constant 1 : index
    %864 = vector.load %arg7[%c2_93, %c2_94, %c1_95] : memref<4x18x18xf32, #tpu.memory_space<vmem>>, vector<1x16x16xf32>
    %865 = vector.shape_cast %864 : vector<1x16x16xf32> to vector<16x16xf32>
    %c25 = arith.constant 25 : index
    %866 = memref.load %arg2[%c25] : memref<288xf32, #tpu.memory_space<smem>>
    %867 = vector.broadcast %866 : f32 to vector<16x16xf32>
    %868 = arith.mulf %867, %865 : vector<16x16xf32>
    %869 = arith.addf %835, %868 : vector<16x16xf32>
    %c61 = arith.constant 61 : index
    %870 = memref.load %arg2[%c61] : memref<288xf32, #tpu.memory_space<smem>>
    %871 = vector.broadcast %870 : f32 to vector<16x16xf32>
    %872 = arith.mulf %871, %865 : vector<16x16xf32>
    %873 = arith.addf %839, %872 : vector<16x16xf32>
    %c97 = arith.constant 97 : index
    %874 = memref.load %arg2[%c97] : memref<288xf32, #tpu.memory_space<smem>>
    %875 = vector.broadcast %874 : f32 to vector<16x16xf32>
    %876 = arith.mulf %875, %865 : vector<16x16xf32>
    %877 = arith.addf %843, %876 : vector<16x16xf32>
    %c133 = arith.constant 133 : index
    %878 = memref.load %arg2[%c133] : memref<288xf32, #tpu.memory_space<smem>>
    %879 = vector.broadcast %878 : f32 to vector<16x16xf32>
    %880 = arith.mulf %879, %865 : vector<16x16xf32>
    %881 = arith.addf %847, %880 : vector<16x16xf32>
    %c169 = arith.constant 169 : index
    %882 = memref.load %arg2[%c169] : memref<288xf32, #tpu.memory_space<smem>>
    %883 = vector.broadcast %882 : f32 to vector<16x16xf32>
    %884 = arith.mulf %883, %865 : vector<16x16xf32>
    %885 = arith.addf %851, %884 : vector<16x16xf32>
    %c205 = arith.constant 205 : index
    %886 = memref.load %arg2[%c205] : memref<288xf32, #tpu.memory_space<smem>>
    %887 = vector.broadcast %886 : f32 to vector<16x16xf32>
    %888 = arith.mulf %887, %865 : vector<16x16xf32>
    %889 = arith.addf %855, %888 : vector<16x16xf32>
    %c241 = arith.constant 241 : index
    %890 = memref.load %arg2[%c241] : memref<288xf32, #tpu.memory_space<smem>>
    %891 = vector.broadcast %890 : f32 to vector<16x16xf32>
    %892 = arith.mulf %891, %865 : vector<16x16xf32>
    %893 = arith.addf %859, %892 : vector<16x16xf32>
    %c277 = arith.constant 277 : index
    %894 = memref.load %arg2[%c277] : memref<288xf32, #tpu.memory_space<smem>>
    %895 = vector.broadcast %894 : f32 to vector<16x16xf32>
    %896 = arith.mulf %895, %865 : vector<16x16xf32>
    %897 = arith.addf %863, %896 : vector<16x16xf32>
    %c2_96 = arith.constant 2 : index
    %c2_97 = arith.constant 2 : index
    %c2_98 = arith.constant 2 : index
    %898 = vector.load %arg7[%c2_96, %c2_97, %c2_98] : memref<4x18x18xf32, #tpu.memory_space<vmem>>, vector<1x16x16xf32>
    %899 = vector.shape_cast %898 : vector<1x16x16xf32> to vector<16x16xf32>
    %c26 = arith.constant 26 : index
    %900 = memref.load %arg2[%c26] : memref<288xf32, #tpu.memory_space<smem>>
    %901 = vector.broadcast %900 : f32 to vector<16x16xf32>
    %902 = arith.mulf %901, %899 : vector<16x16xf32>
    %903 = arith.addf %869, %902 : vector<16x16xf32>
    %c62 = arith.constant 62 : index
    %904 = memref.load %arg2[%c62] : memref<288xf32, #tpu.memory_space<smem>>
    %905 = vector.broadcast %904 : f32 to vector<16x16xf32>
    %906 = arith.mulf %905, %899 : vector<16x16xf32>
    %907 = arith.addf %873, %906 : vector<16x16xf32>
    %c98 = arith.constant 98 : index
    %908 = memref.load %arg2[%c98] : memref<288xf32, #tpu.memory_space<smem>>
    %909 = vector.broadcast %908 : f32 to vector<16x16xf32>
    %910 = arith.mulf %909, %899 : vector<16x16xf32>
    %911 = arith.addf %877, %910 : vector<16x16xf32>
    %c134 = arith.constant 134 : index
    %912 = memref.load %arg2[%c134] : memref<288xf32, #tpu.memory_space<smem>>
    %913 = vector.broadcast %912 : f32 to vector<16x16xf32>
    %914 = arith.mulf %913, %899 : vector<16x16xf32>
    %915 = arith.addf %881, %914 : vector<16x16xf32>
    %c170 = arith.constant 170 : index
    %916 = memref.load %arg2[%c170] : memref<288xf32, #tpu.memory_space<smem>>
    %917 = vector.broadcast %916 : f32 to vector<16x16xf32>
    %918 = arith.mulf %917, %899 : vector<16x16xf32>
    %919 = arith.addf %885, %918 : vector<16x16xf32>
    %c206 = arith.constant 206 : index
    %920 = memref.load %arg2[%c206] : memref<288xf32, #tpu.memory_space<smem>>
    %921 = vector.broadcast %920 : f32 to vector<16x16xf32>
    %922 = arith.mulf %921, %899 : vector<16x16xf32>
    %923 = arith.addf %889, %922 : vector<16x16xf32>
    %c242 = arith.constant 242 : index
    %924 = memref.load %arg2[%c242] : memref<288xf32, #tpu.memory_space<smem>>
    %925 = vector.broadcast %924 : f32 to vector<16x16xf32>
    %926 = arith.mulf %925, %899 : vector<16x16xf32>
    %927 = arith.addf %893, %926 : vector<16x16xf32>
    %c278 = arith.constant 278 : index
    %928 = memref.load %arg2[%c278] : memref<288xf32, #tpu.memory_space<smem>>
    %929 = vector.broadcast %928 : f32 to vector<16x16xf32>
    %930 = arith.mulf %929, %899 : vector<16x16xf32>
    %931 = arith.addf %897, %930 : vector<16x16xf32>
    %c3_99 = arith.constant 3 : index
    %c0_100 = arith.constant 0 : index
    %c0_101 = arith.constant 0 : index
    %932 = vector.load %arg7[%c3_99, %c0_100, %c0_101] : memref<4x18x18xf32, #tpu.memory_space<vmem>>, vector<1x16x16xf32>
    %933 = vector.shape_cast %932 : vector<1x16x16xf32> to vector<16x16xf32>
    %c27 = arith.constant 27 : index
    %934 = memref.load %arg2[%c27] : memref<288xf32, #tpu.memory_space<smem>>
    %935 = vector.broadcast %934 : f32 to vector<16x16xf32>
    %936 = arith.mulf %935, %933 : vector<16x16xf32>
    %937 = arith.addf %903, %936 : vector<16x16xf32>
    %c63 = arith.constant 63 : index
    %938 = memref.load %arg2[%c63] : memref<288xf32, #tpu.memory_space<smem>>
    %939 = vector.broadcast %938 : f32 to vector<16x16xf32>
    %940 = arith.mulf %939, %933 : vector<16x16xf32>
    %941 = arith.addf %907, %940 : vector<16x16xf32>
    %c99 = arith.constant 99 : index
    %942 = memref.load %arg2[%c99] : memref<288xf32, #tpu.memory_space<smem>>
    %943 = vector.broadcast %942 : f32 to vector<16x16xf32>
    %944 = arith.mulf %943, %933 : vector<16x16xf32>
    %945 = arith.addf %911, %944 : vector<16x16xf32>
    %c135 = arith.constant 135 : index
    %946 = memref.load %arg2[%c135] : memref<288xf32, #tpu.memory_space<smem>>
    %947 = vector.broadcast %946 : f32 to vector<16x16xf32>
    %948 = arith.mulf %947, %933 : vector<16x16xf32>
    %949 = arith.addf %915, %948 : vector<16x16xf32>
    %c171 = arith.constant 171 : index
    %950 = memref.load %arg2[%c171] : memref<288xf32, #tpu.memory_space<smem>>
    %951 = vector.broadcast %950 : f32 to vector<16x16xf32>
    %952 = arith.mulf %951, %933 : vector<16x16xf32>
    %953 = arith.addf %919, %952 : vector<16x16xf32>
    %c207 = arith.constant 207 : index
    %954 = memref.load %arg2[%c207] : memref<288xf32, #tpu.memory_space<smem>>
    %955 = vector.broadcast %954 : f32 to vector<16x16xf32>
    %956 = arith.mulf %955, %933 : vector<16x16xf32>
    %957 = arith.addf %923, %956 : vector<16x16xf32>
    %c243 = arith.constant 243 : index
    %958 = memref.load %arg2[%c243] : memref<288xf32, #tpu.memory_space<smem>>
    %959 = vector.broadcast %958 : f32 to vector<16x16xf32>
    %960 = arith.mulf %959, %933 : vector<16x16xf32>
    %961 = arith.addf %927, %960 : vector<16x16xf32>
    %c279 = arith.constant 279 : index
    %962 = memref.load %arg2[%c279] : memref<288xf32, #tpu.memory_space<smem>>
    %963 = vector.broadcast %962 : f32 to vector<16x16xf32>
    %964 = arith.mulf %963, %933 : vector<16x16xf32>
    %965 = arith.addf %931, %964 : vector<16x16xf32>
    %c3_102 = arith.constant 3 : index
    %c0_103 = arith.constant 0 : index
    %c1_104 = arith.constant 1 : index
    %966 = vector.load %arg7[%c3_102, %c0_103, %c1_104] : memref<4x18x18xf32, #tpu.memory_space<vmem>>, vector<1x16x16xf32>
    %967 = vector.shape_cast %966 : vector<1x16x16xf32> to vector<16x16xf32>
    %c28 = arith.constant 28 : index
    %968 = memref.load %arg2[%c28] : memref<288xf32, #tpu.memory_space<smem>>
    %969 = vector.broadcast %968 : f32 to vector<16x16xf32>
    %970 = arith.mulf %969, %967 : vector<16x16xf32>
    %971 = arith.addf %937, %970 : vector<16x16xf32>
    %c64 = arith.constant 64 : index
    %972 = memref.load %arg2[%c64] : memref<288xf32, #tpu.memory_space<smem>>
    %973 = vector.broadcast %972 : f32 to vector<16x16xf32>
    %974 = arith.mulf %973, %967 : vector<16x16xf32>
    %975 = arith.addf %941, %974 : vector<16x16xf32>
    %c100 = arith.constant 100 : index
    %976 = memref.load %arg2[%c100] : memref<288xf32, #tpu.memory_space<smem>>
    %977 = vector.broadcast %976 : f32 to vector<16x16xf32>
    %978 = arith.mulf %977, %967 : vector<16x16xf32>
    %979 = arith.addf %945, %978 : vector<16x16xf32>
    %c136 = arith.constant 136 : index
    %980 = memref.load %arg2[%c136] : memref<288xf32, #tpu.memory_space<smem>>
    %981 = vector.broadcast %980 : f32 to vector<16x16xf32>
    %982 = arith.mulf %981, %967 : vector<16x16xf32>
    %983 = arith.addf %949, %982 : vector<16x16xf32>
    %c172 = arith.constant 172 : index
    %984 = memref.load %arg2[%c172] : memref<288xf32, #tpu.memory_space<smem>>
    %985 = vector.broadcast %984 : f32 to vector<16x16xf32>
    %986 = arith.mulf %985, %967 : vector<16x16xf32>
    %987 = arith.addf %953, %986 : vector<16x16xf32>
    %c208 = arith.constant 208 : index
    %988 = memref.load %arg2[%c208] : memref<288xf32, #tpu.memory_space<smem>>
    %989 = vector.broadcast %988 : f32 to vector<16x16xf32>
    %990 = arith.mulf %989, %967 : vector<16x16xf32>
    %991 = arith.addf %957, %990 : vector<16x16xf32>
    %c244 = arith.constant 244 : index
    %992 = memref.load %arg2[%c244] : memref<288xf32, #tpu.memory_space<smem>>
    %993 = vector.broadcast %992 : f32 to vector<16x16xf32>
    %994 = arith.mulf %993, %967 : vector<16x16xf32>
    %995 = arith.addf %961, %994 : vector<16x16xf32>
    %c280 = arith.constant 280 : index
    %996 = memref.load %arg2[%c280] : memref<288xf32, #tpu.memory_space<smem>>
    %997 = vector.broadcast %996 : f32 to vector<16x16xf32>
    %998 = arith.mulf %997, %967 : vector<16x16xf32>
    %999 = arith.addf %965, %998 : vector<16x16xf32>
    %c3_105 = arith.constant 3 : index
    %c0_106 = arith.constant 0 : index
    %c2_107 = arith.constant 2 : index
    %1000 = vector.load %arg7[%c3_105, %c0_106, %c2_107] : memref<4x18x18xf32, #tpu.memory_space<vmem>>, vector<1x16x16xf32>
    %1001 = vector.shape_cast %1000 : vector<1x16x16xf32> to vector<16x16xf32>
    %c29 = arith.constant 29 : index
    %1002 = memref.load %arg2[%c29] : memref<288xf32, #tpu.memory_space<smem>>
    %1003 = vector.broadcast %1002 : f32 to vector<16x16xf32>
    %1004 = arith.mulf %1003, %1001 : vector<16x16xf32>
    %1005 = arith.addf %971, %1004 : vector<16x16xf32>
    %c65 = arith.constant 65 : index
    %1006 = memref.load %arg2[%c65] : memref<288xf32, #tpu.memory_space<smem>>
    %1007 = vector.broadcast %1006 : f32 to vector<16x16xf32>
    %1008 = arith.mulf %1007, %1001 : vector<16x16xf32>
    %1009 = arith.addf %975, %1008 : vector<16x16xf32>
    %c101 = arith.constant 101 : index
    %1010 = memref.load %arg2[%c101] : memref<288xf32, #tpu.memory_space<smem>>
    %1011 = vector.broadcast %1010 : f32 to vector<16x16xf32>
    %1012 = arith.mulf %1011, %1001 : vector<16x16xf32>
    %1013 = arith.addf %979, %1012 : vector<16x16xf32>
    %c137 = arith.constant 137 : index
    %1014 = memref.load %arg2[%c137] : memref<288xf32, #tpu.memory_space<smem>>
    %1015 = vector.broadcast %1014 : f32 to vector<16x16xf32>
    %1016 = arith.mulf %1015, %1001 : vector<16x16xf32>
    %1017 = arith.addf %983, %1016 : vector<16x16xf32>
    %c173 = arith.constant 173 : index
    %1018 = memref.load %arg2[%c173] : memref<288xf32, #tpu.memory_space<smem>>
    %1019 = vector.broadcast %1018 : f32 to vector<16x16xf32>
    %1020 = arith.mulf %1019, %1001 : vector<16x16xf32>
    %1021 = arith.addf %987, %1020 : vector<16x16xf32>
    %c209 = arith.constant 209 : index
    %1022 = memref.load %arg2[%c209] : memref<288xf32, #tpu.memory_space<smem>>
    %1023 = vector.broadcast %1022 : f32 to vector<16x16xf32>
    %1024 = arith.mulf %1023, %1001 : vector<16x16xf32>
    %1025 = arith.addf %991, %1024 : vector<16x16xf32>
    %c245 = arith.constant 245 : index
    %1026 = memref.load %arg2[%c245] : memref<288xf32, #tpu.memory_space<smem>>
    %1027 = vector.broadcast %1026 : f32 to vector<16x16xf32>
    %1028 = arith.mulf %1027, %1001 : vector<16x16xf32>
    %1029 = arith.addf %995, %1028 : vector<16x16xf32>
    %c281 = arith.constant 281 : index
    %1030 = memref.load %arg2[%c281] : memref<288xf32, #tpu.memory_space<smem>>
    %1031 = vector.broadcast %1030 : f32 to vector<16x16xf32>
    %1032 = arith.mulf %1031, %1001 : vector<16x16xf32>
    %1033 = arith.addf %999, %1032 : vector<16x16xf32>
    %c3_108 = arith.constant 3 : index
    %c1_109 = arith.constant 1 : index
    %c0_110 = arith.constant 0 : index
    %1034 = vector.load %arg7[%c3_108, %c1_109, %c0_110] : memref<4x18x18xf32, #tpu.memory_space<vmem>>, vector<1x16x16xf32>
    %1035 = vector.shape_cast %1034 : vector<1x16x16xf32> to vector<16x16xf32>
    %c30 = arith.constant 30 : index
    %1036 = memref.load %arg2[%c30] : memref<288xf32, #tpu.memory_space<smem>>
    %1037 = vector.broadcast %1036 : f32 to vector<16x16xf32>
    %1038 = arith.mulf %1037, %1035 : vector<16x16xf32>
    %1039 = arith.addf %1005, %1038 : vector<16x16xf32>
    %c66 = arith.constant 66 : index
    %1040 = memref.load %arg2[%c66] : memref<288xf32, #tpu.memory_space<smem>>
    %1041 = vector.broadcast %1040 : f32 to vector<16x16xf32>
    %1042 = arith.mulf %1041, %1035 : vector<16x16xf32>
    %1043 = arith.addf %1009, %1042 : vector<16x16xf32>
    %c102 = arith.constant 102 : index
    %1044 = memref.load %arg2[%c102] : memref<288xf32, #tpu.memory_space<smem>>
    %1045 = vector.broadcast %1044 : f32 to vector<16x16xf32>
    %1046 = arith.mulf %1045, %1035 : vector<16x16xf32>
    %1047 = arith.addf %1013, %1046 : vector<16x16xf32>
    %c138 = arith.constant 138 : index
    %1048 = memref.load %arg2[%c138] : memref<288xf32, #tpu.memory_space<smem>>
    %1049 = vector.broadcast %1048 : f32 to vector<16x16xf32>
    %1050 = arith.mulf %1049, %1035 : vector<16x16xf32>
    %1051 = arith.addf %1017, %1050 : vector<16x16xf32>
    %c174 = arith.constant 174 : index
    %1052 = memref.load %arg2[%c174] : memref<288xf32, #tpu.memory_space<smem>>
    %1053 = vector.broadcast %1052 : f32 to vector<16x16xf32>
    %1054 = arith.mulf %1053, %1035 : vector<16x16xf32>
    %1055 = arith.addf %1021, %1054 : vector<16x16xf32>
    %c210 = arith.constant 210 : index
    %1056 = memref.load %arg2[%c210] : memref<288xf32, #tpu.memory_space<smem>>
    %1057 = vector.broadcast %1056 : f32 to vector<16x16xf32>
    %1058 = arith.mulf %1057, %1035 : vector<16x16xf32>
    %1059 = arith.addf %1025, %1058 : vector<16x16xf32>
    %c246 = arith.constant 246 : index
    %1060 = memref.load %arg2[%c246] : memref<288xf32, #tpu.memory_space<smem>>
    %1061 = vector.broadcast %1060 : f32 to vector<16x16xf32>
    %1062 = arith.mulf %1061, %1035 : vector<16x16xf32>
    %1063 = arith.addf %1029, %1062 : vector<16x16xf32>
    %c282 = arith.constant 282 : index
    %1064 = memref.load %arg2[%c282] : memref<288xf32, #tpu.memory_space<smem>>
    %1065 = vector.broadcast %1064 : f32 to vector<16x16xf32>
    %1066 = arith.mulf %1065, %1035 : vector<16x16xf32>
    %1067 = arith.addf %1033, %1066 : vector<16x16xf32>
    %c3_111 = arith.constant 3 : index
    %c1_112 = arith.constant 1 : index
    %c1_113 = arith.constant 1 : index
    %1068 = vector.load %arg7[%c3_111, %c1_112, %c1_113] : memref<4x18x18xf32, #tpu.memory_space<vmem>>, vector<1x16x16xf32>
    %1069 = vector.shape_cast %1068 : vector<1x16x16xf32> to vector<16x16xf32>
    %c31 = arith.constant 31 : index
    %1070 = memref.load %arg2[%c31] : memref<288xf32, #tpu.memory_space<smem>>
    %1071 = vector.broadcast %1070 : f32 to vector<16x16xf32>
    %1072 = arith.mulf %1071, %1069 : vector<16x16xf32>
    %1073 = arith.addf %1039, %1072 : vector<16x16xf32>
    %c67 = arith.constant 67 : index
    %1074 = memref.load %arg2[%c67] : memref<288xf32, #tpu.memory_space<smem>>
    %1075 = vector.broadcast %1074 : f32 to vector<16x16xf32>
    %1076 = arith.mulf %1075, %1069 : vector<16x16xf32>
    %1077 = arith.addf %1043, %1076 : vector<16x16xf32>
    %c103 = arith.constant 103 : index
    %1078 = memref.load %arg2[%c103] : memref<288xf32, #tpu.memory_space<smem>>
    %1079 = vector.broadcast %1078 : f32 to vector<16x16xf32>
    %1080 = arith.mulf %1079, %1069 : vector<16x16xf32>
    %1081 = arith.addf %1047, %1080 : vector<16x16xf32>
    %c139 = arith.constant 139 : index
    %1082 = memref.load %arg2[%c139] : memref<288xf32, #tpu.memory_space<smem>>
    %1083 = vector.broadcast %1082 : f32 to vector<16x16xf32>
    %1084 = arith.mulf %1083, %1069 : vector<16x16xf32>
    %1085 = arith.addf %1051, %1084 : vector<16x16xf32>
    %c175 = arith.constant 175 : index
    %1086 = memref.load %arg2[%c175] : memref<288xf32, #tpu.memory_space<smem>>
    %1087 = vector.broadcast %1086 : f32 to vector<16x16xf32>
    %1088 = arith.mulf %1087, %1069 : vector<16x16xf32>
    %1089 = arith.addf %1055, %1088 : vector<16x16xf32>
    %c211 = arith.constant 211 : index
    %1090 = memref.load %arg2[%c211] : memref<288xf32, #tpu.memory_space<smem>>
    %1091 = vector.broadcast %1090 : f32 to vector<16x16xf32>
    %1092 = arith.mulf %1091, %1069 : vector<16x16xf32>
    %1093 = arith.addf %1059, %1092 : vector<16x16xf32>
    %c247 = arith.constant 247 : index
    %1094 = memref.load %arg2[%c247] : memref<288xf32, #tpu.memory_space<smem>>
    %1095 = vector.broadcast %1094 : f32 to vector<16x16xf32>
    %1096 = arith.mulf %1095, %1069 : vector<16x16xf32>
    %1097 = arith.addf %1063, %1096 : vector<16x16xf32>
    %c283 = arith.constant 283 : index
    %1098 = memref.load %arg2[%c283] : memref<288xf32, #tpu.memory_space<smem>>
    %1099 = vector.broadcast %1098 : f32 to vector<16x16xf32>
    %1100 = arith.mulf %1099, %1069 : vector<16x16xf32>
    %1101 = arith.addf %1067, %1100 : vector<16x16xf32>
    %c3_114 = arith.constant 3 : index
    %c1_115 = arith.constant 1 : index
    %c2_116 = arith.constant 2 : index
    %1102 = vector.load %arg7[%c3_114, %c1_115, %c2_116] : memref<4x18x18xf32, #tpu.memory_space<vmem>>, vector<1x16x16xf32>
    %1103 = vector.shape_cast %1102 : vector<1x16x16xf32> to vector<16x16xf32>
    %c32 = arith.constant 32 : index
    %1104 = memref.load %arg2[%c32] : memref<288xf32, #tpu.memory_space<smem>>
    %1105 = vector.broadcast %1104 : f32 to vector<16x16xf32>
    %1106 = arith.mulf %1105, %1103 : vector<16x16xf32>
    %1107 = arith.addf %1073, %1106 : vector<16x16xf32>
    %c68 = arith.constant 68 : index
    %1108 = memref.load %arg2[%c68] : memref<288xf32, #tpu.memory_space<smem>>
    %1109 = vector.broadcast %1108 : f32 to vector<16x16xf32>
    %1110 = arith.mulf %1109, %1103 : vector<16x16xf32>
    %1111 = arith.addf %1077, %1110 : vector<16x16xf32>
    %c104 = arith.constant 104 : index
    %1112 = memref.load %arg2[%c104] : memref<288xf32, #tpu.memory_space<smem>>
    %1113 = vector.broadcast %1112 : f32 to vector<16x16xf32>
    %1114 = arith.mulf %1113, %1103 : vector<16x16xf32>
    %1115 = arith.addf %1081, %1114 : vector<16x16xf32>
    %c140 = arith.constant 140 : index
    %1116 = memref.load %arg2[%c140] : memref<288xf32, #tpu.memory_space<smem>>
    %1117 = vector.broadcast %1116 : f32 to vector<16x16xf32>
    %1118 = arith.mulf %1117, %1103 : vector<16x16xf32>
    %1119 = arith.addf %1085, %1118 : vector<16x16xf32>
    %c176 = arith.constant 176 : index
    %1120 = memref.load %arg2[%c176] : memref<288xf32, #tpu.memory_space<smem>>
    %1121 = vector.broadcast %1120 : f32 to vector<16x16xf32>
    %1122 = arith.mulf %1121, %1103 : vector<16x16xf32>
    %1123 = arith.addf %1089, %1122 : vector<16x16xf32>
    %c212 = arith.constant 212 : index
    %1124 = memref.load %arg2[%c212] : memref<288xf32, #tpu.memory_space<smem>>
    %1125 = vector.broadcast %1124 : f32 to vector<16x16xf32>
    %1126 = arith.mulf %1125, %1103 : vector<16x16xf32>
    %1127 = arith.addf %1093, %1126 : vector<16x16xf32>
    %c248 = arith.constant 248 : index
    %1128 = memref.load %arg2[%c248] : memref<288xf32, #tpu.memory_space<smem>>
    %1129 = vector.broadcast %1128 : f32 to vector<16x16xf32>
    %1130 = arith.mulf %1129, %1103 : vector<16x16xf32>
    %1131 = arith.addf %1097, %1130 : vector<16x16xf32>
    %c284 = arith.constant 284 : index
    %1132 = memref.load %arg2[%c284] : memref<288xf32, #tpu.memory_space<smem>>
    %1133 = vector.broadcast %1132 : f32 to vector<16x16xf32>
    %1134 = arith.mulf %1133, %1103 : vector<16x16xf32>
    %1135 = arith.addf %1101, %1134 : vector<16x16xf32>
    %c3_117 = arith.constant 3 : index
    %c2_118 = arith.constant 2 : index
    %c0_119 = arith.constant 0 : index
    %1136 = vector.load %arg7[%c3_117, %c2_118, %c0_119] : memref<4x18x18xf32, #tpu.memory_space<vmem>>, vector<1x16x16xf32>
    %1137 = vector.shape_cast %1136 : vector<1x16x16xf32> to vector<16x16xf32>
    %c33 = arith.constant 33 : index
    %1138 = memref.load %arg2[%c33] : memref<288xf32, #tpu.memory_space<smem>>
    %1139 = vector.broadcast %1138 : f32 to vector<16x16xf32>
    %1140 = arith.mulf %1139, %1137 : vector<16x16xf32>
    %1141 = arith.addf %1107, %1140 : vector<16x16xf32>
    %c69 = arith.constant 69 : index
    %1142 = memref.load %arg2[%c69] : memref<288xf32, #tpu.memory_space<smem>>
    %1143 = vector.broadcast %1142 : f32 to vector<16x16xf32>
    %1144 = arith.mulf %1143, %1137 : vector<16x16xf32>
    %1145 = arith.addf %1111, %1144 : vector<16x16xf32>
    %c105 = arith.constant 105 : index
    %1146 = memref.load %arg2[%c105] : memref<288xf32, #tpu.memory_space<smem>>
    %1147 = vector.broadcast %1146 : f32 to vector<16x16xf32>
    %1148 = arith.mulf %1147, %1137 : vector<16x16xf32>
    %1149 = arith.addf %1115, %1148 : vector<16x16xf32>
    %c141 = arith.constant 141 : index
    %1150 = memref.load %arg2[%c141] : memref<288xf32, #tpu.memory_space<smem>>
    %1151 = vector.broadcast %1150 : f32 to vector<16x16xf32>
    %1152 = arith.mulf %1151, %1137 : vector<16x16xf32>
    %1153 = arith.addf %1119, %1152 : vector<16x16xf32>
    %c177 = arith.constant 177 : index
    %1154 = memref.load %arg2[%c177] : memref<288xf32, #tpu.memory_space<smem>>
    %1155 = vector.broadcast %1154 : f32 to vector<16x16xf32>
    %1156 = arith.mulf %1155, %1137 : vector<16x16xf32>
    %1157 = arith.addf %1123, %1156 : vector<16x16xf32>
    %c213 = arith.constant 213 : index
    %1158 = memref.load %arg2[%c213] : memref<288xf32, #tpu.memory_space<smem>>
    %1159 = vector.broadcast %1158 : f32 to vector<16x16xf32>
    %1160 = arith.mulf %1159, %1137 : vector<16x16xf32>
    %1161 = arith.addf %1127, %1160 : vector<16x16xf32>
    %c249 = arith.constant 249 : index
    %1162 = memref.load %arg2[%c249] : memref<288xf32, #tpu.memory_space<smem>>
    %1163 = vector.broadcast %1162 : f32 to vector<16x16xf32>
    %1164 = arith.mulf %1163, %1137 : vector<16x16xf32>
    %1165 = arith.addf %1131, %1164 : vector<16x16xf32>
    %c285 = arith.constant 285 : index
    %1166 = memref.load %arg2[%c285] : memref<288xf32, #tpu.memory_space<smem>>
    %1167 = vector.broadcast %1166 : f32 to vector<16x16xf32>
    %1168 = arith.mulf %1167, %1137 : vector<16x16xf32>
    %1169 = arith.addf %1135, %1168 : vector<16x16xf32>
    %c3_120 = arith.constant 3 : index
    %c2_121 = arith.constant 2 : index
    %c1_122 = arith.constant 1 : index
    %1170 = vector.load %arg7[%c3_120, %c2_121, %c1_122] : memref<4x18x18xf32, #tpu.memory_space<vmem>>, vector<1x16x16xf32>
    %1171 = vector.shape_cast %1170 : vector<1x16x16xf32> to vector<16x16xf32>
    %c34 = arith.constant 34 : index
    %1172 = memref.load %arg2[%c34] : memref<288xf32, #tpu.memory_space<smem>>
    %1173 = vector.broadcast %1172 : f32 to vector<16x16xf32>
    %1174 = arith.mulf %1173, %1171 : vector<16x16xf32>
    %1175 = arith.addf %1141, %1174 : vector<16x16xf32>
    %c70 = arith.constant 70 : index
    %1176 = memref.load %arg2[%c70] : memref<288xf32, #tpu.memory_space<smem>>
    %1177 = vector.broadcast %1176 : f32 to vector<16x16xf32>
    %1178 = arith.mulf %1177, %1171 : vector<16x16xf32>
    %1179 = arith.addf %1145, %1178 : vector<16x16xf32>
    %c106 = arith.constant 106 : index
    %1180 = memref.load %arg2[%c106] : memref<288xf32, #tpu.memory_space<smem>>
    %1181 = vector.broadcast %1180 : f32 to vector<16x16xf32>
    %1182 = arith.mulf %1181, %1171 : vector<16x16xf32>
    %1183 = arith.addf %1149, %1182 : vector<16x16xf32>
    %c142 = arith.constant 142 : index
    %1184 = memref.load %arg2[%c142] : memref<288xf32, #tpu.memory_space<smem>>
    %1185 = vector.broadcast %1184 : f32 to vector<16x16xf32>
    %1186 = arith.mulf %1185, %1171 : vector<16x16xf32>
    %1187 = arith.addf %1153, %1186 : vector<16x16xf32>
    %c178 = arith.constant 178 : index
    %1188 = memref.load %arg2[%c178] : memref<288xf32, #tpu.memory_space<smem>>
    %1189 = vector.broadcast %1188 : f32 to vector<16x16xf32>
    %1190 = arith.mulf %1189, %1171 : vector<16x16xf32>
    %1191 = arith.addf %1157, %1190 : vector<16x16xf32>
    %c214 = arith.constant 214 : index
    %1192 = memref.load %arg2[%c214] : memref<288xf32, #tpu.memory_space<smem>>
    %1193 = vector.broadcast %1192 : f32 to vector<16x16xf32>
    %1194 = arith.mulf %1193, %1171 : vector<16x16xf32>
    %1195 = arith.addf %1161, %1194 : vector<16x16xf32>
    %c250 = arith.constant 250 : index
    %1196 = memref.load %arg2[%c250] : memref<288xf32, #tpu.memory_space<smem>>
    %1197 = vector.broadcast %1196 : f32 to vector<16x16xf32>
    %1198 = arith.mulf %1197, %1171 : vector<16x16xf32>
    %1199 = arith.addf %1165, %1198 : vector<16x16xf32>
    %c286 = arith.constant 286 : index
    %1200 = memref.load %arg2[%c286] : memref<288xf32, #tpu.memory_space<smem>>
    %1201 = vector.broadcast %1200 : f32 to vector<16x16xf32>
    %1202 = arith.mulf %1201, %1171 : vector<16x16xf32>
    %1203 = arith.addf %1169, %1202 : vector<16x16xf32>
    %c3_123 = arith.constant 3 : index
    %c2_124 = arith.constant 2 : index
    %c2_125 = arith.constant 2 : index
    %1204 = vector.load %arg7[%c3_123, %c2_124, %c2_125] : memref<4x18x18xf32, #tpu.memory_space<vmem>>, vector<1x16x16xf32>
    %1205 = vector.shape_cast %1204 : vector<1x16x16xf32> to vector<16x16xf32>
    %c35 = arith.constant 35 : index
    %1206 = memref.load %arg2[%c35] : memref<288xf32, #tpu.memory_space<smem>>
    %1207 = vector.broadcast %1206 : f32 to vector<16x16xf32>
    %1208 = arith.mulf %1207, %1205 : vector<16x16xf32>
    %1209 = arith.addf %1175, %1208 : vector<16x16xf32>
    %c71 = arith.constant 71 : index
    %1210 = memref.load %arg2[%c71] : memref<288xf32, #tpu.memory_space<smem>>
    %1211 = vector.broadcast %1210 : f32 to vector<16x16xf32>
    %1212 = arith.mulf %1211, %1205 : vector<16x16xf32>
    %1213 = arith.addf %1179, %1212 : vector<16x16xf32>
    %c107 = arith.constant 107 : index
    %1214 = memref.load %arg2[%c107] : memref<288xf32, #tpu.memory_space<smem>>
    %1215 = vector.broadcast %1214 : f32 to vector<16x16xf32>
    %1216 = arith.mulf %1215, %1205 : vector<16x16xf32>
    %1217 = arith.addf %1183, %1216 : vector<16x16xf32>
    %c143 = arith.constant 143 : index
    %1218 = memref.load %arg2[%c143] : memref<288xf32, #tpu.memory_space<smem>>
    %1219 = vector.broadcast %1218 : f32 to vector<16x16xf32>
    %1220 = arith.mulf %1219, %1205 : vector<16x16xf32>
    %1221 = arith.addf %1187, %1220 : vector<16x16xf32>
    %c179 = arith.constant 179 : index
    %1222 = memref.load %arg2[%c179] : memref<288xf32, #tpu.memory_space<smem>>
    %1223 = vector.broadcast %1222 : f32 to vector<16x16xf32>
    %1224 = arith.mulf %1223, %1205 : vector<16x16xf32>
    %1225 = arith.addf %1191, %1224 : vector<16x16xf32>
    %c215 = arith.constant 215 : index
    %1226 = memref.load %arg2[%c215] : memref<288xf32, #tpu.memory_space<smem>>
    %1227 = vector.broadcast %1226 : f32 to vector<16x16xf32>
    %1228 = arith.mulf %1227, %1205 : vector<16x16xf32>
    %1229 = arith.addf %1195, %1228 : vector<16x16xf32>
    %c251 = arith.constant 251 : index
    %1230 = memref.load %arg2[%c251] : memref<288xf32, #tpu.memory_space<smem>>
    %1231 = vector.broadcast %1230 : f32 to vector<16x16xf32>
    %1232 = arith.mulf %1231, %1205 : vector<16x16xf32>
    %1233 = arith.addf %1199, %1232 : vector<16x16xf32>
    %c287 = arith.constant 287 : index
    %1234 = memref.load %arg2[%c287] : memref<288xf32, #tpu.memory_space<smem>>
    %1235 = vector.broadcast %1234 : f32 to vector<16x16xf32>
    %1236 = arith.mulf %1235, %1205 : vector<16x16xf32>
    %1237 = arith.addf %1203, %1236 : vector<16x16xf32>
    %c0_126 = arith.constant 0 : index
    %c0_127 = arith.constant 0 : index
    %1238 = vector.load %arg5[%c0_126, %c0_127] : memref<1x32xf32, #tpu.memory_space<vmem>>, vector<1x32xf32>
    %c0_128 = arith.constant 0 : index
    %1239 = memref.load %arg3[%c0_128] : memref<8xf32, #tpu.memory_space<smem>>
    %1240 = vector.broadcast %1239 : f32 to vector<16x16xf32>
    %1241 = arith.addf %1209, %1240 : vector<16x16xf32>
    %cst_129 = arith.constant 0.000000e+00 : f32
    %1242 = vector.broadcast %cst_129 : f32 to vector<16x16xf32>
    %1243 = arith.maximumf %1241, %1242 : vector<16x16xf32>
    %cst_130 = arith.constant dense<0.000000e+00> : vector<16xf32>
    %1244 = vector.multi_reduction <add>, %1243, %cst_130 [1] : vector<16x16xf32> to vector<16xf32>
    %1245 = vector.shape_cast %1244 : vector<16xf32> to vector<16x1xf32>
    %cst_131 = arith.constant dense<0.000000e+00> : vector<1xf32>
    %1246 = vector.multi_reduction <add>, %1245, %cst_131 [0] : vector<16x1xf32> to vector<1xf32>
    %1247 = vector.shape_cast %1246 : vector<1xf32> to vector<1x1xf32>
    %cst_132 = arith.constant 3.906250e-03 : f32
    %1248 = vector.broadcast %cst_132 : f32 to vector<1x1xf32>
    %1249 = arith.mulf %1247, %1248 : vector<1x1xf32>
    %c0_133 = arith.constant 0 : index
    %c0_134 = arith.constant 0 : index
    %1250 = vector.load %arg4[%c0_133, %c0_134] : memref<8x32xf32, #tpu.memory_space<vmem>>, vector<1x32xf32>
    %1251 = vector.broadcast %1249 : vector<1x1xf32> to vector<1x32xf32>
    %1252 = arith.mulf %1251, %1250 : vector<1x32xf32>
    %1253 = arith.addf %1238, %1252 : vector<1x32xf32>
    %c1_135 = arith.constant 1 : index
    %1254 = memref.load %arg3[%c1_135] : memref<8xf32, #tpu.memory_space<smem>>
    %1255 = vector.broadcast %1254 : f32 to vector<16x16xf32>
    %1256 = arith.addf %1213, %1255 : vector<16x16xf32>
    %cst_136 = arith.constant 0.000000e+00 : f32
    %1257 = vector.broadcast %cst_136 : f32 to vector<16x16xf32>
    %1258 = arith.maximumf %1256, %1257 : vector<16x16xf32>
    %cst_137 = arith.constant dense<0.000000e+00> : vector<16xf32>
    %1259 = vector.multi_reduction <add>, %1258, %cst_137 [1] : vector<16x16xf32> to vector<16xf32>
    %1260 = vector.shape_cast %1259 : vector<16xf32> to vector<16x1xf32>
    %cst_138 = arith.constant dense<0.000000e+00> : vector<1xf32>
    %1261 = vector.multi_reduction <add>, %1260, %cst_138 [0] : vector<16x1xf32> to vector<1xf32>
    %1262 = vector.shape_cast %1261 : vector<1xf32> to vector<1x1xf32>
    %cst_139 = arith.constant 3.906250e-03 : f32
    %1263 = vector.broadcast %cst_139 : f32 to vector<1x1xf32>
    %1264 = arith.mulf %1262, %1263 : vector<1x1xf32>
    %c1_140 = arith.constant 1 : index
    %c0_141 = arith.constant 0 : index
    %1265 = vector.load %arg4[%c1_140, %c0_141] : memref<8x32xf32, #tpu.memory_space<vmem>>, vector<1x32xf32>
    %1266 = vector.broadcast %1264 : vector<1x1xf32> to vector<1x32xf32>
    %1267 = arith.mulf %1266, %1265 : vector<1x32xf32>
    %1268 = arith.addf %1253, %1267 : vector<1x32xf32>
    %c2_142 = arith.constant 2 : index
    %1269 = memref.load %arg3[%c2_142] : memref<8xf32, #tpu.memory_space<smem>>
    %1270 = vector.broadcast %1269 : f32 to vector<16x16xf32>
    %1271 = arith.addf %1217, %1270 : vector<16x16xf32>
    %cst_143 = arith.constant 0.000000e+00 : f32
    %1272 = vector.broadcast %cst_143 : f32 to vector<16x16xf32>
    %1273 = arith.maximumf %1271, %1272 : vector<16x16xf32>
    %cst_144 = arith.constant dense<0.000000e+00> : vector<16xf32>
    %1274 = vector.multi_reduction <add>, %1273, %cst_144 [1] : vector<16x16xf32> to vector<16xf32>
    %1275 = vector.shape_cast %1274 : vector<16xf32> to vector<16x1xf32>
    %cst_145 = arith.constant dense<0.000000e+00> : vector<1xf32>
    %1276 = vector.multi_reduction <add>, %1275, %cst_145 [0] : vector<16x1xf32> to vector<1xf32>
    %1277 = vector.shape_cast %1276 : vector<1xf32> to vector<1x1xf32>
    %cst_146 = arith.constant 3.906250e-03 : f32
    %1278 = vector.broadcast %cst_146 : f32 to vector<1x1xf32>
    %1279 = arith.mulf %1277, %1278 : vector<1x1xf32>
    %c2_147 = arith.constant 2 : index
    %c0_148 = arith.constant 0 : index
    %1280 = vector.load %arg4[%c2_147, %c0_148] : memref<8x32xf32, #tpu.memory_space<vmem>>, vector<1x32xf32>
    %1281 = vector.broadcast %1279 : vector<1x1xf32> to vector<1x32xf32>
    %1282 = arith.mulf %1281, %1280 : vector<1x32xf32>
    %1283 = arith.addf %1268, %1282 : vector<1x32xf32>
    %c3_149 = arith.constant 3 : index
    %1284 = memref.load %arg3[%c3_149] : memref<8xf32, #tpu.memory_space<smem>>
    %1285 = vector.broadcast %1284 : f32 to vector<16x16xf32>
    %1286 = arith.addf %1221, %1285 : vector<16x16xf32>
    %cst_150 = arith.constant 0.000000e+00 : f32
    %1287 = vector.broadcast %cst_150 : f32 to vector<16x16xf32>
    %1288 = arith.maximumf %1286, %1287 : vector<16x16xf32>
    %cst_151 = arith.constant dense<0.000000e+00> : vector<16xf32>
    %1289 = vector.multi_reduction <add>, %1288, %cst_151 [1] : vector<16x16xf32> to vector<16xf32>
    %1290 = vector.shape_cast %1289 : vector<16xf32> to vector<16x1xf32>
    %cst_152 = arith.constant dense<0.000000e+00> : vector<1xf32>
    %1291 = vector.multi_reduction <add>, %1290, %cst_152 [0] : vector<16x1xf32> to vector<1xf32>
    %1292 = vector.shape_cast %1291 : vector<1xf32> to vector<1x1xf32>
    %cst_153 = arith.constant 3.906250e-03 : f32
    %1293 = vector.broadcast %cst_153 : f32 to vector<1x1xf32>
    %1294 = arith.mulf %1292, %1293 : vector<1x1xf32>
    %c3_154 = arith.constant 3 : index
    %c0_155 = arith.constant 0 : index
    %1295 = vector.load %arg4[%c3_154, %c0_155] : memref<8x32xf32, #tpu.memory_space<vmem>>, vector<1x32xf32>
    %1296 = vector.broadcast %1294 : vector<1x1xf32> to vector<1x32xf32>
    %1297 = arith.mulf %1296, %1295 : vector<1x32xf32>
    %1298 = arith.addf %1283, %1297 : vector<1x32xf32>
    %c4_156 = arith.constant 4 : index
    %1299 = memref.load %arg3[%c4_156] : memref<8xf32, #tpu.memory_space<smem>>
    %1300 = vector.broadcast %1299 : f32 to vector<16x16xf32>
    %1301 = arith.addf %1225, %1300 : vector<16x16xf32>
    %cst_157 = arith.constant 0.000000e+00 : f32
    %1302 = vector.broadcast %cst_157 : f32 to vector<16x16xf32>
    %1303 = arith.maximumf %1301, %1302 : vector<16x16xf32>
    %cst_158 = arith.constant dense<0.000000e+00> : vector<16xf32>
    %1304 = vector.multi_reduction <add>, %1303, %cst_158 [1] : vector<16x16xf32> to vector<16xf32>
    %1305 = vector.shape_cast %1304 : vector<16xf32> to vector<16x1xf32>
    %cst_159 = arith.constant dense<0.000000e+00> : vector<1xf32>
    %1306 = vector.multi_reduction <add>, %1305, %cst_159 [0] : vector<16x1xf32> to vector<1xf32>
    %1307 = vector.shape_cast %1306 : vector<1xf32> to vector<1x1xf32>
    %cst_160 = arith.constant 3.906250e-03 : f32
    %1308 = vector.broadcast %cst_160 : f32 to vector<1x1xf32>
    %1309 = arith.mulf %1307, %1308 : vector<1x1xf32>
    %c4_161 = arith.constant 4 : index
    %c0_162 = arith.constant 0 : index
    %1310 = vector.load %arg4[%c4_161, %c0_162] : memref<8x32xf32, #tpu.memory_space<vmem>>, vector<1x32xf32>
    %1311 = vector.broadcast %1309 : vector<1x1xf32> to vector<1x32xf32>
    %1312 = arith.mulf %1311, %1310 : vector<1x32xf32>
    %1313 = arith.addf %1298, %1312 : vector<1x32xf32>
    %c5_163 = arith.constant 5 : index
    %1314 = memref.load %arg3[%c5_163] : memref<8xf32, #tpu.memory_space<smem>>
    %1315 = vector.broadcast %1314 : f32 to vector<16x16xf32>
    %1316 = arith.addf %1229, %1315 : vector<16x16xf32>
    %cst_164 = arith.constant 0.000000e+00 : f32
    %1317 = vector.broadcast %cst_164 : f32 to vector<16x16xf32>
    %1318 = arith.maximumf %1316, %1317 : vector<16x16xf32>
    %cst_165 = arith.constant dense<0.000000e+00> : vector<16xf32>
    %1319 = vector.multi_reduction <add>, %1318, %cst_165 [1] : vector<16x16xf32> to vector<16xf32>
    %1320 = vector.shape_cast %1319 : vector<16xf32> to vector<16x1xf32>
    %cst_166 = arith.constant dense<0.000000e+00> : vector<1xf32>
    %1321 = vector.multi_reduction <add>, %1320, %cst_166 [0] : vector<16x1xf32> to vector<1xf32>
    %1322 = vector.shape_cast %1321 : vector<1xf32> to vector<1x1xf32>
    %cst_167 = arith.constant 3.906250e-03 : f32
    %1323 = vector.broadcast %cst_167 : f32 to vector<1x1xf32>
    %1324 = arith.mulf %1322, %1323 : vector<1x1xf32>
    %c5_168 = arith.constant 5 : index
    %c0_169 = arith.constant 0 : index
    %1325 = vector.load %arg4[%c5_168, %c0_169] : memref<8x32xf32, #tpu.memory_space<vmem>>, vector<1x32xf32>
    %1326 = vector.broadcast %1324 : vector<1x1xf32> to vector<1x32xf32>
    %1327 = arith.mulf %1326, %1325 : vector<1x32xf32>
    %1328 = arith.addf %1313, %1327 : vector<1x32xf32>
    %c6_170 = arith.constant 6 : index
    %1329 = memref.load %arg3[%c6_170] : memref<8xf32, #tpu.memory_space<smem>>
    %1330 = vector.broadcast %1329 : f32 to vector<16x16xf32>
    %1331 = arith.addf %1233, %1330 : vector<16x16xf32>
    %cst_171 = arith.constant 0.000000e+00 : f32
    %1332 = vector.broadcast %cst_171 : f32 to vector<16x16xf32>
    %1333 = arith.maximumf %1331, %1332 : vector<16x16xf32>
    %cst_172 = arith.constant dense<0.000000e+00> : vector<16xf32>
    %1334 = vector.multi_reduction <add>, %1333, %cst_172 [1] : vector<16x16xf32> to vector<16xf32>
    %1335 = vector.shape_cast %1334 : vector<16xf32> to vector<16x1xf32>
    %cst_173 = arith.constant dense<0.000000e+00> : vector<1xf32>
    %1336 = vector.multi_reduction <add>, %1335, %cst_173 [0] : vector<16x1xf32> to vector<1xf32>
    %1337 = vector.shape_cast %1336 : vector<1xf32> to vector<1x1xf32>
    %cst_174 = arith.constant 3.906250e-03 : f32
    %1338 = vector.broadcast %cst_174 : f32 to vector<1x1xf32>
    %1339 = arith.mulf %1337, %1338 : vector<1x1xf32>
    %c6_175 = arith.constant 6 : index
    %c0_176 = arith.constant 0 : index
    %1340 = vector.load %arg4[%c6_175, %c0_176] : memref<8x32xf32, #tpu.memory_space<vmem>>, vector<1x32xf32>
    %1341 = vector.broadcast %1339 : vector<1x1xf32> to vector<1x32xf32>
    %1342 = arith.mulf %1341, %1340 : vector<1x32xf32>
    %1343 = arith.addf %1328, %1342 : vector<1x32xf32>
    %c7_177 = arith.constant 7 : index
    %1344 = memref.load %arg3[%c7_177] : memref<8xf32, #tpu.memory_space<smem>>
    %1345 = vector.broadcast %1344 : f32 to vector<16x16xf32>
    %1346 = arith.addf %1237, %1345 : vector<16x16xf32>
    %cst_178 = arith.constant 0.000000e+00 : f32
    %1347 = vector.broadcast %cst_178 : f32 to vector<16x16xf32>
    %1348 = arith.maximumf %1346, %1347 : vector<16x16xf32>
    %cst_179 = arith.constant dense<0.000000e+00> : vector<16xf32>
    %1349 = vector.multi_reduction <add>, %1348, %cst_179 [1] : vector<16x16xf32> to vector<16xf32>
    %1350 = vector.shape_cast %1349 : vector<16xf32> to vector<16x1xf32>
    %cst_180 = arith.constant dense<0.000000e+00> : vector<1xf32>
    %1351 = vector.multi_reduction <add>, %1350, %cst_180 [0] : vector<16x1xf32> to vector<1xf32>
    %1352 = vector.shape_cast %1351 : vector<1xf32> to vector<1x1xf32>
    %cst_181 = arith.constant 3.906250e-03 : f32
    %1353 = vector.broadcast %cst_181 : f32 to vector<1x1xf32>
    %1354 = arith.mulf %1352, %1353 : vector<1x1xf32>
    %c7_182 = arith.constant 7 : index
    %c0_183 = arith.constant 0 : index
    %1355 = vector.load %arg4[%c7_182, %c0_183] : memref<8x32xf32, #tpu.memory_space<vmem>>, vector<1x32xf32>
    %1356 = vector.broadcast %1354 : vector<1x1xf32> to vector<1x32xf32>
    %1357 = arith.mulf %1356, %1355 : vector<1x32xf32>
    %1358 = arith.addf %1343, %1357 : vector<1x32xf32>
    %c0_184 = arith.constant 0 : index
    %c0_185 = arith.constant 0 : index
    %c0_186 = arith.constant 0 : index
    %1359 = vector.load %arg6[%c0_184, %c0_185, %c0_186] : memref<1x1x32xf32, #tpu.memory_space<vmem>>, vector<1x1x32xf32>
    %1360 = vector.shape_cast %1359 : vector<1x1x32xf32> to vector<1x32xf32>
    %1361 = vector.shape_cast %1358 : vector<1x32xf32> to vector<1x1x32xf32>
    tpu.vector_store %arg6[%c0_184, %c0_185, %c0_186], %1361 {strides = array<i32>} : memref<1x1x32xf32, #tpu.memory_space<vmem>>, vector<1x1x32xf32>,
    return
  }
  func.func @transform_0(%arg0: i32) -> (i32, i32, i32, i32) {
    %c0_i32 = arith.constant 0 : i32
    %c0_i32_0 = arith.constant 0 : i32
    %c0_i32_1 = arith.constant 0 : i32
    %c0_i32_2 = arith.constant 0 : i32
    return %arg0, %c0_i32, %c0_i32_0, %c0_i32_1 : i32, i32, i32, i32
  }
  func.func @transform_1(%arg0: i32) -> i32 {
    %c0_i32 = arith.constant 0 : i32
    %c0_i32_0 = arith.constant 0 : i32
    return %c0_i32 : i32
  }
  func.func @transform_2(%arg0: i32) -> i32 {
    %c0_i32 = arith.constant 0 : i32
    %c0_i32_0 = arith.constant 0 : i32
    return %c0_i32 : i32
  }
  func.func @transform_3(%arg0: i32) -> (i32, i32) {
    %c0_i32 = arith.constant 0 : i32
    %c0_i32_0 = arith.constant 0 : i32
    %c0_i32_1 = arith.constant 0 : i32
    return %c0_i32, %c0_i32_0 : i32, i32
  }
  func.func @transform_4(%arg0: i32) -> (i32, i32) {
    %c0_i32 = arith.constant 0 : i32
    %c0_i32_0 = arith.constant 0 : i32
    %c0_i32_1 = arith.constant 0 : i32
    return %c0_i32, %c0_i32_0 : i32, i32
  }
  func.func @transform_5(%arg0: i32) -> (i32, i32, i32) {
    %c0_i32 = arith.constant 0 : i32
    %c0_i32_0 = arith.constant 0 : i32
    %c0_i32_1 = arith.constant 0 : i32
    return %arg0, %c0_i32, %c0_i32_0 : i32, i32, i32
  }
}

</mosaic_0001>

<bundles_post_ra>
// kernel: tpu_custom_call.1
= control target key start
LH: loop header
LB: loop body
LE: loop exit
PB: predicated region body
PF: predicated region fallthrough
CT: control target
= control target key end

     0   :  { %10 = vsyncpa [#allocation4], 0  ;;  %s7380_s0 = inlined_call_operand.hbm [shape: bf16[2,4,16,16], index: 0, kind: input, shape index: {}]   ;;  %s7381_s1 = inlined_call_operand.hbm [shape: f32[288], index: 1, kind: input, shape index: {}]   ;;  %s7382_s2 = inlined_call_operand.vmem [shape: f32[8], index: 2, kind: input, shape index: {}]   ;;  %s7383_s3 = inlined_call_operand.vmem [shape: f32[8,32], index: 3, kind: input, shape index: {}]   ;;  %s7384_s4 = inlined_call_operand.vmem [shape: f32[1,32], index: 4, kind: input, shape index: {}]   ;;  %s7385_s5 = inlined_call_operand.hbm [shape: f32[2,1,32], index: 5, kind: output, shape index: {}]  }
   0x1   :  { %12 = vsyncpa [#allocation4 + $0x1], 0 }
   0x2   :  { %13 = vsyncpa [#allocation6], 0 }
   0x3   :  { %14 = vsyncpa [#allocation7], 0 }
   0x4   :  { %15 = vsyncpa [#allocation5], 0 }
   0x5   :  { %17 = vsyncpa [#allocation5 + $0x1], 0  ;;  %s4518_s18 = smov 0   ;;  %s4520_s19 = smov 0  }
   0x6   :  { %s4522_s20 = smov 0   ;;  %s4524_s21 = smov 0  }
   0x7 LB: > { %s4539_s22 = sadd.s32 4294967295, %s4476_s21   ;;  %s3920_s23 = sadd.s32 4294967294, %s4476_s21   ;;  %s4476_s21 = sphi %s4524_s21, %s7413_s21   ;;  %s4472_s20 = sphi %s4522_s20, %s7412_s20   ;;  %s4468_s19 = sphi %s4520_s19, %s7411_s19   ;;  %s4464_s18 = sphi %s4518_s18, %s7410_s18  }
   0x8   : > { %s4543_s24 = sadd.s32 1, %s4476_s21   ;;  %s30_s25 = sadd.s32 1, %s4472_s20 }
   0x9   : > { %s27_s26 = ssub.s32 %s4476_s21, %s4543_s24  ;;  %p37_p0 = scmp.ne.s32.totalorder %s4472_s20, %s4468_s19 }
   0xa   : > { %p28_p1 = scmp.eq.s32.totalorder %s27_s26, 0  ;;  %p38_p2 = scmp.eq.s32.totalorder %s4476_s21, 0 }
   0xb   : > { %p43_p3 = scmp.ne.s32.totalorder %s4468_s19, %s4464_s18  ;;  %p7386_p4 = scmp.eq.s32.totalorder %s4539_s22, 0 }
   0xc   : > { %s4555_s27 = scalar_select %p28_p1, %s4472_s20, %s30_s25  }
   0xd   : > { %p4557_p5 = por %p38_p2, %p37_p0  ;;  %p4563_p6 = por %p7386_p4, %p43_p3 }
   0xe   : > { %p151_p7 = scmp.eq.s32.totalorder %s4539_s22, 1  ;;  %p157_p8 = scmp.eq.s32.totalorder %s3920_s23, 1 }
   0xf   : > { %s7393_s29 = scalar_select %p4563_p6, 1, 0 }
  0x10   : > { %p3921_p9 = scmp.ge.s32.totalorder %s4476_s21, 1  ;;  %p164_p10 = scmp.lt.s32.totalorder %s4476_s21, 3 }
  0x11   : > { %p4570_p11 = por %p151_p7, %p37_p0  ;;  %p4574_p12 = por %p157_p8, %p43_p3 }
  0x12   : > { %p4578_p13 = pnand %p3921_p9, %p164_p10  ;;  %p4278_p4 = scmp.lt.s32.totalorder %s4476_s21, 2 }
  0x13   : > { %s7394_s30 = scalar_select %p4570_p11, 1, 0 }
  0x14   : > { %s7395_s6 = scalar_select %p4574_p12, 1, 0 }
  0x15   : > { %s7396_s7 = scalar_select %p4578_p13, 1, 0 }
  0x16   : > { %p4261_p2 = pneg %p4578_p13  ;;  %s186_s10 = sshll.u32 %s7382_s2, 4  ;;  %s187_s10 = int_to_ptr.vmem [resolvable:$true] %s186_s10 }
  0x17   : > { %p7397_p0 = scmp.eq.s32.totalorder %s4539_s22, 0  ;;  %p4597_p3 = pnand %p4278_p4, %p4557_p5 }
  0x18   : > { %s203_s13 = sand.u32 1, %s4472_s20   ;;  %s4344_s16 = scalar_lea.hbm %s7381_s1, 48 }
  0x19   : > { %p4591_p7 = pnand %p4261_p2, %p7397_p0  ;;  %p4345_p8 = scmp.ne.s32.totalorder %s7381_s1, %s4344_s16 }
  0x1a   : > { %s4349_s28 = scalar_lea.hbm %s7381_s1, 64  ;;  %p4351_p5 = scmp.lt.u32.totalorder %s4344_s16, %s7381_s1 }
  0x1b   : > { %p4346_p9 = pneg %p4591_p7  ;;  %p4350_p4 = scmp.lt.u32.totalorder %s4349_s28, %s4344_s16 }
  0x1d   : > { %p4347_p10 = pnand %p4346_p9, %p4345_p8  ;;  %p4352_p0 = por %p4351_p5, %p4350_p4 }
  0x1f   : > { %p4348_p2 = pneg %p4347_p10 }
  0x21   : > { %p4353_p1 = pnand %p4352_p0, %p4348_p2 }
  0x23   : > { %4356 = shalt.err (!%p4353_p1)
}
  0x24   : > { %s4478_s14 = smov [#allocation8]   ;;  %s4357_s23 = scalar_lea.vmem %s187_s10, 16 }
  0x25   : > { %4264 = dma.hbm_to_smem (!%p4591_p7), %s7381_s1, 48, %s4478_s14, [#allocation6]  }
  0x26   : > { %p4358_p8 = scmp.ne.s32.totalorder %s187_s10, %s4357_s23  ;;  %p4365_p11 = scmp.lt.s32.totalorder %s187_s10, %s187_s10 }
  0x27   : > { %p4366_p6 = scmp.lt.s32.totalorder %s4357_s23, %s4357_s23 }
  0x28   : > { %p4360_p10 = pnand %p4358_p8, %p4346_p9 }
  0x29   : > { %p4367_p13 = por %p4366_p6, %p4365_p11 }
  0x2a   : > { %p4361_p12 = pneg %p4360_p10 }
  0x2c   : > { %p4368_p4 = pnand %p4367_p13, %p4361_p12 }
  0x2e   : > { %4371 = shalt.err (!%p4368_p4)
}
  0x2f   : > { %s4479_s16 = smov [#allocation9]   ;;  %s3925_s25 = sshll.u32 %s203_s13, 5 }
  0x30   : > { %4267 = dma.vmem_to_smem (!%p4591_p7), %s187_s10, 16, %s4479_s16, [#allocation7]  }
  0x31   : > { %s4229_s26 = sshll.u32 %s4476_s21, 9  ;;  %s207_s14 = scalar_lea.vmem [#allocation3], %s3925_s25 }
  0x32   : > { %s4635_s9 = scalar_lea.hbm %s7380_s0, %s4229_s26  ;;  %s214_s11 = sshll.u32 %s207_s14, 4  ;;  %s4637_s11 = int_to_ptr.vmem [resolvable:$true] %s214_s11 }
  0x33   : > { %s4641_s15 = scalar_lea.sflag [#allocation4], %s203_s13  ;;  %s4372_s10 = scalar_lea.hbm %s4635_s9, 512 }
  0x34   : > { %p4373_p6 = scmp.ne.s32.totalorder %s4635_s9, %s4372_s10  ;;  %p4374_p11 = pneg %p4597_p3 }
  0x35   : > { %s4377_s16 = scalar_lea.hbm %s7380_s0, 1024  ;;  %p4378_p1 = scmp.lt.u32.totalorder %s4635_s9, %s7380_s0 }
  0x36   : > { %p4375_p12 = pnand %p4374_p11, %p4373_p6  ;;  %p4379_p7 = scmp.lt.u32.totalorder %s4377_s16, %s4372_s10 }
  0x37   : > { %p4381_p2 = scmp.lt.u32.totalorder %s4372_s10, %s4635_s9 }
  0x38   : > { %p4376_p13 = pneg %p4375_p12  ;;  %p4380_p9 = por %p4379_p7, %p4378_p1 }
  0x3a   : > { %p4382_p5 = por %p4381_p2, %p4380_p9 }
  0x3c   : > { %p4383_p0 = pnand %p4382_p5, %p4376_p13 }
  0x3e   : > { %4386 = shalt.err (!%p4383_p0)
}
  0x3f   : > { %s4387_s13 = scalar_lea.vmem %s4637_s11, 512  ;;  %s4480_s28 = smov [#allocation3]  }
  0x40   : > { %p4388_p8 = scmp.ne.s32.totalorder %s4637_s11, %s4387_s13  ;;  %s4392_s8 = sshll.u32 %s4480_s28, 4  ;;  %s4393_s8 = int_to_ptr.vmem [resolvable:$false] %s4392_s8 }
  0x41   : > { %s4394_s14 = scalar_lea.vmem %s4393_s8, 1024  ;;  %p4395_p6 = scmp.lt.s32.totalorder %s4637_s11, %s4393_s8 }
  0x42   : > { %p4390_p10 = pnand %p4388_p8, %p4374_p11  ;;  %p4396_p12 = scmp.lt.s32.totalorder %s4394_s14, %s4387_s13 }
  0x44   : > { %p4391_p4 = pneg %p4390_p10  ;;  %p4397_p1 = por %p4396_p12, %p4395_p6 }
  0x46   : > { %p4398_p7 = pnand %p4397_p1, %p4391_p4 }
  0x48   : > { %4401 = shalt.err (!%p4398_p7)
}
  0x49   : > { %s4481_s10 = smov 64   ;;  %s4482_s17 = smov 4  }
  0x4a   : > { %4271 = dma.hbm_to_vmem [thread:$0]  (!%p4597_p3), %s4635_s9, 512, %s4637_s11, %s4641_s15, %s4481_s10, %s4481_s10, %s4482_s17  }
  0x4b   : > { %p7400_p11 = scmp.ne.s32.totalorder %s7396_s7, 0 }
  0x4c   : > { %s4672_s23 = sand.u32 (!%p7400_p11), 1, %s4468_s19   ;;  %p7401_p13 = scmp.ne.s32.totalorder (!%p7400_p11), %s7393_s29, 0 }
  0x4d   : > { %226 = sbr.rel (%p7400_p11) target bundleno = 1289 (0x509), region = 40  ;;  %s3929_s16 = sshll.u32 (!%p7400_p11), %s4672_s23, 5 }
  0x4e   : > { %s229_s26 = scalar_lea.sflag (!%p7400_p11), [#allocation4], %s4672_s23  ;;  %s232_s25 = scalar_lea.vmem (!%p7400_p11), [#allocation3], %s3929_s16 }
  0x54   : > { %4447 = dma.done.wait (%p7401_p13), %s229_s26, 512  }
  0x55   : > { %4449 = vsyncadd (%p7401_p13), %s229_s26, 4294966784  ;;  %p7402_p9 = scmp.eq.s32.totalorder %s4539_s22, 0 }
  0x57   : > { %4451 = dma.done.wait (%p7402_p9), [#allocation6], 48   ;;  %p7403_p3 = pmov %p7402_p9 }
  0x59   : > { %4453 = vsyncadd (%p7403_p3), [#allocation6], 4294967248  ;;  %p7404_p2 = pmov %p7403_p3 }
  0x5b   : > { %4455 = dma.done.wait (%p7404_p2), [#allocation7], 16   ;;  %p7405_p5 = pmov %p7404_p2 }
  0x5d   : > { %4457 = vsyncadd (%p7405_p5), [#allocation7], 4294967280 }
  0x5e   : > { %245 = sfence }
  0x5f   : > { %v4231_v0 = vld [vmem:[%s232_s25] sm:$0xff]   ;;  %vm267_vm0 = vcmask 146432   ;;  %vm270_vm1 = vcmask 140288   ;;  %v4483_v3 = vmov 0.0   ;;  %v4247_v4 = vld [vmem:[%s232_s25 + $0x10] sm:$0xff]   ;;  %v4248_v5 = vld [vmem:[%s232_s25 + $0x18] sm:$0xff]  }
  0x60   : > { %v4232_v1 = vunpack.c.l.bf16 %v4231_v0  ;;  %v4233_v2 = vunpack.c.h.bf16 %v4231_v0  ;;  %268 = vst.msk [vmem:[#allocation2] sm:$0xff] %vm267_vm0, %v4483_v3  ;;  %269 = vst.msk [vmem:[#allocation2 + $0x8] sm:$0xff] %vm267_vm0, %v4483_v3  ;;  %v4246_v6 = vld [vmem:[%s232_s25 + $0x8] sm:$0xff]   ;;  %v4240_v7 = vunpack.c.l.bf16 %v4247_v4  ;;  %v4241_v8 = vunpack.c.h.bf16 %v4247_v4  ;;  %s4484_s29 = smov 1   ;;  %s3939_s7 = sld [smem:[#allocation8 + $0x1]] }
  0x61   : > { %271 = vst.msk [vmem:[#allocation2 + $0x10] sm:$0x3] %vm270_vm1, %v4483_v3  ;;  %274 = vst.msk [vmem:[#allocation2 + $0x28] sm:$0x3] %vm270_vm1, %v4483_v3  ;;  %v4244_v9 = vunpack.c.l.bf16 %v4248_v5  ;;  %v4245_v10 = vunpack.c.h.bf16 %v4248_v5  ;;  %v4236_v12 = vunpack.c.l.bf16 %v4246_v6  ;;  %v4237_v13 = vunpack.c.h.bf16 %v4246_v6  ;;  %s3940_s12 = sld [smem:[#allocation8 + $0x25]]  ;;  %s3941_s9 = sld [smem:[#allocation8 + $0x49]] }
  0x62   : > { %272 = vst.msk [vmem:[#allocation2 + $0x18] sm:$0xff] %vm267_vm0, %v4483_v3  ;;  %273 = vst.msk [vmem:[#allocation2 + $0x20] sm:$0xff] %vm267_vm0, %v4483_v3  ;;  %v4322_v11 = vpack.i.bf16 %v4233_v2, %v4232_v1  ;;  %v4332_v14 = vpack.i.bf16 %v4241_v8, %v4240_v7  ;;  %vm329_vm2 = vcmask 138248   ;;  %s3942_s11 = sld [smem:[#allocation8 + $0x6d]]  ;;  %s4485_s15 = smov 127   ;;  %vm3636_vm3 = vcmask 130048  }
  0x63   : > { %275 = vst.msk [vmem:[#allocation2 + $0x30] sm:$0xff] %vm267_vm0, %v4483_v3  ;;  %276 = vst.msk [vmem:[#allocation2 + $0x38] sm:$0xff] %vm267_vm0, %v4483_v3  ;;  %v4327_v15 = vpack.i.bf16 %v4237_v13, %v4236_v12  ;;  %v4337_v16 = vpack.i.bf16 %v4245_v10, %v4244_v9  ;;  %s3943_s13 = sld [smem:[#allocation8 + $0x91]]  ;;  %s3944_s28 = sld [smem:[#allocation8 + $0xb5]]  ;;  %vm3815_vm4 = vcmask 253952  }
  0x64   : > { %277 = vst.msk [vmem:[#allocation2 + $0x40] sm:$0x3] %vm270_vm1, %v4483_v3  ;;  %280 = vst.msk [vmem:[#allocation2 + $0x58] sm:$0x3] %vm270_vm1, %v4483_v3  ;;  %4323 = vrot.lane.b32.xlu0 %v4322_v11, %s4484_s29  ;;  %4333 = vrot.lane.b32.xlu1 %v4332_v14, %s4484_s29  ;;  %s3945_s8 = sld [smem:[#allocation8 + $0xd9]]  ;;  %s3946_s14 = sld [smem:[#allocation8 + $0xfd]] }
  0x65   : > { %278 = vst.msk [vmem:[#allocation2 + $0x48] sm:$0xff] %vm267_vm0, %v4483_v3  ;;  %279 = vst.msk [vmem:[#allocation2 + $0x50] sm:$0xff] %vm267_vm0, %v4483_v3  ;;  %s3947_s10 = sld [smem:[#allocation8 + $0x2]]  ;;  %s3948_s17 = sld [smem:[#allocation8 + $0x26]] }
  0x66   : > { %v389_v29 = vstv %s3939_s7  ;;  %s3949_s16 = sld [smem:[#allocation8 + $0x4a]]  ;;  %s3950_s26 = sld [smem:[#allocation8 + $0x6e]] }
  0x67   : > { %v403_v34 = vstv %s3940_s12  ;;  %v417_v37 = vstv %s3941_s9  ;;  %s7390_s25 = smov 126   ;;  %s3952_s7 = sld [smem:[#allocation8 + $0xb6]] }
  0x68   : > { %4328 = vrot.lane.b32.xlu0 %v4327_v15, %s4484_s29  ;;  %4338 = vrot.lane.b32.xlu1 %v4337_v16, %s4484_s29  ;;  %v431_v40 = vstv %s3942_s11  ;;  %s3951_s29 = sld [smem:[#allocation8 + $0x92]]  ;;  %s3954_s9 = sld [smem:[#allocation8 + $0xfe]] }
  0x69   : > { %v445_v43 = vstv %s3943_s13  ;;  %v459_v46 = vstv %s3944_s28  ;;  %s3953_s12 = sld [smem:[#allocation8 + $0xda]]  ;;  %s3963_s11 = sld [smem:[#allocation8 + $0x4]] }
  0x6a   : > { %v473_v49 = vstv %s3945_s8  ;;  %v487_v52 = vstv %s3946_s14  ;;  %s3964_s13 = sld [smem:[#allocation8 + $0x28]]  ;;  %s3965_s28 = sld [smem:[#allocation8 + $0x4c]] }
  0x6b   : > { %v501_v55 = vstv %s3947_s10  ;;  %v515_v58 = vstv %s3948_s17  ;;  %s3966_s8 = sld [smem:[#allocation8 + $0x70]]  ;;  %s3967_s14 = sld [smem:[#allocation8 + $0x94]] }
  0x6c   : > { %v529_v61 = vstv %s3949_s16  ;;  %v543_v0 = vstv %s3950_s26  ;;  %s3968_s10 = sld [smem:[#allocation8 + $0xb8]]  ;;  %s3969_s17 = sld [smem:[#allocation8 + $0xdc]] }
  0x6d   : > { %v571_v6 = vstv %s3952_s7  ;;  %s3970_s16 = sld [smem:[#allocation8 + $0x100]]  ;;  %s3971_s26 = sld [smem:[#allocation8 + $0x5]] }
  0x6e   : > { %v557_v3 = vstv %s3951_s29  ;;  %v599_v12 = vstv %s3954_s9  ;;  %s3972_s29 = sld [smem:[#allocation8 + $0x29]]  ;;  %s3973_s7 = sld [smem:[#allocation8 + $0x4d]] }
  0x6f   : > { %v585_v9 = vstv %s3953_s12  ;;  %s3974_s12 = sld [smem:[#allocation8 + $0x71]]  ;;  %s3975_s9 = sld [smem:[#allocation8 + $0x95]] }
  0x70   : > { %p7407_p8 = scmp.ne.s32.totalorder %s7394_s30, 0 }
  0xd6   : > { %v4324_v17 = vpop.permute.xlu0 %4323  ;;  %v4334_v20 = vpop.permute.xlu1 %4333 }
  0xd7   : > { %v4326_v18 = vunpack.i.h.bf16 %v4324_v17  ;;  %v4325_v19 = vunpack.i.l.bf16 %v4324_v17  ;;  %v4336_v21 = vunpack.i.h.bf16 %v4334_v20  ;;  %v4335_v22 = vunpack.i.l.bf16 %v4334_v20 }
  0xd8   : > { %v663_v17 = vstv %s3963_s11  ;;  %v677_v20 = vstv %s3964_s13  ;;  %s3976_s11 = sld [smem:[#allocation8 + $0xb9]]  ;;  %s3977_s13 = sld [smem:[#allocation8 + $0xdd]] }
  0xd9   : > { %330 = vst.msk [vmem:[#allocation2 + $0x1] sm:$0xff] %vm329_vm2, %v4325_v19  ;;  %331 = vst.msk [vmem:[#allocation2 + $0x9] sm:$0xff] %vm329_vm2, %v4326_v18 }
  0xda   : > { %334 = vst.msk [vmem:[#allocation2 + $0x31] sm:$0xff] %vm329_vm2, %v4335_v22  ;;  %335 = vst.msk [vmem:[#allocation2 + $0x39] sm:$0xff] %vm329_vm2, %v4336_v21  ;;  %v4329_v23 = vpop.permute.xlu0 %4328  ;;  %v4339_v24 = vpop.permute.xlu1 %4338 }
  0xdb   : > { %v4331_v25 = vunpack.i.h.bf16 %v4329_v23  ;;  %v4330_v26 = vunpack.i.l.bf16 %v4329_v23  ;;  %v4341_v27 = vunpack.i.h.bf16 %v4339_v24  ;;  %v4340_v28 = vunpack.i.l.bf16 %v4339_v24 }
  0xdc   : > { %v691_v23 = vstv %s3965_s28  ;;  %s3978_s28 = sld [smem:[#allocation8 + $0x101]] }
  0xdd   : > { %332 = vst.msk [vmem:[#allocation2 + $0x19] sm:$0xff] %vm329_vm2, %v4330_v26  ;;  %333 = vst.msk [vmem:[#allocation2 + $0x21] sm:$0xff] %vm329_vm2, %v4331_v25  ;;  %v705_v26 = vstv %s3966_s8  ;;  %s3987_s8 = sld [smem:[#allocation8 + $0x7]] }
  0xde   : > { %336 = vst.msk [vmem:[#allocation2 + $0x49] sm:$0xff] %vm329_vm2, %v4340_v28  ;;  %337 = vst.msk [vmem:[#allocation2 + $0x51] sm:$0xff] %vm329_vm2, %v4341_v27 }
  0xe0   : > { %v4696_v30 = vld [vmem:[#allocation2] sm:$0xff]  ;;  %v4698_v31 = vld [vmem:[#allocation2 + $0x8] sm:$0xff] }
  0xe1   : > { %v391_v32 = vmul.f32 %v389_v29, %v4698_v31  ;;  %v390_v33 = vmul.f32 %v389_v29, %v4696_v30  ;;  %v405_v35 = vmul.f32 %v403_v34, %v4698_v31  ;;  %v404_v36 = vmul.f32 %v403_v34, %v4696_v30  ;;  %v4762_v15 = vld [vmem:[#allocation2 + $0x1] sm:$0xff]  ;;  %v4764_v16 = vld [vmem:[#allocation2 + $0x9] sm:$0xff] }
  0xe2   : > { %v419_v38 = vmul.f32 %v417_v37, %v4698_v31  ;;  %v418_v39 = vmul.f32 %v417_v37, %v4696_v30  ;;  %v433_v41 = vmul.f32 %v431_v40, %v4698_v31  ;;  %v432_v42 = vmul.f32 %v431_v40, %v4696_v30 }
  0xe3   : > { %396 = vrot.lane.b32.xlu1 %v391_v32, %s4485_s15  ;;  %394 = vrot.lane.b32.xlu0 %v390_v33, %s4485_s15  ;;  %v447_v44 = vmul.f32 %v445_v43, %v4698_v31  ;;  %v446_v45 = vmul.f32 %v445_v43, %v4696_v30  ;;  %v461_v47 = vmul.f32 %v459_v46, %v4698_v31  ;;  %v719_v29 = vstv %s3967_s14  ;;  %s3988_s14 = sld [smem:[#allocation8 + $0x2b]] }
  0xe4   : > { %v460_v48 = vmul.f32 %v459_v46, %v4696_v30  ;;  %v475_v50 = vmul.f32 %v473_v49, %v4698_v31  ;;  %v474_v51 = vmul.f32 %v473_v49, %v4696_v30  ;;  %v489_v53 = vmul.f32 %v487_v52, %v4698_v31 }
  0xe5   : > { %v488_v54 = vmul.f32 %v487_v52, %v4696_v30  ;;  %v503_v56 = vmul.f32 %v501_v55, %v4698_v31  ;;  %v502_v57 = vmul.f32 %v501_v55, %v4696_v30  ;;  %v517_v59 = vmul.f32 %v515_v58, %v4698_v31 }
  0xe6   : > { %v516_v60 = vmul.f32 %v515_v58, %v4696_v30  ;;  %v531_v62 = vmul.f32 %v529_v61, %v4698_v31  ;;  %v530_v63 = vmul.f32 %v529_v61, %v4696_v30  ;;  %v545_v1 = vmul.f32 %v543_v0, %v4698_v31 }
  0xe7   : > { %410 = vrot.lane.b32.xlu1 %v405_v35, %s4485_s15  ;;  %408 = vrot.lane.b32.xlu0 %v404_v36, %s4485_s15  ;;  %v544_v2 = vmul.f32 %v543_v0, %v4696_v30  ;;  %v559_v4 = vmul.f32 %v557_v3, %v4698_v31  ;;  %v558_v5 = vmul.f32 %v557_v3, %v4696_v30  ;;  %v733_v34 = vstv %s3968_s10  ;;  %s3989_s10 = sld [smem:[#allocation8 + $0x4f]] }
  0xe8   : > { %v573_v7 = vmul.f32 %v571_v6, %v4698_v31  ;;  %v572_v8 = vmul.f32 %v571_v6, %v4696_v30  ;;  %v587_v10 = vmul.f32 %v585_v9, %v4698_v31  ;;  %v586_v11 = vmul.f32 %v585_v9, %v4696_v30  ;;  %v4842_v9 = vld [vmem:[#allocation2 + $0x2] sm:$0xff] }
  0xe9   : > { %v601_v13 = vmul.f32 %v599_v12, %v4698_v31  ;;  %v600_v14 = vmul.f32 %v599_v12, %v4696_v30  ;;  %v665_v18 = vmul.f32 %v663_v17, %v4764_v16  ;;  %v664_v19 = vmul.f32 %v663_v17, %v4762_v15 }
  0xea   : > { %v679_v21 = vmul.f32 %v677_v20, %v4764_v16  ;;  %v678_v22 = vmul.f32 %v677_v20, %v4762_v15  ;;  %v693_v24 = vmul.f32 %v691_v23, %v4764_v16  ;;  %v692_v25 = vmul.f32 %v691_v23, %v4762_v15 }
  0xeb   : > { %424 = vrot.lane.b32.xlu1 %v419_v38, %s4485_s15  ;;  %422 = vrot.lane.b32.xlu0 %v418_v39, %s4485_s15  ;;  %v707_v27 = vmul.f32 %v705_v26, %v4764_v16  ;;  %v706_v28 = vmul.f32 %v705_v26, %v4762_v15  ;;  %v721_v32 = vmul.f32 %v719_v29, %v4764_v16  ;;  %v747_v37 = vstv %s3969_s17  ;;  %s4854_s17 = sld [smem:[#allocation8 + $0x73]] }
  0xec   : > { %v720_v33 = vmul.f32 %v719_v29, %v4762_v15  ;;  %v735_v35 = vmul.f32 %v733_v34, %v4764_v16  ;;  %v734_v36 = vmul.f32 %v733_v34, %v4762_v15  ;;  %v749_v38 = vmul.f32 %v747_v37, %v4764_v16 }
  0xed   : > { %v748_v39 = vmul.f32 %v747_v37, %v4762_v15  ;;  %v761_v40 = vstv %s3970_s16  ;;  %v775_v43 = vstv %s3971_s26  ;;  %v789_v46 = vstv %s3972_s29  ;;  %s4864_s16 = sld [smem:[#allocation8 + $0x97]]  ;;  %s4866_s26 = sld [smem:[#allocation8]] }
  0xee   : > { %v803_v49 = vstv %s3973_s7  ;;  %v817_v52 = vstv %s3974_s12  ;;  %v831_v55 = vstv %s3975_s9  ;;  %v845_v58 = vstv %s3976_s11  ;;  %s4870_s29 = sld [smem:[#allocation8 + $0x24]]  ;;  %s4872_s7 = sld [smem:[#allocation8 + $0x48]] }
  0xef   : > { %438 = vrot.lane.b32.xlu1 %v433_v41, %s4485_s15  ;;  %436 = vrot.lane.b32.xlu0 %v432_v42, %s4485_s15  ;;  %v763_v41 = vmul.f32 %v761_v40, %v4764_v16  ;;  %v762_v42 = vmul.f32 %v761_v40, %v4762_v15  ;;  %v847_v61 = vmul.f32 %v845_v58, %v4764_v16  ;;  %v965_v23 = vstv %s3989_s10  ;;  %s4874_s12 = sld [smem:[#allocation8 + $0x6c]]  ;;  %s4876_s9 = sld [smem:[#allocation8 + $0x90]] }
  0xf0   : > { %s4884_s11 = sld [smem:[#allocation8 + $0xb4]]  ;;  %s4897_s10 = sld [smem:[#allocation8 + $0xdf]] }
  0xf3   : > { %452 = vrot.lane.b32.xlu1 %v447_v44, %s4485_s15  ;;  %450 = vrot.lane.b32.xlu0 %v446_v45, %s4485_s15  ;;  %v777_v44 = vmul.f32 %v775_v43, %v4764_v16  ;;  %v776_v45 = vmul.f32 %v775_v43, %v4762_v15 }
  0xf4   : > { %v347_v37 = vstv %s4870_s29  ;;  %s4948_s29 = sld [smem:[#allocation8 + $0x2c]] }
  0xf5   : > { %v365_v40 = vstv %s4876_s9  ;;  %s5012_s9 = sld [smem:[#allocation8 + $0x98]] }
  0xf7   : > { %466 = vrot.lane.b32.xlu1 %v461_v47, %s4485_s15  ;;  %464 = vrot.lane.b32.xlu0 %v460_v48, %s4485_s15  ;;  %v791_v47 = vmul.f32 %v789_v46, %v4764_v16  ;;  %v790_v48 = vmul.f32 %v789_v46, %v4762_v15 }
  0xfb   : > { %480 = vrot.lane.b32.xlu1 %v475_v50, %s4485_s15  ;;  %478 = vrot.lane.b32.xlu0 %v474_v51, %s4485_s15  ;;  %v805_v50 = vmul.f32 %v803_v49, %v4764_v16  ;;  %v804_v51 = vmul.f32 %v803_v49, %v4762_v15 }
  0xff   : > { %494 = vrot.lane.b32.xlu1 %v489_v53, %s4485_s15  ;;  %492 = vrot.lane.b32.xlu0 %v488_v54, %s4485_s15  ;;  %v819_v53 = vmul.f32 %v817_v52, %v4764_v16  ;;  %v818_v54 = vmul.f32 %v817_v52, %v4762_v15 }
 0x103   : > { %508 = vrot.lane.b32.xlu1 %v503_v56, %s7390_s25  ;;  %506 = vrot.lane.b32.xlu0 %v502_v57, %s7390_s25  ;;  %v833_v56 = vmul.f32 %v831_v55, %v4764_v16  ;;  %v832_v57 = vmul.f32 %v831_v55, %v4762_v15  ;;  %v349_v55 = vmul.f32 %v347_v37, %v4698_v31 }
 0x107   : > { %522 = vrot.lane.b32.xlu1 %v517_v59, %s7390_s25  ;;  %520 = vrot.lane.b32.xlu0 %v516_v60, %s7390_s25 }
 0x10b   : > { %536 = vrot.lane.b32.xlu1 %v531_v62, %s7390_s25  ;;  %534 = vrot.lane.b32.xlu0 %v530_v63, %s7390_s25  ;;  %v846_v62 = vmul.f32 %v845_v58, %v4762_v15  ;;  %v859_v63 = vstv %s3977_s13  ;;  %s4887_s13 = sld [smem:[#allocation8 + $0xbb]] }
 0x10c   : > { %v860_v3 = vmul.f32 %v859_v63, %v4762_v15 }
 0x10f   : > { %550 = vrot.lane.b32.xlu1 %v545_v1, %s7390_s25  ;;  %548 = vrot.lane.b32.xlu0 %v544_v2, %s7390_s25  ;;  %v861_v2 = vmul.f32 %v859_v63, %v4764_v16 }
 0x113   : > { %564 = vrot.lane.b32.xlu1 %v559_v4, %s7390_s25  ;;  %562 = vrot.lane.b32.xlu0 %v558_v5, %s7390_s25  ;;  %v873_v4 = vstv %s3978_s28  ;;  %s4891_s28 = sld [smem:[#allocation8 + $0xd8]] }
 0x117   : > { %578 = vrot.lane.b32.xlu1 %v573_v7, %s7390_s25  ;;  %576 = vrot.lane.b32.xlu0 %v572_v8, %s7390_s25  ;;  %v875_v7 = vmul.f32 %v873_v4, %v4764_v16  ;;  %v874_v8 = vmul.f32 %v873_v4, %v4762_v15 }
 0x119   : > { %v377_v49 = vstv %s4891_s28  ;;  %s5075_s28 = sld [smem:[#allocation8 + $0xe0]] }
 0x11b   : > { %592 = vrot.lane.b32.xlu1 %v587_v10, %s7390_s25  ;;  %590 = vrot.lane.b32.xlu0 %v586_v11, %s7390_s25  ;;  %v4844_v10 = vld [vmem:[#allocation2 + $0xa] sm:$0xff]  ;;  %v937_v11 = vstv %s3987_s8  ;;  %s4893_s8 = sld [smem:[#allocation8 + $0x3]] }
 0x11c   : > { %v938_v17 = vmul.f32 %v937_v11, %v4842_v9  ;;  %v967_v26 = vmul.f32 %v965_v23, %v4844_v10 }
 0x11f   : > { %606 = vrot.lane.b32.xlu1 %v601_v13, %s7390_s25  ;;  %604 = vrot.lane.b32.xlu0 %v600_v14, %s7390_s25  ;;  %v939_v14 = vmul.f32 %v937_v11, %v4844_v10 }
 0x123   : > { %670 = vrot.lane.b32.xlu1 %v665_v18, %s4485_s15  ;;  %668 = vrot.lane.b32.xlu0 %v664_v19, %s4485_s15  ;;  %v951_v18 = vstv %s3988_s14  ;;  %s4895_s14 = sld [smem:[#allocation8 + $0xfc]] }
 0x127   : > { %684 = vrot.lane.b32.xlu1 %v679_v21, %s4485_s15  ;;  %682 = vrot.lane.b32.xlu0 %v678_v22, %s4485_s15  ;;  %v953_v21 = vmul.f32 %v951_v18, %v4844_v10  ;;  %v952_v22 = vmul.f32 %v951_v18, %v4842_v9 }
 0x12b   : > { %698 = vrot.lane.b32.xlu1 %v693_v24, %s4485_s15  ;;  %696 = vrot.lane.b32.xlu0 %v692_v25, %s4485_s15 }
 0x12f   : > { %712 = vrot.lane.b32.xlu1 %v707_v27, %s4485_s15  ;;  %710 = vrot.lane.b32.xlu0 %v706_v28, %s4485_s15  ;;  %v966_v27 = vmul.f32 %v965_v23, %v4842_v9  ;;  %v979_v28 = vstv %s4854_s17  ;;  %s4909_s17 = sld [smem:[#allocation8 + $0x103]] }
 0x130   : > { %v980_v34 = vmul.f32 %v979_v28, %v4842_v9 }
 0x133   : > { %726 = vrot.lane.b32.xlu1 %v721_v32, %s4485_s15  ;;  %724 = vrot.lane.b32.xlu0 %v720_v33, %s4485_s15  ;;  %v981_v33 = vmul.f32 %v979_v28, %v4844_v10 }
 0x137   : > { %740 = vrot.lane.b32.xlu1 %v735_v35, %s4485_s15  ;;  %738 = vrot.lane.b32.xlu0 %v734_v36, %s4485_s15  ;;  %v993_v35 = vstv %s4864_s16  ;;  %v341_v36 = vstv %s4866_s26  ;;  %s4930_s16 = sld [smem:[#allocation8 + $0x8]]  ;;  %s4933_s26 = sld [smem:[#allocation8 + $0x4b]] }
 0x138   : > { %v995_v43 = vmul.f32 %v993_v35, %v4844_v10  ;;  %v342_v46 = vmul.f32 %v341_v36, %v4696_v30 }
 0x13b   : > { %754 = vrot.lane.b32.xlu1 %v749_v38, %s4485_s15  ;;  %752 = vrot.lane.b32.xlu0 %v748_v39, %s4485_s15  ;;  %v353_v38 = vstv %s4872_s7  ;;  %v359_v39 = vstv %s4874_s12  ;;  %s4951_s7 = sld [smem:[#allocation8 + $0x6f]]  ;;  %s4971_s12 = sld [smem:[#allocation8 + $0x93]] }
 0x13c   : > { %v354_v18 = vmul.f32 %v353_v38, %v4696_v30 }
 0x13f   : > { %768 = vrot.lane.b32.xlu1 %v763_v41, %s4485_s15  ;;  %766 = vrot.lane.b32.xlu0 %v762_v42, %s4485_s15 }
 0x143   : > { %782 = vrot.lane.b32.xlu1 %v777_v44, %s7390_s25  ;;  %780 = vrot.lane.b32.xlu0 %v776_v45, %s7390_s25  ;;  %v994_v44 = vmul.f32 %v993_v35, %v4842_v9  ;;  %v343_v45 = vmul.f32 %v341_v36, %v4698_v31 }
 0x147   : > { %796 = vrot.lane.b32.xlu1 %v791_v47, %s7390_s25  ;;  %794 = vrot.lane.b32.xlu0 %v790_v48, %s7390_s25  ;;  %v371_v47 = vstv %s4884_s11  ;;  %v1007_v48 = vstv %s4887_s13  ;;  %s4988_s13 = sld [smem:[#allocation8 + $0x74]]  ;;  %s5037_s11 = sld [smem:[#allocation8 + $0xff]] }
 0x14b   : > { %810 = vrot.lane.b32.xlu1 %v805_v50, %s7390_s25  ;;  %808 = vrot.lane.b32.xlu0 %v804_v51, %s7390_s25  ;;  %v615_v50 = vstv %s4893_s8  ;;  %s4991_s8 = sld [smem:[#allocation8 + $0xb7]] }
 0x14f   : > { %824 = vrot.lane.b32.xlu1 %v819_v53, %s7390_s25  ;;  %822 = vrot.lane.b32.xlu0 %v818_v54, %s7390_s25  ;;  %v383_v53 = vstv %s4895_s14  ;;  %v1021_v54 = vstv %s4897_s10  ;;  %s7406_s10 = smov 126   ;;  %s4002_s14 = sld [smem:[#allocation8 + $0x104]] }
 0x150   : > { %v1023_v23 = vmul.f32 %v1021_v54, %v4844_v10 }
 0x153   : > { %838 = vrot.lane.b32.xlu1 %v833_v56, %s7390_s25  ;;  %836 = vrot.lane.b32.xlu0 %v832_v57, %s7390_s25  ;;  %v348_v56 = vmul.f32 %v347_v37, %v4696_v30 }
 0x155   : > { %v4820_v59 = vpop.permute.xlu1 %396  ;;  %v4822_v60 = vpop.permute.xlu0 %394 }
 0x156   : > { %v401_v51 = vadd.f32 %v4820_v59, %v343_v45  ;;  %v400_v52 = vadd.f32 %v4822_v60, %v342_v46  ;;  %v617_v59 = vmul.f32 %v615_v50, %v4764_v16  ;;  %v1035_v60 = vstv %s4909_s17  ;;  %s5015_s17 = sld [smem:[#allocation8 + $0xdb]] }
 0x157   : > { %852 = vrot.lane.b32.xlu1 %v847_v61, %s7390_s25  ;;  %850 = vrot.lane.b32.xlu0 %v846_v62, %s7390_s25  ;;  %v1009_v61 = vmul.f32 %v1007_v48, %v4844_v10  ;;  %v1008_v62 = vmul.f32 %v1007_v48, %v4842_v9  ;;  %v1037_v48 = vmul.f32 %v1035_v60, %v4844_v10 }
 0x159   : > { %v4828_v0 = vpop.permute.xlu1 %410  ;;  %v4830_v1 = vpop.permute.xlu0 %408 }
 0x15b   : > { %866 = vrot.lane.b32.xlu1 %v861_v2, %s7390_s25  ;;  %864 = vrot.lane.b32.xlu0 %v860_v3, %s7390_s25  ;;  %v616_v3 = vmul.f32 %v615_v50, %v4762_v15  ;;  %v1036_v50 = vmul.f32 %v1035_v60, %v4842_v9 }
 0x15d   : > { %v4836_v5 = vpop.permute.xlu1 %424  ;;  %v4838_v6 = vpop.permute.xlu0 %422 }
 0x15e   : > { %v428_v36 = vadd.f32 %v4838_v6, %v354_v18 }
 0x15f   : > { %880 = vrot.lane.b32.xlu1 %v875_v7, %s7390_s25  ;;  %878 = vrot.lane.b32.xlu0 %v874_v8, %s7390_s25  ;;  %s4911_s25 = sld [smem:[#allocation8 + $0x27]]  ;;  %v415_v7 = vadd.f32 %v4828_v0, %v349_v55  ;;  %v414_v8 = vadd.f32 %v4830_v1, %v348_v56 }
 0x161   : > { %v4848_v12 = vpop.permute.xlu1 %438  ;;  %v4850_v13 = vpop.permute.xlu0 %436 }
 0x163   : > { %944 = vrot.lane.b32.xlu1 %v939_v14, %s4485_s15  ;;  %942 = vrot.lane.b32.xlu0 %v938_v17, %s4485_s15  ;;  %v355_v17 = vmul.f32 %v353_v38, %v4698_v31 }
 0x165   : > { %v4858_v19 = vpop.permute.xlu1 %452  ;;  %v4860_v20 = vpop.permute.xlu0 %450  ;;  %v621_v4 = vstv %s4911_s25  ;;  %s4968_s25 = sld [smem:[#allocation8 + $0x50]]  ;;  %v429_v35 = vadd.f32 %v4836_v5, %v355_v17 }
 0x166   : > { %v623_v28 = vmul.f32 %v621_v4, %v4764_v16  ;;  %v622_v1 = vmul.f32 %v621_v4, %v4762_v15 }
 0x167   : > { %958 = vrot.lane.b32.xlu1 %v953_v21, %s4485_s15  ;;  %956 = vrot.lane.b32.xlu0 %v952_v22, %s4485_s15 }
 0x169   : > { %v4878_v24 = vpop.permute.xlu1 %466  ;;  %v4880_v25 = vpop.permute.xlu0 %464 }
 0x16b   : > { %972 = vrot.lane.b32.xlu1 %v967_v26, %s4485_s15  ;;  %970 = vrot.lane.b32.xlu0 %v966_v27, %s4485_s15  ;;  %v1022_v26 = vmul.f32 %v1021_v54, %v4842_v9  ;;  %v1063_v54 = vstv %s4948_s29  ;;  %s4012_s29 = sld [smem:[#allocation8 + $0x2e]] }
 0x16d   : > { %v4899_v29 = vpop.permute.xlu1 %480  ;;  %v4901_v32 = vpop.permute.xlu0 %478 }
 0x16f   : > { %986 = vrot.lane.b32.xlu1 %v981_v33, %s4485_s15  ;;  %984 = vrot.lane.b32.xlu0 %v980_v34, %s4485_s15  ;;  %v1049_v33 = vstv %s4930_s16  ;;  %v627_v34 = vstv %s4933_s26  ;;  %s5053_s16 = sld [smem:[#allocation8 + $0xbc]]  ;;  %s4011_s26 = sld [smem:[#allocation8 + $0xa]] }
 0x170   : > { %v629_v6 = vmul.f32 %v627_v34, %v4764_v16 }
 0x171   : > { %v4917_v41 = vpop.permute.xlu1 %494  ;;  %v4919_v42 = vpop.permute.xlu0 %492 }
 0x173   : > { %1000 = vrot.lane.b32.xlu1 %v995_v43, %s4485_s15  ;;  %998 = vrot.lane.b32.xlu0 %v994_v44, %s4485_s15  ;;  %v361_v43 = vmul.f32 %v359_v39, %v4698_v31  ;;  %v360_v44 = vmul.f32 %v359_v39, %v4696_v30  ;;  %v633_v39 = vstv %s4951_s7  ;;  %s4013_s7 = sld [smem:[#allocation8 + $0x52]] }
 0x174   : > { %v635_v60 = vmul.f32 %v633_v39, %v4764_v16  ;;  %v634_v4 = vmul.f32 %v633_v39, %v4762_v15 }
 0x175   : > { %v509_v57 = vpop.permute.xlu1 %508  ;;  %v507_v58 = vpop.permute.xlu0 %506  ;;  %v443_v55 = vadd.f32 %v4848_v12, %v361_v43  ;;  %v442_v56 = vadd.f32 %v4850_v13, %v360_v44  ;;  %v1050_v12 = vmul.f32 %v1049_v33, %v4842_v9 }
 0x176   : > { %v513_v63 = vadd.f32 %v509_v57, %v401_v51  ;;  %v512_v2 = vadd.f32 %v507_v58, %v400_v52  ;;  %v628_v52 = vmul.f32 %v627_v34, %v4762_v15  ;;  %v1091_v34 = vstv %s4988_s13  ;;  %s4016_s13 = sld [smem:[#allocation8 + $0xbe]] }
 0x177   : > { %1014 = vrot.lane.b32.xlu1 %v1009_v61, %s4485_s15  ;;  %1012 = vrot.lane.b32.xlu0 %v1008_v62, %s4485_s15  ;;  %v367_v61 = vmul.f32 %v365_v40, %v4698_v31  ;;  %v366_v62 = vmul.f32 %v365_v40, %v4696_v30  ;;  %v639_v40 = vstv %s4971_s12  ;;  %s4015_s12 = sld [smem:[#allocation8 + $0x9a]] }
 0x178   : > { %v4955_v11 = vadd.f32 %v617_v59, %v513_v63  ;;  %v4957_v14 = vadd.f32 %v616_v3, %v512_v2  ;;  %v1051_v59 = vmul.f32 %v1049_v33, %v4844_v10  ;;  %v640_v33 = vmul.f32 %v639_v40, %v4762_v15 }
 0x179   : > { %v523_v21 = vpop.permute.xlu1 %522  ;;  %v521_v22 = vpop.permute.xlu0 %520  ;;  %v456_v17 = vadd.f32 %v4860_v20, %v366_v62  ;;  %v385_v62 = vmul.f32 %v383_v53, %v4698_v31 }
 0x17a   : > { %v527_v27 = vadd.f32 %v523_v21, %v415_v7  ;;  %v526_v0 = vadd.f32 %v521_v22, %v414_v8  ;;  %v1077_v7 = vstv %s4968_s25  ;;  %v457_v8 = vadd.f32 %v4858_v19, %v367_v61  ;;  %s4014_s25 = sld [smem:[#allocation8 + $0x76]] }
 0x17b   : > { %1028 = vrot.lane.b32.xlu1 %v1023_v23, %s4485_s15  ;;  %1026 = vrot.lane.b32.xlu0 %v1022_v26, %s4485_s15  ;;  %v373_v22 = vmul.f32 %v371_v47, %v4698_v31  ;;  %v372_v23 = vmul.f32 %v371_v47, %v4696_v30  ;;  %v1064_v19 = vmul.f32 %v1063_v54, %v4842_v9  ;;  %v645_v47 = vstv %s4991_s8  ;;  %s5152_s8 = sld [smem:[#allocation8 + $0x6]] }
 0x17c   : > { %v4975_v37 = vadd.f32 %v623_v28, %v527_v27  ;;  %v4977_v38 = vadd.f32 %v622_v1, %v526_v0  ;;  %v1065_v0 = vmul.f32 %v1063_v54, %v4844_v10  ;;  %v641_v1 = vmul.f32 %v639_v40, %v4764_v16 }
 0x17d   : > { %v537_v45 = vpop.permute.xlu1 %536  ;;  %v535_v46 = vpop.permute.xlu0 %534  ;;  %v651_v54 = vstv %s5015_s17  ;;  %s5164_s17 = sld [smem:[#allocation8 + $0x2a]] }
 0x17e   : > { %v541_v5 = vadd.f32 %v537_v45, %v429_v35  ;;  %v540_v51 = vadd.f32 %v535_v46, %v428_v36  ;;  %v471_v35 = vadd.f32 %v4878_v24, %v373_v22  ;;  %v470_v36 = vadd.f32 %v4880_v25, %v372_v23 }
 0x17f   : > { %1042 = vrot.lane.b32.xlu1 %v1037_v48, %s4485_s15  ;;  %1040 = vrot.lane.b32.xlu0 %v1036_v50, %s4485_s15  ;;  %v379_v45 = vmul.f32 %v377_v49, %v4698_v31  ;;  %v378_v46 = vmul.f32 %v377_v49, %v4696_v30  ;;  %v1078_v24 = vmul.f32 %v1077_v7, %v4842_v9  ;;  %v1105_v49 = vstv %s5012_s9  ;;  %s5160_s9 = sld [smem:[#allocation8 + $0xe2]] }
 0x180   : > { %v4995_v57 = vadd.f32 %v629_v6, %v541_v5  ;;  %v4997_v58 = vadd.f32 %v628_v52, %v540_v51  ;;  %v1079_v5 = vmul.f32 %v1077_v7, %v4844_v10  ;;  %v647_v6 = vmul.f32 %v645_v47, %v4764_v16 }
 0x181   : > { %v551_v63 = vpop.permute.xlu1 %550  ;;  %v549_v2 = vpop.permute.xlu0 %548  ;;  %v646_v52 = vmul.f32 %v645_v47, %v4762_v15  ;;  %v485_v39 = vadd.f32 %v4899_v29, %v379_v45  ;;  %v499_v31 = vadd.f32 %v4917_v41, %v385_v62  ;;  %v1106_v22 = vmul.f32 %v1105_v49, %v4842_v9 }
 0x182   : > { %v555_v13 = vadd.f32 %v551_v63, %v443_v55  ;;  %v554_v3 = vadd.f32 %v549_v2, %v442_v56  ;;  %v484_v55 = vadd.f32 %v4901_v32, %v378_v46  ;;  %v384_v63 = vmul.f32 %v383_v53, %v4696_v30 }
 0x183   : > { %1056 = vrot.lane.b32.xlu1 %v1051_v59, %s7406_s10  ;;  %1054 = vrot.lane.b32.xlu0 %v1050_v12, %s7406_s10  ;;  %v1093_v12 = vmul.f32 %v1091_v34, %v4844_v10  ;;  %v657_v30 = vstv %s5037_s11  ;;  %v1119_v23 = vstv %s5053_s16  ;;  %s5172_s11 = sld [smem:[#allocation8 + $0x106]] }
 0x184   : > { %v5019_v18 = vadd.f32 %v635_v60, %v555_v13  ;;  %v5021_v21 = vadd.f32 %v634_v4, %v554_v3  ;;  %v1092_v13 = vmul.f32 %v1091_v34, %v4842_v9  ;;  %v653_v3 = vmul.f32 %v651_v54, %v4764_v16  ;;  %s5177_s16 = sld [smem:[#allocation8 + $0x4e]] }
 0x185   : > { %v565_v26 = vpop.permute.xlu1 %564  ;;  %v563_v27 = vpop.permute.xlu0 %562  ;;  %v652_v60 = vmul.f32 %v651_v54, %v4762_v15  ;;  %v498_v53 = vadd.f32 %v4919_v42, %v384_v63  ;;  %v658_v41 = vmul.f32 %v657_v30, %v4762_v15  ;;  %v1133_v34 = vstv %s5075_s28  ;;  %s5186_s28 = sld [smem:[#allocation8 + $0xb]] }
 0x186   : > { %v569_v20 = vadd.f32 %v565_v26, %v457_v8  ;;  %v568_v28 = vadd.f32 %v563_v27, %v456_v17  ;;  %v1107_v17 = vmul.f32 %v1105_v49, %v4844_v10  ;;  %v1135_v47 = vmul.f32 %v1133_v34, %v4844_v10 }
 0x187   : > { %1070 = vrot.lane.b32.xlu1 %v1065_v0, %s7406_s10  ;;  %1068 = vrot.lane.b32.xlu0 %v1064_v19, %s7406_s10  ;;  %v659_v0 = vmul.f32 %v657_v30, %v4764_v16  ;;  %v1226_v54 = vstv %s4012_s29  ;;  %s5213_s29 = sld [smem:[#allocation8 + $0x96]] }
 0x188   : > { %v5041_v43 = vadd.f32 %v641_v1, %v569_v20  ;;  %v5043_v44 = vadd.f32 %v640_v33, %v568_v28  ;;  %v1121_v1 = vmul.f32 %v1119_v23, %v4844_v10  ;;  %v1120_v33 = vmul.f32 %v1119_v23, %v4842_v9 }
 0x189   : > { %v579_v48 = vpop.permute.xlu1 %578  ;;  %v577_v50 = vpop.permute.xlu0 %576  ;;  %v1282_v23 = vstv %s4016_s13  ;;  %s5253_s13 = sld [smem:[#allocation8 + $0xde]] }
 0x18a   : > { %v583_v25 = vadd.f32 %v579_v48, %v471_v35  ;;  %v582_v51 = vadd.f32 %v577_v50, %v470_v36  ;;  %v1134_v35 = vmul.f32 %v1133_v34, %v4842_v9  ;;  %v1147_v36 = vstv %s4002_s14  ;;  %s5193_s14 = sld [smem:[#allocation8 + $0x72]] }
 0x18b   : > { %1084 = vrot.lane.b32.xlu1 %v1079_v5, %s7406_s10  ;;  %1082 = vrot.lane.b32.xlu0 %v1078_v24, %s7406_s10  ;;  %v1149_v48 = vmul.f32 %v1147_v36, %v4844_v10  ;;  %v1148_v50 = vmul.f32 %v1147_v36, %v4842_v9  ;;  %v5122_v5 = vld [vmem:[#allocation2 + $0x18] sm:$0xff]  ;;  %v5124_v24 = vld [vmem:[#allocation2 + $0x20] sm:$0xff] }
 0x18c   : > { %v5063_v56 = vadd.f32 %v647_v6, %v583_v25  ;;  %v5065_v61 = vadd.f32 %v646_v52, %v582_v51  ;;  %v1212_v25 = vstv %s4011_s26  ;;  %v1228_v62 = vmul.f32 %v1226_v54, %v5124_v24  ;;  %s5206_s26 = sld [smem:[#allocation8 + $0x2f]] }
 0x18d   : > { %v593_v2 = vpop.permute.xlu1 %592  ;;  %v591_v59 = vpop.permute.xlu0 %590  ;;  %v1214_v52 = vmul.f32 %v1212_v25, %v5124_v24  ;;  %v1213_v49 = vmul.f32 %v1212_v25, %v5122_v5  ;;  %v1227_v63 = vmul.f32 %v1226_v54, %v5122_v5  ;;  %v1283_v34 = vmul.f32 %v1282_v23, %v5122_v5 }
 0x18e   : > { %v597_v29 = vadd.f32 %v593_v2, %v485_v39  ;;  %v596_v32 = vadd.f32 %v591_v59, %v484_v55  ;;  %v1240_v2 = vstv %s4013_s7  ;;  %s5226_s7 = sld [smem:[#allocation8 + $0x53]] }
 0x18f   : > { %1098 = vrot.lane.b32.xlu1 %v1093_v12, %s7406_s10  ;;  %1096 = vrot.lane.b32.xlu0 %v1092_v13, %s7406_s10  ;;  %v1242_v13 = vmul.f32 %v1240_v2, %v5124_v24 }
 0x190   : > { %v5084_v4 = vadd.f32 %v653_v3, %v597_v29  ;;  %v5086_v7 = vadd.f32 %v652_v60, %v596_v32  ;;  %v1241_v29 = vmul.f32 %v1240_v2, %v5122_v5  ;;  %v1254_v32 = vstv %s4014_s25  ;;  %s5233_s25 = sld [smem:[#allocation8 + $0xba]] }
 0x191   : > { %v607_v40 = vpop.permute.xlu1 %606  ;;  %v605_v8 = vpop.permute.xlu0 %604  ;;  %v1256_v30 = vmul.f32 %v1254_v32, %v5124_v24 }
 0x192   : > { %v611_v26 = vadd.f32 %v607_v40, %v499_v31  ;;  %v610_v27 = vadd.f32 %v605_v8, %v498_v53  ;;  %v1255_v31 = vmul.f32 %v1254_v32, %v5122_v5  ;;  %v1268_v53 = vstv %s4015_s12  ;;  %s5246_s12 = sld [smem:[#allocation8 + $0x77]] }
 0x193   : > { %1112 = vrot.lane.b32.xlu1 %v1107_v17, %s7406_s10  ;;  %1110 = vrot.lane.b32.xlu0 %v1106_v22, %s7406_s10  ;;  %v1270_v17 = vmul.f32 %v1268_v53, %v5124_v24  ;;  %v1269_v22 = vmul.f32 %v1268_v53, %v5122_v5 }
 0x194   : > { %v5095_v42 = vadd.f32 %v659_v0, %v611_v26  ;;  %v5097_v19 = vadd.f32 %v658_v41, %v610_v27  ;;  %v889_v26 = vstv %s5152_s8  ;;  %s5266_s8 = sld [smem:[#allocation8 + $0x9b]] }
 0x195   : > { %v5099_v20 = vpop.permute.xlu1 %670  ;;  %v5101_v28 = vpop.permute.xlu0 %668 }
 0x196   : > { %v675_v27 = vadd.f32 %v5099_v20, %v4955_v11  ;;  %v674_v0 = vadd.f32 %v5101_v28, %v4957_v14  ;;  %v895_v11 = vstv %s5164_s17  ;;  %s5286_s17 = sld [smem:[#allocation8 + $0xbf]] }
 0x197   : > { %1126 = vrot.lane.b32.xlu1 %v1121_v1, %s7406_s10  ;;  %1124 = vrot.lane.b32.xlu0 %v1120_v33, %s7406_s10  ;;  %v1284_v33 = vmul.f32 %v1282_v23, %v5124_v24  ;;  %v1324_v23 = vstv %s5186_s28  ;;  %s4035_s28 = sld [smem:[#allocation8 + $0xd]] }
 0x199   : > { %v5108_v15 = vpop.permute.xlu1 %684  ;;  %v5110_v16 = vpop.permute.xlu0 %682 }
 0x19a   : > { %v689_v14 = vadd.f32 %v5108_v15, %v4975_v37  ;;  %v688_v20 = vadd.f32 %v5110_v16, %v4977_v38  ;;  %v897_v15 = vmul.f32 %v895_v11, %v4844_v10  ;;  %v896_v38 = vmul.f32 %v895_v11, %v4842_v9 }
 0x19b   : > { %1140 = vrot.lane.b32.xlu1 %v1135_v47, %s7406_s10  ;;  %1138 = vrot.lane.b32.xlu0 %v1134_v35, %s7406_s10  ;;  %v1296_v47 = vstv %s5160_s9  ;;  %v901_v16 = vstv %s5177_s16  ;;  %s5273_s9 = sld [smem:[#allocation8 + $0x102]]  ;;  %s4026_s16 = sld [smem:[#allocation8 + $0x107]] }
 0x19c   : > { %v1298_v54 = vmul.f32 %v1296_v47, %v5124_v24 }
 0x19d   : > { %v5116_v45 = vpop.permute.xlu1 %698  ;;  %v5118_v46 = vpop.permute.xlu0 %696 }
 0x19f   : > { %1154 = vrot.lane.b32.xlu1 %v1149_v48, %s7406_s10  ;;  %1152 = vrot.lane.b32.xlu0 %v1148_v50, %s7406_s10  ;;  %v891_v48 = vmul.f32 %v889_v26, %v4844_v10  ;;  %v890_v50 = vmul.f32 %v889_v26, %v4842_v9 }
 0x1a1   : > { %v5128_v51 = vpop.permute.xlu1 %712  ;;  %v5130_v6 = vpop.permute.xlu0 %710 }
 0x1a3   : > { %1219 = vrot.lane.b32.xlu1 %v1214_v52, %s4485_s15  ;;  %1217 = vrot.lane.b32.xlu0 %v1213_v49, %s4485_s15 }
 0x1a5   : > { %v5136_v39 = vpop.permute.xlu1 %726  ;;  %v5138_v55 = vpop.permute.xlu0 %724 }
 0x1a6   : > { %v730_v11 = vadd.f32 %v5138_v55, %v5043_v44  ;;  %v919_v55 = vstv %s5233_s25  ;;  %s4040_s25 = sld [smem:[#allocation8 + $0xc1]] }
 0x1a7   : > { %1233 = vrot.lane.b32.xlu1 %v1228_v62, %s4485_s15  ;;  %1231 = vrot.lane.b32.xlu0 %v1227_v63, %s4485_s15  ;;  %v1297_v62 = vmul.f32 %v1296_v47, %v5122_v5  ;;  %v1310_v63 = vstv %s5172_s11  ;;  %v1326_v47 = vmul.f32 %v1324_v23, %v5124_v24  ;;  %s5304_s11 = sld [smem:[#allocation8 + $0xe3]] }
 0x1a9   : > { %v5144_v59 = vpop.permute.xlu1 %740  ;;  %v5146_v12 = vpop.permute.xlu0 %738 }
 0x1ab   : > { %1247 = vrot.lane.b32.xlu1 %v1242_v13, %s4485_s15  ;;  %1245 = vrot.lane.b32.xlu0 %v1241_v29, %s4485_s15  ;;  %v703_v13 = vadd.f32 %v5116_v45, %v4995_v57  ;;  %v702_v29 = vadd.f32 %v5118_v46, %v4997_v58  ;;  %v903_v45 = vmul.f32 %v901_v16, %v4844_v10  ;;  %v907_v46 = vstv %s5193_s14  ;;  %s4036_s14 = sld [smem:[#allocation8 + $0x31]] }
 0x1ac   : > { %v902_v58 = vmul.f32 %v901_v16, %v4842_v9 }
 0x1ad   : > { %v5154_v3 = vpop.permute.xlu1 %754  ;;  %v5156_v60 = vpop.permute.xlu0 %752 }
 0x1af   : > { %1261 = vrot.lane.b32.xlu1 %v1256_v30, %s4485_s15  ;;  %1259 = vrot.lane.b32.xlu0 %v1255_v31, %s4485_s15 }
 0x1b1   : > { %v5166_v40 = vpop.permute.xlu1 %768  ;;  %v5168_v8 = vpop.permute.xlu0 %766 }
 0x1b3   : > { %1275 = vrot.lane.b32.xlu1 %v1270_v17, %s4485_s15  ;;  %1273 = vrot.lane.b32.xlu0 %v1269_v22, %s4485_s15  ;;  %v1312_v17 = vmul.f32 %v1310_v63, %v5124_v24  ;;  %v1311_v22 = vmul.f32 %v1310_v63, %v5122_v5  ;;  %v1352_v63 = vstv %s5226_s7  ;;  %s4039_s7 = sld [smem:[#allocation8 + $0x9d]] }
 0x1b5   : > { %v783_v41 = vpop.permute.xlu1 %782  ;;  %v781_v1 = vpop.permute.xlu0 %780 }
 0x1b6   : > { %v787_v35 = vadd.f32 %v783_v41, %v675_v27  ;;  %v786_v36 = vadd.f32 %v781_v1, %v674_v0  ;;  %v717_v27 = vadd.f32 %v5128_v51, %v5019_v18  ;;  %v716_v0 = vadd.f32 %v5130_v6, %v5021_v21 }
 0x1b7   : > { %1289 = vrot.lane.b32.xlu1 %v1284_v33, %s4485_s15  ;;  %1287 = vrot.lane.b32.xlu0 %v1283_v34, %s4485_s15  ;;  %v909_v51 = vmul.f32 %v907_v46, %v4844_v10  ;;  %v908_v21 = vmul.f32 %v907_v46, %v4842_v9  ;;  %v913_v6 = vstv %s5213_s29  ;;  %s4038_s29 = sld [smem:[#allocation8 + $0x79]] }
 0x1b8   : > { %v5199_v28 = vadd.f32 %v891_v48, %v787_v35  ;;  %v5201_v25 = vadd.f32 %v890_v50, %v786_v36  ;;  %v1325_v35 = vmul.f32 %v1324_v23, %v5122_v5  ;;  %v1338_v36 = vstv %s5206_s26  ;;  %s4037_s26 = sld [smem:[#allocation8 + $0x55]] }
 0x1b9   : > { %v797_v52 = vpop.permute.xlu1 %796  ;;  %v795_v49 = vpop.permute.xlu0 %794  ;;  %v731_v50 = vadd.f32 %v5136_v39, %v5041_v43  ;;  %v915_v39 = vmul.f32 %v913_v6, %v4844_v10  ;;  %v914_v44 = vmul.f32 %v913_v6, %v4842_v9  ;;  %v759_v23 = vadd.f32 %v5154_v3, %v5084_v4 }
 0x1ba   : > { %v801_v2 = vadd.f32 %v797_v52, %v689_v14  ;;  %v800_v37 = vadd.f32 %v795_v49, %v688_v20  ;;  %v931_v3 = vstv %s5273_s9  ;;  %s5403_s9 = sld [smem:[#allocation8 + $0x109]] }
 0x1bb   : > { %1303 = vrot.lane.b32.xlu1 %v1298_v54, %s4485_s15  ;;  %1301 = vrot.lane.b32.xlu0 %v1297_v62, %s4485_s15  ;;  %v1340_v54 = vmul.f32 %v1338_v36, %v5124_v24  ;;  %v1339_v62 = vmul.f32 %v1338_v36, %v5122_v5 }
 0x1bc   : > { %v5219_v32 = vadd.f32 %v897_v15, %v801_v2  ;;  %v5221_v30 = vadd.f32 %v896_v38, %v800_v37  ;;  %v745_v37 = vadd.f32 %v5144_v59, %v5063_v56  ;;  %v744_v15 = vadd.f32 %v5146_v12, %v5065_v61 }
 0x1bd   : > { %v811_v31 = vpop.permute.xlu1 %810  ;;  %v809_v53 = vpop.permute.xlu0 %808  ;;  %v921_v59 = vmul.f32 %v919_v55, %v4844_v10  ;;  %v920_v61 = vmul.f32 %v919_v55, %v4842_v9  ;;  %v925_v12 = vstv %s5253_s13  ;;  %s5391_s13 = sld [smem:[#allocation8 + $0xe5]] }
 0x1be   : > { %v815_v26 = vadd.f32 %v811_v31, %v703_v13  ;;  %v814_v57 = vadd.f32 %v809_v53, %v702_v29  ;;  %v1354_v31 = vmul.f32 %v1352_v63, %v5124_v24  ;;  %v1353_v53 = vmul.f32 %v1352_v63, %v5122_v5 }
 0x1bf   : > { %1317 = vrot.lane.b32.xlu1 %v1312_v17, %s4485_s15  ;;  %1315 = vrot.lane.b32.xlu0 %v1311_v22, %s4485_s15  ;;  %v1366_v17 = vstv %s5246_s12  ;;  %v927_v4 = vmul.f32 %v925_v12, %v4844_v10  ;;  %s5383_s12 = sld [smem:[#allocation8 + $0x9]] }
 0x1c0   : > { %v5239_v41 = vadd.f32 %v903_v45, %v815_v26  ;;  %v5241_v1 = vadd.f32 %v902_v58, %v814_v57  ;;  %v758_v26 = vadd.f32 %v5156_v60, %v5086_v7  ;;  %v926_v7 = vmul.f32 %v925_v12, %v4842_v9 }
 0x1c1   : > { %v825_v33 = vpop.permute.xlu1 %824  ;;  %v823_v34 = vpop.permute.xlu0 %822  ;;  %v773_v60 = vadd.f32 %v5166_v40, %v5095_v42  ;;  %v933_v42 = vmul.f32 %v931_v3, %v4844_v10  ;;  %v932_v40 = vmul.f32 %v931_v3, %v4842_v9 }
 0x1c2   : > { %v829_v48 = vadd.f32 %v825_v33, %v717_v27  ;;  %v828_v18 = vadd.f32 %v823_v34, %v716_v0  ;;  %v1368_v27 = vmul.f32 %v1366_v17, %v5124_v24  ;;  %v1367_v0 = vmul.f32 %v1366_v17, %v5122_v5 }
 0x1c3   : > { %1331 = vrot.lane.b32.xlu1 %v1326_v47, %s7406_s10  ;;  %1329 = vrot.lane.b32.xlu0 %v1325_v35, %s7406_s10  ;;  %v1380_v33 = vstv %s5266_s8  ;;  %v772_v35 = vadd.f32 %v5168_v8, %v5097_v19  ;;  %s5395_s8 = sld [smem:[#allocation8 + $0x2d]] }
 0x1c4   : > { %v5259_v14 = vadd.f32 %v909_v51, %v829_v48  ;;  %v5261_v20 = vadd.f32 %v908_v21, %v828_v18  ;;  %v1382_v21 = vmul.f32 %v1380_v33, %v5124_v24  ;;  %v1381_v6 = vmul.f32 %v1380_v33, %v5122_v5 }
 0x1c5   : > { %v839_v52 = vpop.permute.xlu1 %838  ;;  %v837_v49 = vpop.permute.xlu0 %836 }
 0x1c6   : > { %v843_v2 = vadd.f32 %v839_v52, %v731_v50  ;;  %v842_v43 = vadd.f32 %v837_v49, %v730_v11  ;;  %v1394_v50 = vstv %s5286_s17  ;;  %s5408_s17 = sld [smem:[#allocation8 + $0x51]] }
 0x1c7   : > { %1345 = vrot.lane.b32.xlu1 %v1340_v54, %s7406_s10  ;;  %1343 = vrot.lane.b32.xlu0 %v1339_v62, %s7406_s10  ;;  %v1396_v62 = vmul.f32 %v1394_v50, %v5124_v24  ;;  %v1395_v63 = vmul.f32 %v1394_v50, %v5122_v5  ;;  %v1556_v50 = vstv %s4040_s25  ;;  %s5484_s25 = sld [smem:[#allocation8 + $0xe1]] }
 0x1c8   : > { %v5279_v38 = vadd.f32 %v915_v39, %v843_v2  ;;  %v5281_v16 = vadd.f32 %v914_v44, %v842_v43  ;;  %v1408_v2 = vstv %s5304_s11  ;;  %v1422_v44 = vstv %s4026_s16  ;;  %s5417_s11 = sld [smem:[#allocation8 + $0xe]]  ;;  %s5424_s16 = sld [smem:[#allocation8 + $0x75]] }
 0x1c9   : > { %v853_v13 = vpop.permute.xlu1 %852  ;;  %v851_v29 = vpop.permute.xlu0 %850  ;;  %v1410_v43 = vmul.f32 %v1408_v2, %v5124_v24  ;;  %v1409_v39 = vmul.f32 %v1408_v2, %v5122_v5 }
 0x1ca   : > { %v857_v22 = vadd.f32 %v853_v13, %v745_v37  ;;  %v856_v56 = vadd.f32 %v851_v29, %v744_v15  ;;  %v1424_v15 = vmul.f32 %v1422_v44, %v5124_v24  ;;  %v1423_v13 = vmul.f32 %v1422_v44, %v5122_v5  ;;  %v5353_v29 = vld [vmem:[#allocation2 + $0x19] sm:$0xff] }
 0x1cb   : > { %1359 = vrot.lane.b32.xlu1 %v1354_v31, %s7406_s10  ;;  %1357 = vrot.lane.b32.xlu0 %v1353_v53, %s7406_s10  ;;  %v5355_v31 = vld [vmem:[#allocation2 + $0x21] sm:$0xff]  ;;  %v1486_v53 = vstv %s4035_s28  ;;  %v1557_v2 = vmul.f32 %v1556_v50, %v5353_v29  ;;  %s5437_s28 = sld [smem:[#allocation8 + $0x32]] }
 0x1cc   : > { %v5297_v57 = vadd.f32 %v921_v59, %v857_v22  ;;  %v5299_v45 = vadd.f32 %v920_v61, %v856_v56  ;;  %v1488_v56 = vmul.f32 %v1486_v53, %v5355_v31  ;;  %v1487_v59 = vmul.f32 %v1486_v53, %v5353_v29 }
 0x1cd   : > { %v867_v58 = vpop.permute.xlu1 %866  ;;  %v865_v46 = vpop.permute.xlu0 %864  ;;  %v1500_v61 = vstv %s4036_s14  ;;  %s5444_s14 = sld [smem:[#allocation8 + $0x99]] }
 0x1ce   : > { %v871_v34 = vadd.f32 %v867_v58, %v759_v23  ;;  %v870_v47 = vadd.f32 %v865_v46, %v758_v26  ;;  %v1502_v26 = vmul.f32 %v1500_v61, %v5355_v31  ;;  %v1501_v58 = vmul.f32 %v1500_v61, %v5353_v29 }
 0x1cf   : > { %1373 = vrot.lane.b32.xlu1 %v1368_v27, %s7406_s10  ;;  %1371 = vrot.lane.b32.xlu0 %v1367_v0, %s7406_s10  ;;  %v1514_v46 = vstv %s4037_s26  ;;  %s5457_s26 = sld [smem:[#allocation8 + $0x56]] }
 0x1d0   : > { %v5315_v36 = vadd.f32 %v927_v4, %v871_v34  ;;  %v5317_v48 = vadd.f32 %v926_v7, %v870_v47  ;;  %v1516_v33 = vmul.f32 %v1514_v46, %v5355_v31  ;;  %v1515_v34 = vmul.f32 %v1514_v46, %v5353_v29 }
 0x1d1   : > { %v881_v18 = vpop.permute.xlu1 %880  ;;  %v879_v51 = vpop.permute.xlu0 %878  ;;  %v1528_v47 = vstv %s4038_s29  ;;  %s5464_s29 = sld [smem:[#allocation8 + $0xbd]] }
 0x1d2   : > { %v885_v11 = vadd.f32 %v881_v18, %v773_v60  ;;  %v884_v52 = vadd.f32 %v879_v51, %v772_v35  ;;  %v1530_v3 = vmul.f32 %v1528_v47, %v5355_v31  ;;  %v1529_v60 = vmul.f32 %v1528_v47, %v5353_v29 }
 0x1d3   : > { %1387 = vrot.lane.b32.xlu1 %v1382_v21, %s7406_s10  ;;  %1385 = vrot.lane.b32.xlu0 %v1381_v6, %s7406_s10  ;;  %v1542_v35 = vstv %s4039_s7  ;;  %s5477_s7 = sld [smem:[#allocation8 + $0x7a]] }
 0x1d4   : > { %v5326_v19 = vadd.f32 %v933_v42, %v885_v11  ;;  %v5328_v8 = vadd.f32 %v932_v40, %v884_v52  ;;  %v1544_v21 = vmul.f32 %v1542_v35, %v5355_v31  ;;  %v1543_v6 = vmul.f32 %v1542_v35, %v5353_v29 }
 0x1d5   : > { %v5330_v49 = vpop.permute.xlu1 %944  ;;  %v5332_v54 = vpop.permute.xlu0 %942  ;;  %v1164_v11 = vstv %s5383_s12  ;;  %s5497_s12 = sld [smem:[#allocation8 + $0x9e]] }
 0x1d6   : > { %v949_v52 = vadd.f32 %v5330_v49, %v5199_v28  ;;  %v948_v42 = vadd.f32 %v5332_v54, %v5201_v25  ;;  %v1170_v28 = vstv %s5395_s8  ;;  %s5517_s8 = sld [smem:[#allocation8 + $0xc2]] }
 0x1d7   : > { %1401 = vrot.lane.b32.xlu1 %v1396_v62, %s7406_s10  ;;  %1399 = vrot.lane.b32.xlu0 %v1395_v63, %s7406_s10  ;;  %v1558_v63 = vmul.f32 %v1556_v50, %v5355_v31  ;;  %v1598_v50 = vstv %s5417_s11  ;;  %s4059_s11 = sld [smem:[#allocation8 + $0x10]] }
 0x1d9   : > { %v5339_v9 = vpop.permute.xlu1 %958  ;;  %v5341_v10 = vpop.permute.xlu0 %956 }
 0x1da   : > { %v963_v25 = vadd.f32 %v5339_v9, %v5219_v32  ;;  %v962_v49 = vadd.f32 %v5341_v10, %v5221_v30  ;;  %v1172_v9 = vmul.f32 %v1170_v28, %v5124_v24  ;;  %v1171_v30 = vmul.f32 %v1170_v28, %v5122_v5 }
 0x1db   : > { %1415 = vrot.lane.b32.xlu1 %v1410_v43, %s7406_s10  ;;  %1413 = vrot.lane.b32.xlu0 %v1409_v39, %s7406_s10  ;;  %v1570_v43 = vstv %s5391_s13  ;;  %v1176_v10 = vstv %s5408_s17  ;;  %s5504_s13 = sld [smem:[#allocation8 + $0x105]]  ;;  %s4050_s17 = sld [smem:[#allocation8 + $0x10a]] }
 0x1dc   : > { %v1572_v61 = vmul.f32 %v1570_v43, %v5355_v31 }
 0x1dd   : > { %v5347_v55 = vpop.permute.xlu1 %972  ;;  %v5349_v37 = vpop.permute.xlu0 %970 }
 0x1df   : > { %1429 = vrot.lane.b32.xlu1 %v1424_v15, %s7406_s10  ;;  %1427 = vrot.lane.b32.xlu0 %v1423_v13, %s7406_s10  ;;  %v1166_v15 = vmul.f32 %v1164_v11, %v5124_v24  ;;  %v1165_v13 = vmul.f32 %v1164_v11, %v5122_v5 }
 0x1e1   : > { %v5359_v17 = vpop.permute.xlu1 %986  ;;  %v5361_v22 = vpop.permute.xlu0 %984 }
 0x1e3   : > { %1493 = vrot.lane.b32.xlu1 %v1488_v56, %s4485_s15  ;;  %1491 = vrot.lane.b32.xlu0 %v1487_v59, %s4485_s15 }
 0x1e5   : > { %v5367_v12 = vpop.permute.xlu1 %1000  ;;  %v5369_v23 = vpop.permute.xlu0 %998 }
 0x1e6   : > { %v1004_v28 = vadd.f32 %v5369_v23, %v5281_v16  ;;  %v1194_v23 = vstv %s5464_s29  ;;  %s4064_s29 = sld [smem:[#allocation8 + $0xc4]] }
 0x1e7   : > { %1507 = vrot.lane.b32.xlu1 %v1502_v26, %s4485_s15  ;;  %1505 = vrot.lane.b32.xlu0 %v1501_v58, %s4485_s15  ;;  %v1571_v26 = vmul.f32 %v1570_v43, %v5353_v29  ;;  %v1584_v58 = vstv %s5403_s9  ;;  %v1600_v43 = vmul.f32 %v1598_v50, %v5355_v31  ;;  %s5535_s9 = sld [smem:[#allocation8 + $0xe6]] }
 0x1e9   : > { %v5375_v27 = vpop.permute.xlu1 %1014  ;;  %v5377_v0 = vpop.permute.xlu0 %1012 }
 0x1eb   : > { %1521 = vrot.lane.b32.xlu1 %v1516_v33, %s4485_s15  ;;  %1519 = vrot.lane.b32.xlu0 %v1515_v34, %s4485_s15  ;;  %v977_v33 = vadd.f32 %v5347_v55, %v5239_v41  ;;  %v976_v34 = vadd.f32 %v5349_v37, %v5241_v1  ;;  %v1178_v55 = vmul.f32 %v1176_v10, %v5124_v24  ;;  %v1182_v37 = vstv %s5424_s16  ;;  %s4060_s16 = sld [smem:[#allocation8 + $0x34]] }
 0x1ec   : > { %v1177_v1 = vmul.f32 %v1176_v10, %v5122_v5 }
 0x1ed   : > { %v5385_v4 = vpop.permute.xlu1 %1028  ;;  %v5387_v7 = vpop.permute.xlu0 %1026 }
 0x1ef   : > { %1535 = vrot.lane.b32.xlu1 %v1530_v3, %s4485_s15  ;;  %1533 = vrot.lane.b32.xlu0 %v1529_v60, %s4485_s15 }
 0x1f1   : > { %v5397_v18 = vpop.permute.xlu1 %1042  ;;  %v5399_v51 = vpop.permute.xlu0 %1040 }
 0x1f3   : > { %1549 = vrot.lane.b32.xlu1 %v1544_v21, %s4485_s15  ;;  %1547 = vrot.lane.b32.xlu0 %v1543_v6, %s4485_s15  ;;  %v1586_v21 = vmul.f32 %v1584_v58, %v5355_v31  ;;  %v1585_v6 = vmul.f32 %v1584_v58, %v5353_v29  ;;  %v1626_v58 = vstv %s5457_s26  ;;  %s4063_s26 = sld [smem:[#allocation8 + $0xa0]] }
 0x1f5   : > { %v1057_v40 = vpop.permute.xlu1 %1056  ;;  %v1055_v62 = vpop.permute.xlu0 %1054 }
 0x1f6   : > { %v1061_v39 = vadd.f32 %v1057_v40, %v949_v52  ;;  %v1060_v44 = vadd.f32 %v1055_v62, %v948_v42  ;;  %v991_v52 = vadd.f32 %v5359_v17, %v5259_v14  ;;  %v990_v42 = vadd.f32 %v5361_v22, %v5261_v20 }
 0x1f7   : > { %1563 = vrot.lane.b32.xlu1 %v1558_v63, %s4485_s15  ;;  %1561 = vrot.lane.b32.xlu0 %v1557_v2, %s4485_s15  ;;  %v1184_v17 = vmul.f32 %v1182_v37, %v5124_v24  ;;  %v1183_v20 = vmul.f32 %v1182_v37, %v5122_v5  ;;  %v1188_v22 = vstv %s5444_s14  ;;  %s4062_s14 = sld [smem:[#allocation8 + $0x7c]] }
 0x1f8   : > { %v5430_v54 = vadd.f32 %v1166_v15, %v1061_v39  ;;  %v5432_v53 = vadd.f32 %v1165_v13, %v1060_v44  ;;  %v1599_v39 = vmul.f32 %v1598_v50, %v5353_v29  ;;  %v1612_v44 = vstv %s5437_s28  ;;  %s4061_s28 = sld [smem:[#allocation8 + $0x58]] }
 0x1f9   : > { %v1071_v56 = vpop.permute.xlu1 %1070  ;;  %v1069_v59 = vpop.permute.xlu0 %1068  ;;  %v1005_v13 = vadd.f32 %v5367_v12, %v5279_v38  ;;  %v1190_v12 = vmul.f32 %v1188_v22, %v5124_v24  ;;  %v1189_v16 = vmul.f32 %v1188_v22, %v5122_v5  ;;  %v1033_v50 = vadd.f32 %v5385_v4, %v5315_v36 }
 0x1fa   : > { %v1075_v46 = vadd.f32 %v1071_v56, %v963_v25  ;;  %v1074_v32 = vadd.f32 %v1069_v59, %v962_v49  ;;  %v1206_v4 = vstv %s5504_s13  ;;  %s5634_s13 = sld [smem:[#allocation8 + $0x10c]] }
 0x1fb   : > { %1577 = vrot.lane.b32.xlu1 %v1572_v61, %s4485_s15  ;;  %1575 = vrot.lane.b32.xlu0 %v1571_v26, %s4485_s15  ;;  %v1614_v61 = vmul.f32 %v1612_v44, %v5355_v31  ;;  %v1613_v26 = vmul.f32 %v1612_v44, %v5353_v29 }
 0x1fc   : > { %v5450_v47 = vadd.f32 %v1172_v9, %v1075_v46  ;;  %v5452_v3 = vadd.f32 %v1171_v30, %v1074_v32  ;;  %v1019_v32 = vadd.f32 %v5375_v27, %v5297_v57  ;;  %v1018_v9 = vadd.f32 %v5377_v0, %v5299_v45 }
 0x1fd   : > { %v1085_v60 = vpop.permute.xlu1 %1084  ;;  %v1083_v35 = vpop.permute.xlu0 %1082  ;;  %v1196_v27 = vmul.f32 %v1194_v23, %v5124_v24  ;;  %v1195_v45 = vmul.f32 %v1194_v23, %v5122_v5  ;;  %v1200_v0 = vstv %s5484_s25  ;;  %s5622_s25 = sld [smem:[#allocation8 + $0xe8]] }
 0x1fe   : > { %v1089_v11 = vadd.f32 %v1085_v60, %v977_v33  ;;  %v1088_v41 = vadd.f32 %v1083_v35, %v976_v34  ;;  %v1628_v60 = vmul.f32 %v1626_v58, %v5355_v31  ;;  %v1627_v35 = vmul.f32 %v1626_v58, %v5353_v29 }
 0x1ff   : > { %1591 = vrot.lane.b32.xlu1 %v1586_v21, %s4485_s15  ;;  %1589 = vrot.lane.b32.xlu0 %v1585_v6, %s4485_s15  ;;  %v1640_v21 = vstv %s5477_s7  ;;  %v1202_v36 = vmul.f32 %v1200_v0, %v5124_v24  ;;  %s5614_s7 = sld [smem:[#allocation8 + $0xc]] }
 0x200   : > { %v5470_v40 = vadd.f32 %v1178_v55, %v1089_v11  ;;  %v5472_v62 = vadd.f32 %v1177_v1, %v1088_v41  ;;  %v1032_v11 = vadd.f32 %v5387_v7, %v5317_v48  ;;  %v1201_v48 = vmul.f32 %v1200_v0, %v5122_v5 }
 0x201   : > { %v1099_v63 = vpop.permute.xlu1 %1098  ;;  %v1097_v2 = vpop.permute.xlu0 %1096  ;;  %v1047_v7 = vadd.f32 %v5397_v18, %v5326_v19  ;;  %v1208_v19 = vmul.f32 %v1206_v4, %v5124_v24  ;;  %v1207_v18 = vmul.f32 %v1206_v4, %v5122_v5 }
 0x202   : > { %v1103_v15 = vadd.f32 %v1099_v63, %v991_v52  ;;  %v1102_v14 = vadd.f32 %v1097_v2, %v990_v42  ;;  %v1642_v52 = vmul.f32 %v1640_v21, %v5355_v31  ;;  %v1641_v42 = vmul.f32 %v1640_v21, %v5353_v29 }
 0x203   : > { %1605 = vrot.lane.b32.xlu1 %v1600_v43, %s7406_s10  ;;  %1603 = vrot.lane.b32.xlu0 %v1599_v39, %s7406_s10  ;;  %v1654_v63 = vstv %s5497_s12  ;;  %v1046_v39 = vadd.f32 %v5399_v51, %v5328_v8  ;;  %s5626_s12 = sld [smem:[#allocation8 + $0x30]] }
 0x204   : > { %v5490_v25 = vadd.f32 %v1184_v17, %v1103_v15  ;;  %v5492_v49 = vadd.f32 %v1183_v20, %v1102_v14  ;;  %v1656_v20 = vmul.f32 %v1654_v63, %v5355_v31  ;;  %v1655_v22 = vmul.f32 %v1654_v63, %v5353_v29 }
 0x205   : > { %v1113_v56 = vpop.permute.xlu1 %1112  ;;  %v1111_v59 = vpop.permute.xlu0 %1110 }
 0x206   : > { %v1117_v46 = vadd.f32 %v1113_v56, %v1005_v13  ;;  %v1116_v38 = vadd.f32 %v1111_v59, %v1004_v28  ;;  %v1668_v13 = vstv %s5517_s8  ;;  %s5639_s8 = sld [smem:[#allocation8 + $0x54]] }
 0x207   : > { %1619 = vrot.lane.b32.xlu1 %v1614_v61, %s7406_s10  ;;  %1617 = vrot.lane.b32.xlu0 %v1613_v26, %s7406_s10  ;;  %v1670_v26 = vmul.f32 %v1668_v13, %v5355_v31  ;;  %v1669_v58 = vmul.f32 %v1668_v13, %v5353_v29  ;;  %v1830_v13 = vstv %s4064_s29  ;;  %s5715_s29 = sld [smem:[#allocation8 + $0xe4]] }
 0x208   : > { %v5510_v30 = vadd.f32 %v1190_v12, %v1117_v46  ;;  %v5512_v10 = vadd.f32 %v1189_v16, %v1116_v38  ;;  %v1682_v46 = vstv %s5535_s9  ;;  %v1696_v16 = vstv %s4050_s17  ;;  %s5648_s9 = sld [smem:[#allocation8 + $0x11]]  ;;  %s5655_s17 = sld [smem:[#allocation8 + $0x78]] }
 0x209   : > { %v1127_v33 = vpop.permute.xlu1 %1126  ;;  %v1125_v34 = vpop.permute.xlu0 %1124  ;;  %v1684_v38 = vmul.f32 %v1682_v46, %v5355_v31  ;;  %v1683_v12 = vmul.f32 %v1682_v46, %v5353_v29 }
 0x20a   : > { %v1131_v6 = vadd.f32 %v1127_v33, %v1019_v32  ;;  %v1130_v57 = vadd.f32 %v1125_v34, %v1018_v9  ;;  %v1698_v9 = vmul.f32 %v1696_v16, %v5355_v31  ;;  %v1697_v33 = vmul.f32 %v1696_v16, %v5353_v29  ;;  %v5584_v34 = vld [vmem:[#allocation2 + $0x1a] sm:$0xff] }
 0x20b   : > { %1633 = vrot.lane.b32.xlu1 %v1628_v60, %s7406_s10  ;;  %1631 = vrot.lane.b32.xlu0 %v1627_v35, %s7406_s10  ;;  %v5586_v60 = vld [vmem:[#allocation2 + $0x22] sm:$0xff]  ;;  %v1760_v35 = vstv %s4059_s11  ;;  %v1831_v46 = vmul.f32 %v1830_v13, %v5584_v34  ;;  %s5668_s11 = sld [smem:[#allocation8 + $0x35]] }
 0x20c   : > { %v5528_v41 = vadd.f32 %v1196_v27, %v1131_v6  ;;  %v5530_v55 = vadd.f32 %v1195_v45, %v1130_v57  ;;  %v1762_v57 = vmul.f32 %v1760_v35, %v5586_v60  ;;  %v1761_v27 = vmul.f32 %v1760_v35, %v5584_v34 }
 0x20d   : > { %v1141_v1 = vpop.permute.xlu1 %1140  ;;  %v1139_v37 = vpop.permute.xlu0 %1138  ;;  %v1774_v45 = vstv %s4060_s16  ;;  %s5675_s16 = sld [smem:[#allocation8 + $0x9c]] }
 0x20e   : > { %v1145_v2 = vadd.f32 %v1141_v1, %v1033_v50  ;;  %v1144_v43 = vadd.f32 %v1139_v37, %v1032_v11  ;;  %v1776_v11 = vmul.f32 %v1774_v45, %v5586_v60  ;;  %v1775_v1 = vmul.f32 %v1774_v45, %v5584_v34 }
 0x20f   : > { %1647 = vrot.lane.b32.xlu1 %v1642_v52, %s7406_s10  ;;  %1645 = vrot.lane.b32.xlu0 %v1641_v42, %s7406_s10  ;;  %v1788_v37 = vstv %s4061_s28  ;;  %s5688_s28 = sld [smem:[#allocation8 + $0x59]] }
 0x210   : > { %v5546_v44 = vadd.f32 %v1202_v36, %v1145_v2  ;;  %v5548_v15 = vadd.f32 %v1201_v48, %v1144_v43  ;;  %v1790_v63 = vmul.f32 %v1788_v37, %v5586_v60  ;;  %v1789_v2 = vmul.f32 %v1788_v37, %v5584_v34 }
 0x211   : > { %v1155_v14 = vpop.permute.xlu1 %1154  ;;  %v1153_v17 = vpop.permute.xlu0 %1152  ;;  %v1802_v43 = vstv %s4062_s14  ;;  %s5695_s14 = sld [smem:[#allocation8 + $0xc0]] }
 0x212   : > { %v1159_v28 = vadd.f32 %v1155_v14, %v1047_v7  ;;  %v1158_v56 = vadd.f32 %v1153_v17, %v1046_v39  ;;  %v1804_v4 = vmul.f32 %v1802_v43, %v5586_v60  ;;  %v1803_v7 = vmul.f32 %v1802_v43, %v5584_v34 }
 0x213   : > { %1661 = vrot.lane.b32.xlu1 %v1656_v20, %s7406_s10  ;;  %1659 = vrot.lane.b32.xlu0 %v1655_v22, %s7406_s10  ;;  %v1816_v39 = vstv %s4063_s26  ;;  %s5708_s26 = sld [smem:[#allocation8 + $0x7d]] }
 0x214   : > { %v5557_v8 = vadd.f32 %v1208_v19, %v1159_v28  ;;  %v5559_v51 = vadd.f32 %v1207_v18, %v1158_v56  ;;  %v1818_v20 = vmul.f32 %v1816_v39, %v5586_v60  ;;  %v1817_v22 = vmul.f32 %v1816_v39, %v5584_v34 }
 0x215   : > { %v5561_v59 = vpop.permute.xlu1 %1219  ;;  %v5563_v61 = vpop.permute.xlu0 %1217  ;;  %v1438_v28 = vstv %s5614_s7  ;;  %s5728_s7 = sld [smem:[#allocation8 + $0xa1]] }
 0x216   : > { %v1224_v56 = vadd.f32 %v5561_v59, %v5430_v54  ;;  %v1223_v19 = vadd.f32 %v5563_v61, %v5432_v53  ;;  %v1444_v54 = vstv %s5626_s12  ;;  %s5748_s12 = sld [smem:[#allocation8 + $0xc5]] }
 0x217   : > { %1675 = vrot.lane.b32.xlu1 %v1670_v26, %s7406_s10  ;;  %1673 = vrot.lane.b32.xlu0 %v1669_v58, %s7406_s10  ;;  %v1832_v58 = vmul.f32 %v1830_v13, %v5586_v60  ;;  %v1872_v13 = vstv %s5648_s9  ;;  %s4083_s9 = sld [smem:[#allocation8 + $0x13]] }
 0x219   : > { %v5570_v5 = vpop.permute.xlu1 %1233  ;;  %v5572_v24 = vpop.permute.xlu0 %1231 }
 0x21a   : > { %v1238_v53 = vadd.f32 %v5570_v5, %v5450_v47  ;;  %v1237_v59 = vadd.f32 %v5572_v24, %v5452_v3  ;;  %v1446_v5 = vmul.f32 %v1444_v54, %v5355_v31  ;;  %v1445_v3 = vmul.f32 %v1444_v54, %v5353_v29 }
 0x21b   : > { %1689 = vrot.lane.b32.xlu1 %v1684_v38, %s7406_s10  ;;  %1687 = vrot.lane.b32.xlu0 %v1683_v12, %s7406_s10  ;;  %v1844_v38 = vstv %s5622_s25  ;;  %v1450_v24 = vstv %s5639_s8  ;;  %s5735_s25 = sld [smem:[#allocation8 + $0x108]]  ;;  %s4074_s8 = sld [smem:[#allocation8 + $0x10d]] }
 0x21c   : > { %v1846_v45 = vmul.f32 %v1844_v38, %v5586_v60 }
 0x21d   : > { %v5578_v23 = vpop.permute.xlu1 %1247  ;;  %v5580_v32 = vpop.permute.xlu0 %1245 }
 0x21f   : > { %1703 = vrot.lane.b32.xlu1 %v1698_v9, %s7406_s10  ;;  %1701 = vrot.lane.b32.xlu0 %v1697_v33, %s7406_s10  ;;  %v1440_v9 = vmul.f32 %v1438_v28, %v5355_v31  ;;  %v1439_v33 = vmul.f32 %v1438_v28, %v5353_v29 }
 0x221   : > { %v5590_v21 = vpop.permute.xlu1 %1261  ;;  %v5592_v6 = vpop.permute.xlu0 %1259 }
 0x223   : > { %1767 = vrot.lane.b32.xlu1 %v1762_v57, %s4485_s15  ;;  %1765 = vrot.lane.b32.xlu0 %v1761_v27, %s4485_s15 }
 0x225   : > { %v5598_v0 = vpop.permute.xlu1 %1275  ;;  %v5600_v50 = vpop.permute.xlu0 %1273 }
 0x226   : > { %v1279_v54 = vadd.f32 %v5600_v50, %v5512_v10  ;;  %v1468_v50 = vstv %s5695_s14  ;;  %s4088_s14 = sld [smem:[#allocation8 + $0xc7]] }
 0x227   : > { %1781 = vrot.lane.b32.xlu1 %v1776_v11, %s4485_s15  ;;  %1779 = vrot.lane.b32.xlu0 %v1775_v1, %s4485_s15  ;;  %v1845_v11 = vmul.f32 %v1844_v38, %v5584_v34  ;;  %v1858_v1 = vstv %s5634_s13  ;;  %v1874_v38 = vmul.f32 %v1872_v13, %v5586_v60  ;;  %s5766_s13 = sld [smem:[#allocation8 + $0xe9]] }
 0x229   : > { %v5606_v52 = vpop.permute.xlu1 %1289  ;;  %v5608_v42 = vpop.permute.xlu0 %1287 }
 0x22b   : > { %1795 = vrot.lane.b32.xlu1 %v1790_v63, %s4485_s15  ;;  %1793 = vrot.lane.b32.xlu0 %v1789_v2, %s4485_s15  ;;  %v1252_v63 = vadd.f32 %v5578_v23, %v5470_v40  ;;  %v1251_v2 = vadd.f32 %v5580_v32, %v5472_v62  ;;  %v1452_v23 = vmul.f32 %v1450_v24, %v5355_v31  ;;  %v1456_v32 = vstv %s5655_s17  ;;  %s4084_s17 = sld [smem:[#allocation8 + $0x37]] }
 0x22c   : > { %v1451_v62 = vmul.f32 %v1450_v24, %v5353_v29 }
 0x22d   : > { %v5616_v36 = vpop.permute.xlu1 %1303  ;;  %v5618_v48 = vpop.permute.xlu0 %1301 }
 0x22f   : > { %1809 = vrot.lane.b32.xlu1 %v1804_v4, %s4485_s15  ;;  %1807 = vrot.lane.b32.xlu0 %v1803_v7, %s4485_s15 }
 0x231   : > { %v5628_v14 = vpop.permute.xlu1 %1317  ;;  %v5630_v17 = vpop.permute.xlu0 %1315 }
 0x233   : > { %1823 = vrot.lane.b32.xlu1 %v1818_v20, %s4485_s15  ;;  %1821 = vrot.lane.b32.xlu0 %v1817_v22, %s4485_s15  ;;  %v1860_v20 = vmul.f32 %v1858_v1, %v5586_v60  ;;  %v1859_v22 = vmul.f32 %v1858_v1, %v5584_v34  ;;  %v1900_v1 = vstv %s5688_s28  ;;  %s4087_s28 = sld [smem:[#allocation8 + $0xa3]] }
 0x235   : > { %v1332_v18 = vpop.permute.xlu1 %1331  ;;  %v1330_v26 = vpop.permute.xlu0 %1329 }
 0x236   : > { %v1336_v12 = vadd.f32 %v1332_v18, %v1224_v56  ;;  %v1335_v16 = vadd.f32 %v1330_v26, %v1223_v19  ;;  %v1266_v56 = vadd.f32 %v5590_v21, %v5490_v25  ;;  %v1265_v19 = vadd.f32 %v5592_v6, %v5492_v49 }
 0x237   : > { %1837 = vrot.lane.b32.xlu1 %v1832_v58, %s4485_s15  ;;  %1835 = vrot.lane.b32.xlu0 %v1831_v46, %s4485_s15  ;;  %v1458_v21 = vmul.f32 %v1456_v32, %v5355_v31  ;;  %v1457_v49 = vmul.f32 %v1456_v32, %v5353_v29  ;;  %v1462_v6 = vstv %s5675_s16  ;;  %s4086_s16 = sld [smem:[#allocation8 + $0x7f]] }
 0x238   : > { %v5661_v61 = vadd.f32 %v1440_v9, %v1336_v12  ;;  %v5663_v35 = vadd.f32 %v1439_v33, %v1335_v16  ;;  %v1873_v12 = vmul.f32 %v1872_v13, %v5584_v34  ;;  %v1886_v16 = vstv %s5668_s11  ;;  %s4085_s11 = sld [smem:[#allocation8 + $0x5b]] }
 0x239   : > { %v1346_v57 = vpop.permute.xlu1 %1345  ;;  %v1344_v27 = vpop.permute.xlu0 %1343  ;;  %v1280_v33 = vadd.f32 %v5598_v0, %v5510_v30  ;;  %v1464_v0 = vmul.f32 %v1462_v6, %v5355_v31  ;;  %v1463_v10 = vmul.f32 %v1462_v6, %v5353_v29  ;;  %v1308_v13 = vadd.f32 %v5616_v36, %v5546_v44 }
 0x23a   : > { %v1350_v37 = vadd.f32 %v1346_v57, %v1238_v53  ;;  %v1349_v47 = vadd.f32 %v1344_v27, %v1237_v59  ;;  %v1480_v36 = vstv %s5735_s25  ;;  %s5865_s25 = sld [smem:[#allocation8 + $0x10f]] }
 0x23b   : > { %1851 = vrot.lane.b32.xlu1 %v1846_v45, %s4485_s15  ;;  %1849 = vrot.lane.b32.xlu0 %v1845_v11, %s4485_s15  ;;  %v1888_v45 = vmul.f32 %v1886_v16, %v5586_v60  ;;  %v1887_v11 = vmul.f32 %v1886_v16, %v5584_v34 }
 0x23c   : > { %v5681_v43 = vadd.f32 %v1446_v5, %v1350_v37  ;;  %v5683_v4 = vadd.f32 %v1445_v3, %v1349_v47  ;;  %v1294_v47 = vadd.f32 %v5606_v52, %v5528_v41  ;;  %v1293_v5 = vadd.f32 %v5608_v42, %v5530_v55 }
 0x23d   : > { %v1360_v7 = vpop.permute.xlu1 %1359  ;;  %v1358_v39 = vpop.permute.xlu0 %1357  ;;  %v1470_v52 = vmul.f32 %v1468_v50, %v5355_v31  ;;  %v1469_v55 = vmul.f32 %v1468_v50, %v5353_v29  ;;  %v1474_v42 = vstv %s5715_s29  ;;  %s5853_s29 = sld [smem:[#allocation8 + $0xeb]] }
 0x23e   : > { %v1364_v28 = vadd.f32 %v1360_v7, %v1252_v63  ;;  %v1363_v40 = vadd.f32 %v1358_v39, %v1251_v2  ;;  %v1902_v7 = vmul.f32 %v1900_v1, %v5586_v60  ;;  %v1901_v39 = vmul.f32 %v1900_v1, %v5584_v34 }
 0x23f   : > { %1865 = vrot.lane.b32.xlu1 %v1860_v20, %s4485_s15  ;;  %1863 = vrot.lane.b32.xlu0 %v1859_v22, %s4485_s15  ;;  %v1914_v20 = vstv %s5708_s26  ;;  %v1476_v44 = vmul.f32 %v1474_v42, %v5355_v31  ;;  %s5845_s26 = sld [smem:[#allocation8 + $0xf]] }
 0x240   : > { %v5701_v18 = vadd.f32 %v1452_v23, %v1364_v28  ;;  %v5703_v26 = vadd.f32 %v1451_v62, %v1363_v40  ;;  %v1307_v28 = vadd.f32 %v5618_v48, %v5548_v15  ;;  %v1475_v15 = vmul.f32 %v1474_v42, %v5353_v29 }
 0x241   : > { %v1374_v58 = vpop.permute.xlu1 %1373  ;;  %v1372_v46 = vpop.permute.xlu0 %1371  ;;  %v1322_v48 = vadd.f32 %v5628_v14, %v5557_v8  ;;  %v1482_v8 = vmul.f32 %v1480_v36, %v5355_v31  ;;  %v1481_v14 = vmul.f32 %v1480_v36, %v5353_v29 }
 0x242   : > { %v1378_v9 = vadd.f32 %v1374_v58, %v1266_v56  ;;  %v1377_v25 = vadd.f32 %v1372_v46, %v1265_v19  ;;  %v1916_v56 = vmul.f32 %v1914_v20, %v5586_v60  ;;  %v1915_v19 = vmul.f32 %v1914_v20, %v5584_v34 }
 0x243   : > { %1879 = vrot.lane.b32.xlu1 %v1874_v38, %s7406_s10  ;;  %1877 = vrot.lane.b32.xlu0 %v1873_v12, %s7406_s10  ;;  %v1928_v58 = vstv %s5728_s7  ;;  %v1321_v12 = vadd.f32 %v5630_v17, %v5559_v51  ;;  %s5857_s7 = sld [smem:[#allocation8 + $0x33]] }
 0x244   : > { %v5721_v53 = vadd.f32 %v1458_v21, %v1378_v9  ;;  %v5723_v59 = vadd.f32 %v1457_v49, %v1377_v25  ;;  %v1930_v49 = vmul.f32 %v1928_v58, %v5586_v60  ;;  %v1929_v6 = vmul.f32 %v1928_v58, %v5584_v34 }
 0x245   : > { %v1388_v57 = vpop.permute.xlu1 %1387  ;;  %v1386_v27 = vpop.permute.xlu0 %1385 }
 0x246   : > { %v1392_v37 = vadd.f32 %v1388_v57, %v1280_v33  ;;  %v1391_v30 = vadd.f32 %v1386_v27, %v1279_v54  ;;  %v1942_v33 = vstv %s5748_s12  ;;  %s5870_s12 = sld [smem:[#allocation8 + $0x57]] }
 0x247   : > { %1893 = vrot.lane.b32.xlu1 %v1888_v45, %s7406_s10  ;;  %1891 = vrot.lane.b32.xlu0 %v1887_v11, %s7406_s10  ;;  %v1944_v11 = vmul.f32 %v1942_v33, %v5586_v60  ;;  %v1943_v1 = vmul.f32 %v1942_v33, %v5584_v34  ;;  %v2105_v33 = vstv %s4088_s14  ;;  %s5946_s14 = sld [smem:[#allocation8 + $0xe7]] }
 0x248   : > { %v5741_v3 = vadd.f32 %v1464_v0, %v1392_v37  ;;  %v5743_v24 = vadd.f32 %v1463_v10, %v1391_v30  ;;  %v1956_v37 = vstv %s5766_s13  ;;  %v1970_v10 = vstv %s4074_s8  ;;  %s5879_s13 = sld [smem:[#allocation8 + $0x14]]  ;;  %s5886_s8 = sld [smem:[#allocation8 + $0x7b]] }
 0x249   : > { %v1402_v63 = vpop.permute.xlu1 %1401  ;;  %v1400_v2 = vpop.permute.xlu0 %1399  ;;  %v1958_v30 = vmul.f32 %v1956_v37, %v5586_v60  ;;  %v1957_v0 = vmul.f32 %v1956_v37, %v5584_v34 }
 0x24a   : > { %v1406_v22 = vadd.f32 %v1402_v63, %v1294_v47  ;;  %v1405_v41 = vadd.f32 %v1400_v2, %v1293_v5  ;;  %v1972_v5 = vmul.f32 %v1970_v10, %v5586_v60  ;;  %v1971_v63 = vmul.f32 %v1970_v10, %v5584_v34  ;;  %v5815_v2 = vld [vmem:[#allocation2 + $0x30] sm:$0xff] }
 0x24b   : > { %1907 = vrot.lane.b32.xlu1 %v1902_v7, %s7406_s10  ;;  %1905 = vrot.lane.b32.xlu0 %v1901_v39, %s7406_s10  ;;  %v5817_v7 = vld [vmem:[#allocation2 + $0x38] sm:$0xff]  ;;  %v2035_v39 = vstv %s4083_s9  ;;  %v2106_v37 = vmul.f32 %v2105_v33, %v5815_v2  ;;  %s5899_s9 = sld [smem:[#allocation8 + $0x38]] }
 0x24c   : > { %v5759_v40 = vadd.f32 %v1470_v52, %v1406_v22  ;;  %v5761_v23 = vadd.f32 %v1469_v55, %v1405_v41  ;;  %v2037_v41 = vmul.f32 %v2035_v39, %v5817_v7  ;;  %v2036_v52 = vmul.f32 %v2035_v39, %v5815_v2 }
 0x24d   : > { %v1416_v62 = vpop.permute.xlu1 %1415  ;;  %v1414_v32 = vpop.permute.xlu0 %1413  ;;  %v2049_v55 = vstv %s4084_s17  ;;  %s5906_s17 = sld [smem:[#allocation8 + $0x9f]] }
 0x24e   : > { %v1420_v46 = vadd.f32 %v1416_v62, %v1308_v13  ;;  %v1419_v38 = vadd.f32 %v1414_v32, %v1307_v28  ;;  %v2051_v28 = vmul.f32 %v2049_v55, %v5817_v7  ;;  %v2050_v62 = vmul.f32 %v2049_v55, %v5815_v2 }
 0x24f   : > { %1921 = vrot.lane.b32.xlu1 %v1916_v56, %s7406_s10  ;;  %1919 = vrot.lane.b32.xlu0 %v1915_v19, %s7406_s10  ;;  %v2063_v32 = vstv %s4085_s11  ;;  %s5919_s11 = sld [smem:[#allocation8 + $0x5c]] }
 0x250   : > { %v5777_v16 = vadd.f32 %v1476_v44, %v1420_v46  ;;  %v5779_v9 = vadd.f32 %v1475_v15, %v1419_v38  ;;  %v2065_v58 = vmul.f32 %v2063_v32, %v5817_v7  ;;  %v2064_v46 = vmul.f32 %v2063_v32, %v5815_v2 }
 0x251   : > { %v1430_v25 = vpop.permute.xlu1 %1429  ;;  %v1428_v21 = vpop.permute.xlu0 %1427  ;;  %v2077_v38 = vstv %s4086_s16  ;;  %s5926_s16 = sld [smem:[#allocation8 + $0xc3]] }
 0x252   : > { %v1434_v54 = vadd.f32 %v1430_v25, %v1322_v48  ;;  %v1433_v57 = vadd.f32 %v1428_v21, %v1321_v12  ;;  %v2079_v36 = vmul.f32 %v2077_v38, %v5817_v7  ;;  %v2078_v48 = vmul.f32 %v2077_v38, %v5815_v2 }
 0x253   : > { %1935 = vrot.lane.b32.xlu1 %v1930_v49, %s7406_s10  ;;  %1933 = vrot.lane.b32.xlu0 %v1929_v6, %s7406_s10  ;;  %v2091_v12 = vstv %s4087_s28  ;;  %s5939_s28 = sld [smem:[#allocation8 + $0x80]] }
 0x254   : > { %v5788_v51 = vadd.f32 %v1482_v8, %v1434_v54  ;;  %v5790_v17 = vadd.f32 %v1481_v14, %v1433_v57  ;;  %v2093_v49 = vmul.f32 %v2091_v12, %v5817_v7  ;;  %v2092_v6 = vmul.f32 %v2091_v12, %v5815_v2 }
 0x255   : > { %v5792_v27 = vpop.permute.xlu1 %1493  ;;  %v5794_v45 = vpop.permute.xlu0 %1491  ;;  %v1712_v54 = vstv %s5845_s26  ;;  %s5959_s26 = sld [smem:[#allocation8 + $0xa4]] }
 0x256   : > { %v1498_v57 = vadd.f32 %v5792_v27, %v5661_v61  ;;  %v1497_v8 = vadd.f32 %v5794_v45, %v5663_v35  ;;  %v1718_v61 = vstv %s5857_s7  ;;  %s5979_s7 = sld [smem:[#allocation8 + $0xc8]] }
 0x257   : > { %1949 = vrot.lane.b32.xlu1 %v1944_v11, %s7406_s10  ;;  %1947 = vrot.lane.b32.xlu0 %v1943_v1, %s7406_s10  ;;  %v2107_v1 = vmul.f32 %v2105_v33, %v5817_v7  ;;  %v2147_v33 = vstv %s5879_s13  ;;  %s4107_s13 = sld [smem:[#allocation8 + $0x16]] }
 0x259   : > { %v5801_v29 = vpop.permute.xlu1 %1507  ;;  %v5803_v31 = vpop.permute.xlu0 %1505 }
 0x25a   : > { %v1512_v35 = vadd.f32 %v5801_v29, %v5681_v43  ;;  %v1511_v27 = vadd.f32 %v5803_v31, %v5683_v4  ;;  %v1720_v29 = vmul.f32 %v1718_v61, %v5586_v60  ;;  %v1719_v4 = vmul.f32 %v1718_v61, %v5584_v34 }
 0x25b   : > { %1963 = vrot.lane.b32.xlu1 %v1958_v30, %s7406_s10  ;;  %1961 = vrot.lane.b32.xlu0 %v1957_v0, %s7406_s10  ;;  %v2119_v30 = vstv %s5853_s29  ;;  %v1724_v31 = vstv %s5870_s12  ;;  %s5966_s29 = sld [smem:[#allocation8 + $0x10b]]  ;;  %s4098_s12 = sld [smem:[#allocation8 + $0x110]] }
 0x25c   : > { %v2121_v55 = vmul.f32 %v2119_v30, %v5817_v7 }
 0x25d   : > { %v5809_v50 = vpop.permute.xlu1 %1521  ;;  %v5811_v47 = vpop.permute.xlu0 %1519 }
 0x25f   : > { %1977 = vrot.lane.b32.xlu1 %v1972_v5, %s7406_s10  ;;  %1975 = vrot.lane.b32.xlu0 %v1971_v63, %s7406_s10  ;;  %v1714_v5 = vmul.f32 %v1712_v54, %v5586_v60  ;;  %v1713_v63 = vmul.f32 %v1712_v54, %v5584_v34 }
 0x261   : > { %v5821_v20 = vpop.permute.xlu1 %1535  ;;  %v5823_v22 = vpop.permute.xlu0 %1533 }
 0x263   : > { %2042 = vrot.lane.b32.xlu1 %v2037_v41, %s4485_s15  ;;  %2040 = vrot.lane.b32.xlu0 %v2036_v52, %s4485_s15 }
 0x265   : > { %v5829_v42 = vpop.permute.xlu1 %1549  ;;  %v5831_v13 = vpop.permute.xlu0 %1547 }
 0x266   : > { %v1553_v61 = vadd.f32 %v5831_v13, %v5743_v24  ;;  %v1742_v13 = vstv %s5926_s16  ;;  %s4112_s16 = sld [smem:[#allocation8 + $0xca]] }
 0x267   : > { %2056 = vrot.lane.b32.xlu1 %v2051_v28, %s4485_s15  ;;  %2054 = vrot.lane.b32.xlu0 %v2050_v62, %s4485_s15  ;;  %v2120_v28 = vmul.f32 %v2119_v30, %v5815_v2  ;;  %v2133_v62 = vstv %s5865_s25  ;;  %v2149_v30 = vmul.f32 %v2147_v33, %v5817_v7  ;;  %s5997_s25 = sld [smem:[#allocation8 + $0xec]] }
 0x269   : > { %v5837_v56 = vpop.permute.xlu1 %1563  ;;  %v5839_v19 = vpop.permute.xlu0 %1561 }
 0x26b   : > { %2070 = vrot.lane.b32.xlu1 %v2065_v58, %s4485_s15  ;;  %2068 = vrot.lane.b32.xlu0 %v2064_v46, %s4485_s15  ;;  %v1526_v58 = vadd.f32 %v5809_v50, %v5701_v18  ;;  %v1525_v46 = vadd.f32 %v5811_v47, %v5703_v26  ;;  %v1726_v50 = vmul.f32 %v1724_v31, %v5586_v60  ;;  %v1730_v47 = vstv %s5886_s8  ;;  %s4108_s8 = sld [smem:[#allocation8 + $0x3a]] }
 0x26c   : > { %v1725_v26 = vmul.f32 %v1724_v31, %v5584_v34 }
 0x26d   : > { %v5847_v44 = vpop.permute.xlu1 %1577  ;;  %v5849_v15 = vpop.permute.xlu0 %1575 }
 0x26f   : > { %2084 = vrot.lane.b32.xlu1 %v2079_v36, %s4485_s15  ;;  %2082 = vrot.lane.b32.xlu0 %v2078_v48, %s4485_s15 }
 0x271   : > { %v5859_v25 = vpop.permute.xlu1 %1591  ;;  %v5861_v21 = vpop.permute.xlu0 %1589 }
 0x273   : > { %2098 = vrot.lane.b32.xlu1 %v2093_v49, %s4485_s15  ;;  %2096 = vrot.lane.b32.xlu0 %v2092_v6, %s4485_s15  ;;  %v2135_v49 = vmul.f32 %v2133_v62, %v5817_v7  ;;  %v2134_v6 = vmul.f32 %v2133_v62, %v5815_v2  ;;  %v2175_v62 = vstv %s5919_s11  ;;  %s4111_s11 = sld [smem:[#allocation8 + $0xa6]] }
 0x275   : > { %v1606_v14 = vpop.permute.xlu1 %1605  ;;  %v1604_v11 = vpop.permute.xlu0 %1603 }
 0x276   : > { %v1610_v0 = vadd.f32 %v1606_v14, %v1498_v57  ;;  %v1609_v10 = vadd.f32 %v1604_v11, %v1497_v8  ;;  %v1540_v57 = vadd.f32 %v5821_v20, %v5721_v53  ;;  %v1539_v8 = vadd.f32 %v5823_v22, %v5723_v59 }
 0x277   : > { %2112 = vrot.lane.b32.xlu1 %v2107_v1, %s4485_s15  ;;  %2110 = vrot.lane.b32.xlu0 %v2106_v37, %s4485_s15  ;;  %v1732_v20 = vmul.f32 %v1730_v47, %v5586_v60  ;;  %v1731_v59 = vmul.f32 %v1730_v47, %v5584_v34  ;;  %v1736_v22 = vstv %s5906_s17  ;;  %s4110_s17 = sld [smem:[#allocation8 + $0x82]] }
 0x278   : > { %v5892_v45 = vadd.f32 %v1714_v5, %v1610_v0  ;;  %v5894_v39 = vadd.f32 %v1713_v63, %v1609_v10  ;;  %v2148_v0 = vmul.f32 %v2147_v33, %v5815_v2  ;;  %v2161_v10 = vstv %s5899_s9  ;;  %s4109_s9 = sld [smem:[#allocation8 + $0x5e]] }
 0x279   : > { %v1620_v41 = vpop.permute.xlu1 %1619  ;;  %v1618_v52 = vpop.permute.xlu0 %1617  ;;  %v1554_v63 = vadd.f32 %v5829_v42, %v5741_v3  ;;  %v1738_v42 = vmul.f32 %v1736_v22, %v5586_v60  ;;  %v1737_v24 = vmul.f32 %v1736_v22, %v5584_v34  ;;  %v1582_v33 = vadd.f32 %v5847_v44, %v5777_v16 }
 0x27a   : > { %v1624_v32 = vadd.f32 %v1620_v41, %v1512_v35  ;;  %v1623_v43 = vadd.f32 %v1618_v52, %v1511_v27  ;;  %v1754_v44 = vstv %s5966_s29  ;;  %s6096_s29 = sld [smem:[#allocation8 + $0x112]] }
 0x27b   : > { %2126 = vrot.lane.b32.xlu1 %v2121_v55, %s4485_s15  ;;  %2124 = vrot.lane.b32.xlu0 %v2120_v28, %s4485_s15  ;;  %v2163_v55 = vmul.f32 %v2161_v10, %v5817_v7  ;;  %v2162_v28 = vmul.f32 %v2161_v10, %v5815_v2 }
 0x27c   : > { %v5912_v38 = vadd.f32 %v1720_v29, %v1624_v32  ;;  %v5914_v36 = vadd.f32 %v1719_v4, %v1623_v43  ;;  %v1568_v43 = vadd.f32 %v5837_v56, %v5759_v40  ;;  %v1567_v29 = vadd.f32 %v5839_v19, %v5761_v23 }
 0x27d   : > { %v1634_v48 = vpop.permute.xlu1 %1633  ;;  %v1632_v12 = vpop.permute.xlu0 %1631  ;;  %v1744_v56 = vmul.f32 %v1742_v13, %v5586_v60  ;;  %v1743_v23 = vmul.f32 %v1742_v13, %v5584_v34  ;;  %v1748_v19 = vstv %s5946_s14  ;;  %s6084_s14 = sld [smem:[#allocation8 + $0xee]] }
 0x27e   : > { %v1638_v54 = vadd.f32 %v1634_v48, %v1526_v58  ;;  %v1637_v18 = vadd.f32 %v1632_v12, %v1525_v46  ;;  %v2177_v48 = vmul.f32 %v2175_v62, %v5817_v7  ;;  %v2176_v12 = vmul.f32 %v2175_v62, %v5815_v2 }
 0x27f   : > { %2140 = vrot.lane.b32.xlu1 %v2135_v49, %s4485_s15  ;;  %2138 = vrot.lane.b32.xlu0 %v2134_v6, %s4485_s15  ;;  %v2189_v49 = vstv %s5939_s28  ;;  %v1750_v16 = vmul.f32 %v1748_v19, %v5586_v60  ;;  %s6076_s28 = sld [smem:[#allocation8 + $0x12]] }
 0x280   : > { %v5932_v14 = vadd.f32 %v1726_v50, %v1638_v54  ;;  %v5934_v11 = vadd.f32 %v1725_v26, %v1637_v18  ;;  %v1581_v54 = vadd.f32 %v5849_v15, %v5779_v9  ;;  %v1749_v9 = vmul.f32 %v1748_v19, %v5584_v34 }
 0x281   : > { %v1648_v1 = vpop.permute.xlu1 %1647  ;;  %v1646_v37 = vpop.permute.xlu0 %1645  ;;  %v1596_v15 = vadd.f32 %v5859_v25, %v5788_v51  ;;  %v1756_v51 = vmul.f32 %v1754_v44, %v5586_v60  ;;  %v1755_v25 = vmul.f32 %v1754_v44, %v5584_v34 }
 0x282   : > { %v1652_v5 = vadd.f32 %v1648_v1, %v1540_v57  ;;  %v1651_v53 = vadd.f32 %v1646_v37, %v1539_v8  ;;  %v2191_v57 = vmul.f32 %v2189_v49, %v5817_v7  ;;  %v2190_v8 = vmul.f32 %v2189_v49, %v5815_v2 }
 0x283   : > { %2154 = vrot.lane.b32.xlu1 %v2149_v30, %s7406_s10  ;;  %2152 = vrot.lane.b32.xlu0 %v2148_v0, %s7406_s10  ;;  %v2203_v1 = vstv %s5959_s26  ;;  %v1595_v0 = vadd.f32 %v5861_v21, %v5790_v17  ;;  %s6088_s26 = sld [smem:[#allocation8 + $0x36]] }
 0x284   : > { %v5952_v35 = vadd.f32 %v1732_v20, %v1652_v5  ;;  %v5954_v27 = vadd.f32 %v1731_v59, %v1651_v53  ;;  %v2205_v59 = vmul.f32 %v2203_v1, %v5817_v7  ;;  %v2204_v22 = vmul.f32 %v2203_v1, %v5815_v2 }
 0x285   : > { %v1662_v41 = vpop.permute.xlu1 %1661  ;;  %v1660_v52 = vpop.permute.xlu0 %1659 }
 0x286   : > { %v1666_v32 = vadd.f32 %v1662_v41, %v1554_v63  ;;  %v1665_v3 = vadd.f32 %v1660_v52, %v1553_v61  ;;  %v2217_v63 = vstv %s5979_s7  ;;  %s6101_s7 = sld [smem:[#allocation8 + $0x5a]] }
 0x287   : > { %2168 = vrot.lane.b32.xlu1 %v2163_v55, %s7406_s10  ;;  %2166 = vrot.lane.b32.xlu0 %v2162_v28, %s7406_s10  ;;  %v2219_v28 = vmul.f32 %v2217_v63, %v5817_v7  ;;  %v2218_v62 = vmul.f32 %v2217_v63, %v5815_v2  ;;  %v2379_v63 = vstv %s4112_s16  ;;  %s6177_s16 = sld [smem:[#allocation8 + $0xea]] }
 0x288   : > { %v5972_v4 = vadd.f32 %v1738_v42, %v1666_v32  ;;  %v5974_v31 = vadd.f32 %v1737_v24, %v1665_v3  ;;  %v2231_v32 = vstv %s5997_s25  ;;  %v2245_v24 = vstv %s4098_s12  ;;  %s6110_s25 = sld [smem:[#allocation8 + $0x17]]  ;;  %s6117_s12 = sld [smem:[#allocation8 + $0x7e]] }
 0x289   : > { %v1676_v58 = vpop.permute.xlu1 %1675  ;;  %v1674_v46 = vpop.permute.xlu0 %1673  ;;  %v2233_v3 = vmul.f32 %v2231_v32, %v5817_v7  ;;  %v2232_v42 = vmul.f32 %v2231_v32, %v5815_v2 }
 0x28a   : > { %v1680_v6 = vadd.f32 %v1676_v58, %v1568_v43  ;;  %v1679_v40 = vadd.f32 %v1674_v46, %v1567_v29  ;;  %v2247_v29 = vmul.f32 %v2245_v24, %v5817_v7  ;;  %v2246_v58 = vmul.f32 %v2245_v24, %v5815_v2  ;;  %v6046_v46 = vld [vmem:[#allocation2 + $0x31] sm:$0xff] }
 0x28b   : > { %2182 = vrot.lane.b32.xlu1 %v2177_v48, %s7406_s10  ;;  %2180 = vrot.lane.b32.xlu0 %v2176_v12, %s7406_s10  ;;  %v6048_v48 = vld [vmem:[#allocation2 + $0x39] sm:$0xff]  ;;  %v2309_v12 = vstv %s4107_s13  ;;  %v2380_v32 = vmul.f32 %v2379_v63, %v6046_v46  ;;  %s6130_s13 = sld [smem:[#allocation8 + $0x3b]] }
 0x28c   : > { %v5990_v18 = vadd.f32 %v1744_v56, %v1680_v6  ;;  %v5992_v50 = vadd.f32 %v1743_v23, %v1679_v40  ;;  %v2311_v40 = vmul.f32 %v2309_v12, %v6048_v48  ;;  %v2310_v56 = vmul.f32 %v2309_v12, %v6046_v46 }
 0x28d   : > { %v1690_v26 = vpop.permute.xlu1 %1689  ;;  %v1688_v47 = vpop.permute.xlu0 %1687  ;;  %v2323_v23 = vstv %s4108_s8  ;;  %s6137_s8 = sld [smem:[#allocation8 + $0xa2]] }
 0x28e   : > { %v1694_v37 = vadd.f32 %v1690_v26, %v1582_v33  ;;  %v1693_v30 = vadd.f32 %v1688_v47, %v1581_v54  ;;  %v2325_v54 = vmul.f32 %v2323_v23, %v6048_v48  ;;  %v2324_v26 = vmul.f32 %v2323_v23, %v6046_v46 }
 0x28f   : > { %2196 = vrot.lane.b32.xlu1 %v2191_v57, %s7406_s10  ;;  %2194 = vrot.lane.b32.xlu0 %v2190_v8, %s7406_s10  ;;  %v2337_v47 = vstv %s4109_s9  ;;  %s6150_s9 = sld [smem:[#allocation8 + $0x5f]] }
 0x290   : > { %v6008_v10 = vadd.f32 %v1750_v16, %v1694_v37  ;;  %v6010_v5 = vadd.f32 %v1749_v9, %v1693_v30  ;;  %v2339_v1 = vmul.f32 %v2337_v47, %v6048_v48  ;;  %v2338_v37 = vmul.f32 %v2337_v47, %v6046_v46 }
 0x291   : > { %v1704_v53 = vpop.permute.xlu1 %1703  ;;  %v1702_v20 = vpop.permute.xlu0 %1701  ;;  %v2351_v30 = vstv %s4110_s17  ;;  %s6157_s17 = sld [smem:[#allocation8 + $0xc6]] }
 0x292   : > { %v1708_v61 = vadd.f32 %v1704_v53, %v1596_v15  ;;  %v1707_v41 = vadd.f32 %v1702_v20, %v1595_v0  ;;  %v2353_v44 = vmul.f32 %v2351_v30, %v6048_v48  ;;  %v2352_v15 = vmul.f32 %v2351_v30, %v6046_v46 }
 0x293   : > { %2210 = vrot.lane.b32.xlu1 %v2205_v59, %s7406_s10  ;;  %2208 = vrot.lane.b32.xlu0 %v2204_v22, %s7406_s10  ;;  %v2365_v0 = vstv %s4111_s11  ;;  %s6170_s11 = sld [smem:[#allocation8 + $0x83]] }
 0x294   : > { %v6019_v17 = vadd.f32 %v1756_v51, %v1708_v61  ;;  %v6021_v21 = vadd.f32 %v1755_v25, %v1707_v41  ;;  %v2367_v59 = vmul.f32 %v2365_v0, %v6048_v48  ;;  %v2366_v22 = vmul.f32 %v2365_v0, %v6046_v46 }
 0x295   : > { %v6023_v52 = vpop.permute.xlu1 %1767  ;;  %v6025_v55 = vpop.permute.xlu0 %1765  ;;  %v1987_v61 = vstv %s6076_s28  ;;  %s6190_s28 = sld [smem:[#allocation8 + $0xa7]] }
 0x296   : > { %v1772_v41 = vadd.f32 %v6023_v52, %v5892_v45  ;;  %v1771_v51 = vadd.f32 %v6025_v55, %v5894_v39  ;;  %v1993_v45 = vstv %s6088_s26  ;;  %s6210_s26 = sld [smem:[#allocation8 + $0xcb]] }
 0x297   : > { %2224 = vrot.lane.b32.xlu1 %v2219_v28, %s7406_s10  ;;  %2222 = vrot.lane.b32.xlu0 %v2218_v62, %s7406_s10  ;;  %v2381_v62 = vmul.f32 %v2379_v63, %v6048_v48  ;;  %v2421_v63 = vstv %s6110_s25  ;;  %s4131_s25 = sld [smem:[#allocation8 + $0x19]] }
 0x299   : > { %v6032_v34 = vpop.permute.xlu1 %1781  ;;  %v6034_v60 = vpop.permute.xlu0 %1779 }
 0x29a   : > { %v1786_v39 = vadd.f32 %v6032_v34, %v5912_v38  ;;  %v1785_v52 = vadd.f32 %v6034_v60, %v5914_v36  ;;  %v1995_v34 = vmul.f32 %v1993_v45, %v5817_v7  ;;  %v1994_v36 = vmul.f32 %v1993_v45, %v5815_v2 }
 0x29b   : > { %2238 = vrot.lane.b32.xlu1 %v2233_v3, %s7406_s10  ;;  %2236 = vrot.lane.b32.xlu0 %v2232_v42, %s7406_s10  ;;  %v2393_v3 = vstv %s6084_s14  ;;  %v1999_v60 = vstv %s6101_s7  ;;  %s6197_s14 = sld [smem:[#allocation8 + $0x10e]]  ;;  %s4122_s7 = sld [smem:[#allocation8 + $0x113]] }
 0x29c   : > { %v2395_v23 = vmul.f32 %v2393_v3, %v6048_v48 }
 0x29d   : > { %v6040_v13 = vpop.permute.xlu1 %1795  ;;  %v6042_v43 = vpop.permute.xlu0 %1793 }
 0x29f   : > { %2252 = vrot.lane.b32.xlu1 %v2247_v29, %s7406_s10  ;;  %2250 = vrot.lane.b32.xlu0 %v2246_v58, %s7406_s10  ;;  %v1989_v29 = vmul.f32 %v1987_v61, %v5817_v7  ;;  %v1988_v58 = vmul.f32 %v1987_v61, %v5815_v2 }
 0x2a1   : > { %v6052_v49 = vpop.permute.xlu1 %1809  ;;  %v6054_v6 = vpop.permute.xlu0 %1807 }
 0x2a3   : > { %2316 = vrot.lane.b32.xlu1 %v2311_v40, %s4485_s15  ;;  %2314 = vrot.lane.b32.xlu0 %v2310_v56, %s4485_s15 }
 0x2a5   : > { %v6060_v19 = vpop.permute.xlu1 %1823  ;;  %v6062_v33 = vpop.permute.xlu0 %1821 }
 0x2a6   : > { %v1827_v45 = vadd.f32 %v6062_v33, %v5974_v31  ;;  %v2017_v33 = vstv %s6157_s17  ;;  %s4136_s17 = sld [smem:[#allocation8 + $0xcd]] }
 0x2a7   : > { %2330 = vrot.lane.b32.xlu1 %v2325_v54, %s4485_s15  ;;  %2328 = vrot.lane.b32.xlu0 %v2324_v26, %s4485_s15  ;;  %v2394_v54 = vmul.f32 %v2393_v3, %v6046_v46  ;;  %v2407_v26 = vstv %s6096_s29  ;;  %v2423_v3 = vmul.f32 %v2421_v63, %v6048_v48  ;;  %s6228_s29 = sld [smem:[#allocation8 + $0xef]] }
 0x2a9   : > { %v6068_v57 = vpop.permute.xlu1 %1837  ;;  %v6070_v8 = vpop.permute.xlu0 %1835 }
 0x2ab   : > { %2344 = vrot.lane.b32.xlu1 %v2339_v1, %s4485_s15  ;;  %2342 = vrot.lane.b32.xlu0 %v2338_v37, %s4485_s15  ;;  %v1800_v1 = vadd.f32 %v6040_v13, %v5932_v14  ;;  %v1799_v37 = vadd.f32 %v6042_v43, %v5934_v11  ;;  %v2001_v13 = vmul.f32 %v1999_v60, %v5817_v7  ;;  %v2005_v43 = vstv %s6117_s12  ;;  %s4132_s12 = sld [smem:[#allocation8 + $0x3d]] }
 0x2ac   : > { %v2000_v11 = vmul.f32 %v1999_v60, %v5815_v2 }
 0x2ad   : > { %v6078_v16 = vpop.permute.xlu1 %1851  ;;  %v6080_v9 = vpop.permute.xlu0 %1849 }
 0x2af   : > { %2358 = vrot.lane.b32.xlu1 %v2353_v44, %s4485_s15  ;;  %2356 = vrot.lane.b32.xlu0 %v2352_v15, %s4485_s15 }
 0x2b1   : > { %v6090_v53 = vpop.permute.xlu1 %1865  ;;  %v6092_v20 = vpop.permute.xlu0 %1863 }
 0x2b3   : > { %2372 = vrot.lane.b32.xlu1 %v2367_v59, %s4485_s15  ;;  %2370 = vrot.lane.b32.xlu0 %v2366_v22, %s4485_s15  ;;  %v2409_v59 = vmul.f32 %v2407_v26, %v6048_v48  ;;  %v2408_v22 = vmul.f32 %v2407_v26, %v6046_v46  ;;  %v2449_v26 = vstv %s6150_s9  ;;  %s4135_s9 = sld [smem:[#allocation8 + $0xa9]] }
 0x2b5   : > { %v1880_v25 = vpop.permute.xlu1 %1879  ;;  %v1878_v28 = vpop.permute.xlu0 %1877 }
 0x2b6   : > { %v1884_v42 = vadd.f32 %v1880_v25, %v1772_v41  ;;  %v1883_v24 = vadd.f32 %v1878_v28, %v1771_v51  ;;  %v1814_v41 = vadd.f32 %v6052_v49, %v5952_v35  ;;  %v1813_v51 = vadd.f32 %v6054_v6, %v5954_v27 }
 0x2b7   : > { %2386 = vrot.lane.b32.xlu1 %v2381_v62, %s4485_s15  ;;  %2384 = vrot.lane.b32.xlu0 %v2380_v32, %s4485_s15  ;;  %v2007_v49 = vmul.f32 %v2005_v43, %v5817_v7  ;;  %v2006_v27 = vmul.f32 %v2005_v43, %v5815_v2  ;;  %v2011_v6 = vstv %s6137_s8  ;;  %s4134_s8 = sld [smem:[#allocation8 + $0x85]] }
 0x2b8   : > { %v6123_v55 = vadd.f32 %v1989_v29, %v1884_v42  ;;  %v6125_v12 = vadd.f32 %v1988_v58, %v1883_v24  ;;  %v2422_v42 = vmul.f32 %v2421_v63, %v6046_v46  ;;  %v2435_v24 = vstv %s6130_s13  ;;  %s4133_s13 = sld [smem:[#allocation8 + $0x61]] }
 0x2b9   : > { %v1894_v40 = vpop.permute.xlu1 %1893  ;;  %v1892_v56 = vpop.permute.xlu0 %1891  ;;  %v1828_v58 = vadd.f32 %v6060_v19, %v5972_v4  ;;  %v2013_v19 = vmul.f32 %v2011_v6, %v5817_v7  ;;  %v2012_v31 = vmul.f32 %v2011_v6, %v5815_v2  ;;  %v1856_v63 = vadd.f32 %v6078_v16, %v6008_v10 }
 0x2ba   : > { %v1898_v47 = vadd.f32 %v1894_v40, %v1786_v39  ;;  %v1897_v38 = vadd.f32 %v1892_v56, %v1785_v52  ;;  %v2029_v16 = vstv %s6197_s14  ;;  %s6327_s14 = sld [smem:[#allocation8 + $0x115]] }
 0x2bb   : > { %2400 = vrot.lane.b32.xlu1 %v2395_v23, %s4485_s15  ;;  %2398 = vrot.lane.b32.xlu0 %v2394_v54, %s4485_s15  ;;  %v2437_v23 = vmul.f32 %v2435_v24, %v6048_v48  ;;  %v2436_v54 = vmul.f32 %v2435_v24, %v6046_v46 }
 0x2bc   : > { %v6143_v30 = vadd.f32 %v1995_v34, %v1898_v47  ;;  %v6145_v44 = vadd.f32 %v1994_v36, %v1897_v38  ;;  %v1842_v38 = vadd.f32 %v6068_v57, %v5990_v18  ;;  %v1841_v34 = vadd.f32 %v6070_v8, %v5992_v50 }
 0x2bd   : > { %v1908_v15 = vpop.permute.xlu1 %1907  ;;  %v1906_v0 = vpop.permute.xlu0 %1905  ;;  %v2019_v57 = vmul.f32 %v2017_v33, %v5817_v7  ;;  %v2018_v50 = vmul.f32 %v2017_v33, %v5815_v2  ;;  %v2023_v8 = vstv %s6177_s16  ;;  %s6315_s16 = sld [smem:[#allocation8 + $0xf1]] }
 0x2be   : > { %v1912_v61 = vadd.f32 %v1908_v15, %v1800_v1  ;;  %v1911_v14 = vadd.f32 %v1906_v0, %v1799_v37  ;;  %v2451_v15 = vmul.f32 %v2449_v26, %v6048_v48  ;;  %v2450_v0 = vmul.f32 %v2449_v26, %v6046_v46 }
 0x2bf   : > { %2414 = vrot.lane.b32.xlu1 %v2409_v59, %s4485_s15  ;;  %2412 = vrot.lane.b32.xlu0 %v2408_v22, %s4485_s15  ;;  %v2463_v59 = vstv %s6170_s11  ;;  %v2025_v10 = vmul.f32 %v2023_v8, %v5817_v7  ;;  %s6307_s11 = sld [smem:[#allocation8 + $0x15]] }
 0x2c0   : > { %v6163_v25 = vadd.f32 %v2001_v13, %v1912_v61  ;;  %v6165_v28 = vadd.f32 %v2000_v11, %v1911_v14  ;;  %v1855_v61 = vadd.f32 %v6080_v9, %v6010_v5  ;;  %v2024_v5 = vmul.f32 %v2023_v8, %v5815_v2 }
 0x2c1   : > { %v1922_v62 = vpop.permute.xlu1 %1921  ;;  %v1920_v32 = vpop.permute.xlu0 %1919  ;;  %v1870_v9 = vadd.f32 %v6090_v53, %v6019_v17  ;;  %v2031_v17 = vmul.f32 %v2029_v16, %v5817_v7  ;;  %v2030_v53 = vmul.f32 %v2029_v16, %v5815_v2 }
 0x2c2   : > { %v1926_v29 = vadd.f32 %v1922_v62, %v1814_v41  ;;  %v1925_v35 = vadd.f32 %v1920_v32, %v1813_v51  ;;  %v2465_v41 = vmul.f32 %v2463_v59, %v6048_v48  ;;  %v2464_v51 = vmul.f32 %v2463_v59, %v6046_v46 }
 0x2c3   : > { %2428 = vrot.lane.b32.xlu1 %v2423_v3, %s7406_s10  ;;  %2426 = vrot.lane.b32.xlu0 %v2422_v42, %s7406_s10  ;;  %v2477_v62 = vstv %s6190_s28  ;;  %v1869_v42 = vadd.f32 %v6092_v20, %v6021_v21  ;;  %s6319_s28 = sld [smem:[#allocation8 + $0x39]] }
 0x2c4   : > { %v6183_v39 = vadd.f32 %v2007_v49, %v1926_v29  ;;  %v6185_v52 = vadd.f32 %v2006_v27, %v1925_v35  ;;  %v2479_v27 = vmul.f32 %v2477_v62, %v6048_v48  ;;  %v2478_v6 = vmul.f32 %v2477_v62, %v6046_v46 }
 0x2c5   : > { %v1936_v40 = vpop.permute.xlu1 %1935  ;;  %v1934_v56 = vpop.permute.xlu0 %1933 }
 0x2c6   : > { %v1940_v47 = vadd.f32 %v1936_v40, %v1828_v58  ;;  %v1939_v4 = vadd.f32 %v1934_v56, %v1827_v45  ;;  %v2491_v58 = vstv %s6210_s26  ;;  %s6332_s26 = sld [smem:[#allocation8 + $0x5d]] }
 0x2c7   : > { %2442 = vrot.lane.b32.xlu1 %v2437_v23, %s7406_s10  ;;  %2440 = vrot.lane.b32.xlu0 %v2436_v54, %s7406_s10  ;;  %v2493_v54 = vmul.f32 %v2491_v58, %v6048_v48  ;;  %v2492_v26 = vmul.f32 %v2491_v58, %v6046_v46  ;;  %v2653_v58 = vstv %s4136_s17  ;;  %s6408_s17 = sld [smem:[#allocation8 + $0xed]] }
 0x2c8   : > { %v6203_v36 = vadd.f32 %v2013_v19, %v1940_v47  ;;  %v6205_v60 = vadd.f32 %v2012_v31, %v1939_v4  ;;  %v2505_v47 = vstv %s6228_s29  ;;  %v2519_v31 = vstv %s4122_s7  ;;  %s6341_s29 = sld [smem:[#allocation8 + $0x1a]]  ;;  %s6348_s7 = sld [smem:[#allocation8 + $0x81]] }
 0x2c9   : > { %v1950_v1 = vpop.permute.xlu1 %1949  ;;  %v1948_v37 = vpop.permute.xlu0 %1947  ;;  %v2507_v4 = vmul.f32 %v2505_v47, %v6048_v48  ;;  %v2506_v19 = vmul.f32 %v2505_v47, %v6046_v46 }
 0x2ca   : > { %v1954_v22 = vadd.f32 %v1950_v1, %v1842_v38  ;;  %v1953_v18 = vadd.f32 %v1948_v37, %v1841_v34  ;;  %v2521_v34 = vmul.f32 %v2519_v31, %v6048_v48  ;;  %v2520_v1 = vmul.f32 %v2519_v31, %v6046_v46  ;;  %v6277_v37 = vld [vmem:[#allocation2 + $0x32] sm:$0xff] }
 0x2cb   : > { %2456 = vrot.lane.b32.xlu1 %v2451_v15, %s7406_s10  ;;  %2454 = vrot.lane.b32.xlu0 %v2450_v0, %s7406_s10  ;;  %v6279_v15 = vld [vmem:[#allocation2 + $0x3a] sm:$0xff]  ;;  %v2583_v0 = vstv %s4131_s25  ;;  %v2654_v47 = vmul.f32 %v2653_v58, %v6277_v37  ;;  %s6361_s25 = sld [smem:[#allocation8 + $0x3e]] }
 0x2cc   : > { %v6221_v14 = vadd.f32 %v2019_v57, %v1954_v22  ;;  %v6223_v13 = vadd.f32 %v2018_v50, %v1953_v18  ;;  %v2585_v18 = vmul.f32 %v2583_v0, %v6279_v15  ;;  %v2584_v57 = vmul.f32 %v2583_v0, %v6277_v37 }
 0x2cd   : > { %v1964_v11 = vpop.permute.xlu1 %1963  ;;  %v1962_v43 = vpop.permute.xlu0 %1961  ;;  %v2597_v50 = vstv %s4132_s12  ;;  %s6368_s12 = sld [smem:[#allocation8 + $0xa5]] }
 0x2ce   : > { %v1968_v32 = vadd.f32 %v1964_v11, %v1856_v63  ;;  %v1967_v3 = vadd.f32 %v1962_v43, %v1855_v61  ;;  %v2599_v61 = vmul.f32 %v2597_v50, %v6279_v15  ;;  %v2598_v11 = vmul.f32 %v2597_v50, %v6277_v37 }
 0x2cf   : > { %2470 = vrot.lane.b32.xlu1 %v2465_v41, %s7406_s10  ;;  %2468 = vrot.lane.b32.xlu0 %v2464_v51, %s7406_s10  ;;  %v2611_v43 = vstv %s4133_s13  ;;  %s6381_s13 = sld [smem:[#allocation8 + $0x62]] }
 0x2d0   : > { %v6239_v24 = vadd.f32 %v2025_v10, %v1968_v32  ;;  %v6241_v29 = vadd.f32 %v2024_v5, %v1967_v3  ;;  %v2613_v62 = vmul.f32 %v2611_v43, %v6279_v15  ;;  %v2612_v32 = vmul.f32 %v2611_v43, %v6277_v37 }
 0x2d1   : > { %v1978_v35 = vpop.permute.xlu1 %1977  ;;  %v1976_v49 = vpop.permute.xlu0 %1975  ;;  %v2625_v3 = vstv %s4134_s8  ;;  %s6388_s8 = sld [smem:[#allocation8 + $0xc9]] }
 0x2d2   : > { %v1982_v45 = vadd.f32 %v1978_v35, %v1870_v9  ;;  %v1981_v40 = vadd.f32 %v1976_v49, %v1869_v42  ;;  %v2627_v16 = vmul.f32 %v2625_v3, %v6279_v15  ;;  %v2626_v9 = vmul.f32 %v2625_v3, %v6277_v37 }
 0x2d3   : > { %2484 = vrot.lane.b32.xlu1 %v2479_v27, %s7406_s10  ;;  %2482 = vrot.lane.b32.xlu0 %v2478_v6, %s7406_s10  ;;  %v2639_v42 = vstv %s4135_s9  ;;  %s6401_s9 = sld [smem:[#allocation8 + $0x86]] }
 0x2d4   : > { %v6250_v21 = vadd.f32 %v2031_v17, %v1982_v45  ;;  %v6252_v20 = vadd.f32 %v2030_v53, %v1981_v40  ;;  %v2641_v27 = vmul.f32 %v2639_v42, %v6279_v15  ;;  %v2640_v6 = vmul.f32 %v2639_v42, %v6277_v37 }
 0x2d5   : > { %v6254_v56 = vpop.permute.xlu1 %2042  ;;  %v6256_v23 = vpop.permute.xlu0 %2040  ;;  %v2261_v45 = vstv %s6307_s11  ;;  %s6421_s11 = sld [smem:[#allocation8 + $0xaa]] }
 0x2d6   : > { %v2047_v40 = vadd.f32 %v6254_v56, %v6123_v55  ;;  %v2046_v17 = vadd.f32 %v6256_v23, %v6125_v12  ;;  %v2267_v55 = vstv %s6319_s28  ;;  %s6441_s28 = sld [smem:[#allocation8 + $0xce]] }
 0x2d7   : > { %2498 = vrot.lane.b32.xlu1 %v2493_v54, %s7406_s10  ;;  %2496 = vrot.lane.b32.xlu0 %v2492_v26, %s7406_s10  ;;  %v2655_v26 = vmul.f32 %v2653_v58, %v6279_v15  ;;  %v2695_v58 = vstv %s6341_s29  ;;  %s4155_s29 = sld [smem:[#allocation8 + $0x1c]] }
 0x2d9   : > { %v6263_v2 = vpop.permute.xlu1 %2056  ;;  %v6265_v7 = vpop.permute.xlu0 %2054 }
 0x2da   : > { %v2061_v12 = vadd.f32 %v6263_v2, %v6143_v30  ;;  %v2060_v56 = vadd.f32 %v6265_v7, %v6145_v44  ;;  %v2269_v2 = vmul.f32 %v2267_v55, %v6048_v48  ;;  %v2268_v44 = vmul.f32 %v2267_v55, %v6046_v46 }
 0x2db   : > { %2512 = vrot.lane.b32.xlu1 %v2507_v4, %s7406_s10  ;;  %2510 = vrot.lane.b32.xlu0 %v2506_v19, %s7406_s10  ;;  %v2667_v4 = vstv %s6315_s16  ;;  %v2273_v7 = vstv %s6332_s26  ;;  %s6428_s16 = sld [smem:[#allocation8 + $0x111]]  ;;  %s4146_s26 = sld [smem:[#allocation8 + $0x116]] }
 0x2dc   : > { %v2669_v50 = vmul.f32 %v2667_v4, %v6279_v15 }
 0x2dd   : > { %v6271_v33 = vpop.permute.xlu1 %2070  ;;  %v6273_v38 = vpop.permute.xlu0 %2068 }
 0x2df   : > { %2526 = vrot.lane.b32.xlu1 %v2521_v34, %s7406_s10  ;;  %2524 = vrot.lane.b32.xlu0 %v2520_v1, %s7406_s10  ;;  %v2263_v34 = vmul.f32 %v2261_v45, %v6048_v48  ;;  %v2262_v1 = vmul.f32 %v2261_v45, %v6046_v46 }
 0x2e1   : > { %v6283_v59 = vpop.permute.xlu1 %2084  ;;  %v6285_v22 = vpop.permute.xlu0 %2082 }
 0x2e3   : > { %2590 = vrot.lane.b32.xlu1 %v2585_v18, %s4485_s15  ;;  %2588 = vrot.lane.b32.xlu0 %v2584_v57, %s4485_s15 }
 0x2e5   : > { %v6291_v8 = vpop.permute.xlu1 %2098  ;;  %v6293_v63 = vpop.permute.xlu0 %2096 }
 0x2e6   : > { %v2102_v55 = vadd.f32 %v6293_v63, %v6205_v60  ;;  %v2291_v63 = vstv %s6388_s8  ;;  %s4160_s8 = sld [smem:[#allocation8 + $0xd0]] }
 0x2e7   : > { %2604 = vrot.lane.b32.xlu1 %v2599_v61, %s4485_s15  ;;  %2602 = vrot.lane.b32.xlu0 %v2598_v11, %s4485_s15  ;;  %v2668_v61 = vmul.f32 %v2667_v4, %v6277_v37  ;;  %v2681_v11 = vstv %s6327_s14  ;;  %v2697_v4 = vmul.f32 %v2695_v58, %v6279_v15  ;;  %s6459_s14 = sld [smem:[#allocation8 + $0xf2]] }
 0x2e9   : > { %v6299_v41 = vpop.permute.xlu1 %2112  ;;  %v6301_v51 = vpop.permute.xlu0 %2110 }
 0x2eb   : > { %2618 = vrot.lane.b32.xlu1 %v2613_v62, %s4485_s15  ;;  %2616 = vrot.lane.b32.xlu0 %v2612_v32, %s4485_s15  ;;  %v2075_v62 = vadd.f32 %v6271_v33, %v6163_v25  ;;  %v2074_v32 = vadd.f32 %v6273_v38, %v6165_v28  ;;  %v2275_v33 = vmul.f32 %v2273_v7, %v6048_v48  ;;  %v2279_v38 = vstv %s6348_s7  ;;  %s4156_s7 = sld [smem:[#allocation8 + $0x40]] }
 0x2ec   : > { %v2274_v28 = vmul.f32 %v2273_v7, %v6046_v46 }
 0x2ed   : > { %v6309_v10 = vpop.permute.xlu1 %2126  ;;  %v6311_v5 = vpop.permute.xlu0 %2124 }
 0x2ef   : > { %2632 = vrot.lane.b32.xlu1 %v2627_v16, %s4485_s15  ;;  %2630 = vrot.lane.b32.xlu0 %v2626_v9, %s4485_s15 }
 0x2f1   : > { %v6321_v35 = vpop.permute.xlu1 %2140  ;;  %v6323_v49 = vpop.permute.xlu0 %2138 }
 0x2f3   : > { %2646 = vrot.lane.b32.xlu1 %v2641_v27, %s4485_s15  ;;  %2644 = vrot.lane.b32.xlu0 %v2640_v6, %s4485_s15  ;;  %v2683_v27 = vmul.f32 %v2681_v11, %v6279_v15  ;;  %v2682_v6 = vmul.f32 %v2681_v11, %v6277_v37  ;;  %v2723_v11 = vstv %s6381_s13  ;;  %s4159_s13 = sld [smem:[#allocation8 + $0xac]] }
 0x2f5   : > { %v2155_v53 = vpop.permute.xlu1 %2154  ;;  %v2153_v54 = vpop.permute.xlu0 %2152 }
 0x2f6   : > { %v2159_v19 = vadd.f32 %v2155_v53, %v2047_v40  ;;  %v2158_v31 = vadd.f32 %v2153_v54, %v2046_v17  ;;  %v2089_v40 = vadd.f32 %v6283_v59, %v6183_v39  ;;  %v2088_v17 = vadd.f32 %v6285_v22, %v6185_v52 }
 0x2f7   : > { %2660 = vrot.lane.b32.xlu1 %v2655_v26, %s4485_s15  ;;  %2658 = vrot.lane.b32.xlu0 %v2654_v47, %s4485_s15  ;;  %v2281_v59 = vmul.f32 %v2279_v38, %v6048_v48  ;;  %v2280_v52 = vmul.f32 %v2279_v38, %v6046_v46  ;;  %v2285_v22 = vstv %s6368_s12  ;;  %s4158_s12 = sld [smem:[#allocation8 + $0x88]] }
 0x2f8   : > { %v6354_v23 = vadd.f32 %v2263_v34, %v2159_v19  ;;  %v6356_v0 = vadd.f32 %v2262_v1, %v2158_v31  ;;  %v2696_v19 = vmul.f32 %v2695_v58, %v6277_v37  ;;  %v2709_v31 = vstv %s6361_s25  ;;  %s4157_s25 = sld [smem:[#allocation8 + $0x64]] }
 0x2f9   : > { %v2169_v18 = vpop.permute.xlu1 %2168  ;;  %v2167_v57 = vpop.permute.xlu0 %2166  ;;  %v2103_v1 = vadd.f32 %v6291_v8, %v6203_v36  ;;  %v2287_v8 = vmul.f32 %v2285_v22, %v6048_v48  ;;  %v2286_v60 = vmul.f32 %v2285_v22, %v6046_v46  ;;  %v2131_v58 = vadd.f32 %v6309_v10, %v6239_v24 }
 0x2fa   : > { %v2173_v43 = vadd.f32 %v2169_v18, %v2061_v12  ;;  %v2172_v30 = vadd.f32 %v2167_v57, %v2060_v56  ;;  %v2303_v10 = vstv %s6428_s16  ;;  %s6558_s16 = sld [smem:[#allocation8 + $0x118]] }
 0x2fb   : > { %2674 = vrot.lane.b32.xlu1 %v2669_v50, %s4485_s15  ;;  %2672 = vrot.lane.b32.xlu0 %v2668_v61, %s4485_s15  ;;  %v2711_v50 = vmul.f32 %v2709_v31, %v6279_v15  ;;  %v2710_v61 = vmul.f32 %v2709_v31, %v6277_v37 }
 0x2fc   : > { %v6374_v3 = vadd.f32 %v2269_v2, %v2173_v43  ;;  %v6376_v16 = vadd.f32 %v2268_v44, %v2172_v30  ;;  %v2117_v30 = vadd.f32 %v6299_v41, %v6221_v14  ;;  %v2116_v2 = vadd.f32 %v6301_v51, %v6223_v13 }
 0x2fd   : > { %v2183_v9 = vpop.permute.xlu1 %2182  ;;  %v2181_v42 = vpop.permute.xlu0 %2180  ;;  %v2293_v41 = vmul.f32 %v2291_v63, %v6048_v48  ;;  %v2292_v13 = vmul.f32 %v2291_v63, %v6046_v46  ;;  %v2297_v51 = vstv %s6408_s17  ;;  %s6546_s17 = sld [smem:[#allocation8 + $0xf4]] }
 0x2fe   : > { %v2187_v45 = vadd.f32 %v2183_v9, %v2075_v62  ;;  %v2186_v25 = vadd.f32 %v2181_v42, %v2074_v32  ;;  %v2725_v9 = vmul.f32 %v2723_v11, %v6279_v15  ;;  %v2724_v42 = vmul.f32 %v2723_v11, %v6277_v37 }
 0x2ff   : > { %2688 = vrot.lane.b32.xlu1 %v2683_v27, %s4485_s15  ;;  %2686 = vrot.lane.b32.xlu0 %v2682_v6, %s4485_s15  ;;  %v2737_v27 = vstv %s6401_s9  ;;  %v2299_v24 = vmul.f32 %v2297_v51, %v6048_v48  ;;  %s6538_s9 = sld [smem:[#allocation8 + $0x18]] }
 0x300   : > { %v6394_v53 = vadd.f32 %v2275_v33, %v2187_v45  ;;  %v6396_v54 = vadd.f32 %v2274_v28, %v2186_v25  ;;  %v2130_v45 = vadd.f32 %v6311_v5, %v6241_v29  ;;  %v2298_v29 = vmul.f32 %v2297_v51, %v6046_v46 }
 0x301   : > { %v2197_v26 = vpop.permute.xlu1 %2196  ;;  %v2195_v47 = vpop.permute.xlu0 %2194  ;;  %v2145_v5 = vadd.f32 %v6321_v35, %v6250_v21  ;;  %v2305_v21 = vmul.f32 %v2303_v10, %v6048_v48  ;;  %v2304_v35 = vmul.f32 %v2303_v10, %v6046_v46 }
 0x302   : > { %v2201_v34 = vadd.f32 %v2197_v26, %v2089_v40  ;;  %v2200_v39 = vadd.f32 %v2195_v47, %v2088_v17  ;;  %v2739_v40 = vmul.f32 %v2737_v27, %v6279_v15  ;;  %v2738_v17 = vmul.f32 %v2737_v27, %v6277_v37 }
 0x303   : > { %2702 = vrot.lane.b32.xlu1 %v2697_v4, %s7406_s10  ;;  %2700 = vrot.lane.b32.xlu0 %v2696_v19, %s7406_s10  ;;  %v2751_v26 = vstv %s6421_s11  ;;  %v2144_v19 = vadd.f32 %v6323_v49, %v6252_v20  ;;  %s6550_s11 = sld [smem:[#allocation8 + $0x3c]] }
 0x304   : > { %v6414_v12 = vadd.f32 %v2281_v59, %v2201_v34  ;;  %v6416_v56 = vadd.f32 %v2280_v52, %v2200_v39  ;;  %v2753_v52 = vmul.f32 %v2751_v26, %v6279_v15  ;;  %v2752_v22 = vmul.f32 %v2751_v26, %v6277_v37 }
 0x305   : > { %v2211_v18 = vpop.permute.xlu1 %2210  ;;  %v2209_v57 = vpop.permute.xlu0 %2208 }
 0x306   : > { %v2215_v43 = vadd.f32 %v2211_v18, %v2103_v1  ;;  %v2214_v36 = vadd.f32 %v2209_v57, %v2102_v55  ;;  %v2765_v1 = vstv %s6441_s28  ;;  %s6563_s28 = sld [smem:[#allocation8 + $0x60]] }
 0x307   : > { %2716 = vrot.lane.b32.xlu1 %v2711_v50, %s7406_s10  ;;  %2714 = vrot.lane.b32.xlu0 %v2710_v61, %s7406_s10  ;;  %v2767_v61 = vmul.f32 %v2765_v1, %v6279_v15  ;;  %v2766_v11 = vmul.f32 %v2765_v1, %v6277_v37  ;;  %v2928_v1 = vstv %s4160_s8  ;;  %s6639_s8 = sld [smem:[#allocation8 + $0xf0]] }
 0x308   : > { %v6434_v44 = vadd.f32 %v2287_v8, %v2215_v43  ;;  %v6436_v7 = vadd.f32 %v2286_v60, %v2214_v36  ;;  %v2779_v43 = vstv %s6459_s14  ;;  %v2793_v60 = vstv %s4146_s26  ;;  %s6572_s14 = sld [smem:[#allocation8 + $0x1d]]  ;;  %s6579_s26 = sld [smem:[#allocation8 + $0x84]] }
 0x309   : > { %v2225_v62 = vpop.permute.xlu1 %2224  ;;  %v2223_v32 = vpop.permute.xlu0 %2222  ;;  %v2781_v36 = vmul.f32 %v2779_v43, %v6279_v15  ;;  %v2780_v8 = vmul.f32 %v2779_v43, %v6277_v37 }
 0x30a   : > { %v2229_v6 = vadd.f32 %v2225_v62, %v2117_v30  ;;  %v2228_v14 = vadd.f32 %v2223_v32, %v2116_v2  ;;  %v2795_v2 = vmul.f32 %v2793_v60, %v6279_v15  ;;  %v2794_v62 = vmul.f32 %v2793_v60, %v6277_v37  ;;  %v6508_v32 = vld [vmem:[#allocation2 + $0x48] sm:$0xff] }
 0x30b   : > { %2730 = vrot.lane.b32.xlu1 %v2725_v9, %s7406_s10  ;;  %2728 = vrot.lane.b32.xlu0 %v2724_v42, %s7406_s10  ;;  %v6510_v9 = vld [vmem:[#allocation2 + $0x50] sm:$0xff]  ;;  %v2858_v42 = vstv %s4155_s29  ;;  %v2929_v43 = vmul.f32 %v2928_v1, %v6508_v32  ;;  %s6592_s29 = sld [smem:[#allocation8 + $0x41]] }
 0x30c   : > { %v6452_v25 = vadd.f32 %v2293_v41, %v2229_v6  ;;  %v6454_v33 = vadd.f32 %v2292_v13, %v2228_v14  ;;  %v2860_v14 = vmul.f32 %v2858_v42, %v6510_v9  ;;  %v2859_v41 = vmul.f32 %v2858_v42, %v6508_v32 }
 0x30d   : > { %v2239_v28 = vpop.permute.xlu1 %2238  ;;  %v2237_v38 = vpop.permute.xlu0 %2236  ;;  %v2872_v13 = vstv %s4156_s7  ;;  %s6599_s7 = sld [smem:[#allocation8 + $0xa8]] }
 0x30e   : > { %v2243_v47 = vadd.f32 %v2239_v28, %v2131_v58  ;;  %v2242_v4 = vadd.f32 %v2237_v38, %v2130_v45  ;;  %v2874_v45 = vmul.f32 %v2872_v13, %v6510_v9  ;;  %v2873_v28 = vmul.f32 %v2872_v13, %v6508_v32 }
 0x30f   : > { %2744 = vrot.lane.b32.xlu1 %v2739_v40, %s7406_s10  ;;  %2742 = vrot.lane.b32.xlu0 %v2738_v17, %s7406_s10  ;;  %v2886_v38 = vstv %s4157_s25  ;;  %s6612_s25 = sld [smem:[#allocation8 + $0x65]] }
 0x310   : > { %v6470_v31 = vadd.f32 %v2299_v24, %v2243_v47  ;;  %v6472_v34 = vadd.f32 %v2298_v29, %v2242_v4  ;;  %v2888_v26 = vmul.f32 %v2886_v38, %v6510_v9  ;;  %v2887_v47 = vmul.f32 %v2886_v38, %v6508_v32 }
 0x311   : > { %v2253_v39 = vpop.permute.xlu1 %2252  ;;  %v2251_v59 = vpop.permute.xlu0 %2250  ;;  %v2900_v4 = vstv %s4158_s12  ;;  %s6619_s12 = sld [smem:[#allocation8 + $0xcc]] }
 0x312   : > { %v2257_v55 = vadd.f32 %v2253_v39, %v2145_v5  ;;  %v2256_v18 = vadd.f32 %v2251_v59, %v2144_v19  ;;  %v2902_v10 = vmul.f32 %v2900_v4, %v6510_v9  ;;  %v2901_v5 = vmul.f32 %v2900_v4, %v6508_v32 }
 0x313   : > { %2758 = vrot.lane.b32.xlu1 %v2753_v52, %s7406_s10  ;;  %2756 = vrot.lane.b32.xlu0 %v2752_v22, %s7406_s10  ;;  %v2914_v19 = vstv %s4159_s13  ;;  %s6632_s13 = sld [smem:[#allocation8 + $0x89]] }
 0x314   : > { %v6481_v20 = vadd.f32 %v2305_v21, %v2257_v55  ;;  %v6483_v49 = vadd.f32 %v2304_v35, %v2256_v18  ;;  %v2916_v52 = vmul.f32 %v2914_v19, %v6510_v9  ;;  %v2915_v22 = vmul.f32 %v2914_v19, %v6508_v32 }
 0x315   : > { %v6485_v57 = vpop.permute.xlu1 %2316  ;;  %v6487_v50 = vpop.permute.xlu0 %2314  ;;  %v2535_v55 = vstv %s6538_s9  ;;  %s6652_s9 = sld [smem:[#allocation8 + $0xad]] }
 0x316   : > { %v2321_v18 = vadd.f32 %v6485_v57, %v6354_v23  ;;  %v2320_v21 = vadd.f32 %v6487_v50, %v6356_v0  ;;  %v2541_v23 = vstv %s6550_s11  ;;  %s6672_s11 = sld [smem:[#allocation8 + $0xd1]] }
 0x317   : > { %2772 = vrot.lane.b32.xlu1 %v2767_v61, %s7406_s10  ;;  %2770 = vrot.lane.b32.xlu0 %v2766_v11, %s7406_s10  ;;  %v2930_v11 = vmul.f32 %v2928_v1, %v6510_v9  ;;  %v2970_v1 = vstv %s6572_s14  ;;  %s6710_s14 = sld [smem:[#allocation8 + $0x43]] }
 0x319   : > { %v6494_v46 = vpop.permute.xlu1 %2330  ;;  %v6496_v48 = vpop.permute.xlu0 %2328 }
 0x31a   : > { %v2335_v0 = vadd.f32 %v6494_v46, %v6374_v3  ;;  %v2334_v57 = vadd.f32 %v6496_v48, %v6376_v16  ;;  %v2543_v46 = vmul.f32 %v2541_v23, %v6279_v15  ;;  %v2542_v16 = vmul.f32 %v2541_v23, %v6277_v37 }
 0x31b   : > { %2786 = vrot.lane.b32.xlu1 %v2781_v36, %s7406_s10  ;;  %2784 = vrot.lane.b32.xlu0 %v2780_v8, %s7406_s10  ;;  %v2942_v36 = vstv %s6546_s17  ;;  %v2547_v48 = vstv %s6563_s28  ;;  %s6659_s17 = sld [smem:[#allocation8 + $0x114]]  ;;  %s6692_s28 = sld [smem:[#allocation8 + $0xf5]] }
 0x31c   : > { %v2944_v13 = vmul.f32 %v2942_v36, %v6510_v9 }
 0x31d   : > { %v6502_v63 = vpop.permute.xlu1 %2344  ;;  %v6504_v30 = vpop.permute.xlu0 %2342 }
 0x31f   : > { %2800 = vrot.lane.b32.xlu1 %v2795_v2, %s7406_s10  ;;  %2798 = vrot.lane.b32.xlu0 %v2794_v62, %s7406_s10  ;;  %v2537_v2 = vmul.f32 %v2535_v55, %v6279_v15  ;;  %v2536_v62 = vmul.f32 %v2535_v55, %v6277_v37 }
 0x321   : > { %v6514_v27 = vpop.permute.xlu1 %2358  ;;  %v6516_v6 = vpop.permute.xlu0 %2356 }
 0x323   : > { %2865 = vrot.lane.b32.xlu1 %v2860_v14, %s4485_s15  ;;  %2863 = vrot.lane.b32.xlu0 %v2859_v41, %s4485_s15 }
 0x325   : > { %v6522_v51 = vpop.permute.xlu1 %2372  ;;  %v6524_v58 = vpop.permute.xlu0 %2370 }
 0x326   : > { %v2376_v23 = vadd.f32 %v6524_v58, %v6436_v7  ;;  %v2565_v58 = vstv %s6619_s12  ;;  %s6775_s12 = sld [smem:[#allocation8 + $0x68]] }
 0x327   : > { %2879 = vrot.lane.b32.xlu1 %v2874_v45, %s4485_s15  ;;  %2877 = vrot.lane.b32.xlu0 %v2873_v28, %s4485_s15  ;;  %v2943_v45 = vmul.f32 %v2942_v36, %v6508_v32  ;;  %v2956_v28 = vstv %s6558_s16  ;;  %v2972_v36 = vmul.f32 %v2970_v1, %v6510_v9  ;;  %s6690_s16 = sld [smem:[#allocation8 + $0x1f]] }
 0x329   : > { %v6530_v40 = vpop.permute.xlu1 %2386  ;;  %v6532_v17 = vpop.permute.xlu0 %2384 }
 0x32b   : > { %2893 = vrot.lane.b32.xlu1 %v2888_v26, %s4485_s15  ;;  %2891 = vrot.lane.b32.xlu0 %v2887_v47, %s4485_s15  ;;  %v2349_v26 = vadd.f32 %v6502_v63, %v6394_v53  ;;  %v2348_v47 = vadd.f32 %v6504_v30, %v6396_v54  ;;  %v2549_v63 = vmul.f32 %v2547_v48, %v6279_v15  ;;  %v2553_v30 = vstv %s6579_s26  ;;  %s6730_s26 = sld [smem:[#allocation8 + $0x20]] }
 0x32c   : > { %v2548_v54 = vmul.f32 %v2547_v48, %v6277_v37 }
 0x32d   : > { %v6540_v24 = vpop.permute.xlu1 %2400  ;;  %v6542_v29 = vpop.permute.xlu0 %2398 }
 0x32f   : > { %2907 = vrot.lane.b32.xlu1 %v2902_v10, %s4485_s15  ;;  %2905 = vrot.lane.b32.xlu0 %v2901_v5, %s4485_s15 }
 0x331   : > { %v6552_v39 = vpop.permute.xlu1 %2414  ;;  %v6554_v59 = vpop.permute.xlu0 %2412 }
 0x333   : > { %2921 = vrot.lane.b32.xlu1 %v2916_v52, %s4485_s15  ;;  %2919 = vrot.lane.b32.xlu0 %v2915_v22, %s4485_s15  ;;  %v2958_v52 = vmul.f32 %v2956_v28, %v6510_v9  ;;  %v2957_v22 = vmul.f32 %v2956_v28, %v6508_v32  ;;  %v2998_v28 = vstv %s6612_s25  ;;  %s6764_s25 = sld [smem:[#allocation8 + $0x8b]] }
 0x335   : > { %v2429_v35 = vpop.permute.xlu1 %2428  ;;  %v2427_v61 = vpop.permute.xlu0 %2426 }
 0x336   : > { %v2433_v8 = vadd.f32 %v2429_v35, %v2321_v18  ;;  %v2432_v60 = vadd.f32 %v2427_v61, %v2320_v21  ;;  %v2363_v18 = vadd.f32 %v6514_v27, %v6414_v12  ;;  %v2362_v21 = vadd.f32 %v6516_v6, %v6416_v56 }
 0x337   : > { %2935 = vrot.lane.b32.xlu1 %v2930_v11, %s4485_s15  ;;  %2933 = vrot.lane.b32.xlu0 %v2929_v43, %s4485_s15  ;;  %v2555_v27 = vmul.f32 %v2553_v30, %v6279_v15  ;;  %v2554_v56 = vmul.f32 %v2553_v30, %v6277_v37  ;;  %v2559_v6 = vstv %s6599_s7  ;;  %s6754_s7 = sld [smem:[#allocation8 + $0x44]] }
 0x338   : > { %v6585_v50 = vadd.f32 %v2537_v2, %v2433_v8  ;;  %v6587_v42 = vadd.f32 %v2536_v62, %v2432_v60  ;;  %v2971_v8 = vmul.f32 %v2970_v1, %v6508_v32  ;;  %v2984_v60 = vstv %s6592_s29  ;;  %s4181_s29 = sld [smem:[#allocation8 + $0x67]] }
 0x339   : > { %v2443_v14 = vpop.permute.xlu1 %2442  ;;  %v2441_v41 = vpop.permute.xlu0 %2440  ;;  %v2377_v62 = vadd.f32 %v6522_v51, %v6434_v44  ;;  %v2561_v51 = vmul.f32 %v2559_v6, %v6279_v15  ;;  %v2560_v7 = vmul.f32 %v2559_v6, %v6277_v37  ;;  %v2405_v1 = vadd.f32 %v6540_v24, %v6470_v31 }
 0x33a   : > { %v2447_v38 = vadd.f32 %v2443_v14, %v2335_v0  ;;  %v2446_v3 = vadd.f32 %v2441_v41, %v2334_v57  ;;  %v2577_v24 = vstv %s6659_s17  ;;  %s6809_s17 = sld [smem:[#allocation8 + $0xaf]] }
 0x33b   : > { %2949 = vrot.lane.b32.xlu1 %v2944_v13, %s4485_s15  ;;  %2947 = vrot.lane.b32.xlu0 %v2943_v45, %s4485_s15  ;;  %v2986_v13 = vmul.f32 %v2984_v60, %v6510_v9  ;;  %v2985_v45 = vmul.f32 %v2984_v60, %v6508_v32 }
 0x33c   : > { %v6605_v4 = vadd.f32 %v2543_v46, %v2447_v38  ;;  %v6607_v10 = vadd.f32 %v2542_v16, %v2446_v3  ;;  %v2391_v3 = vadd.f32 %v6530_v40, %v6452_v25  ;;  %v2390_v46 = vadd.f32 %v6532_v17, %v6454_v33 }
 0x33d   : > { %v2457_v5 = vpop.permute.xlu1 %2456  ;;  %v2455_v19 = vpop.permute.xlu0 %2454  ;;  %v2567_v40 = vmul.f32 %v2565_v58, %v6279_v15  ;;  %v2566_v33 = vmul.f32 %v2565_v58, %v6277_v37  ;;  %v2571_v17 = vstv %s6639_s8  ;;  %s6790_s8 = sld [smem:[#allocation8 + $0x1b]] }
 0x33e   : > { %v2461_v55 = vadd.f32 %v2457_v5, %v2349_v26  ;;  %v2460_v53 = vadd.f32 %v2455_v19, %v2348_v47  ;;  %v3000_v5 = vmul.f32 %v2998_v28, %v6510_v9  ;;  %v2999_v19 = vmul.f32 %v2998_v28, %v6508_v32  ;;  %v6726_v28 = vld [vmem:[#allocation2 + $0x49] sm:$0xff] }
 0x33f   : > { %2963 = vrot.lane.b32.xlu1 %v2958_v52, %s4485_s15  ;;  %2961 = vrot.lane.b32.xlu0 %v2957_v22, %s4485_s15  ;;  %v3012_v52 = vstv %s6632_s13  ;;  %v2573_v31 = vmul.f32 %v2571_v17, %v6279_v15  ;;  %s6786_s13 = sld [smem:[#allocation8 + $0x22]] }
 0x340   : > { %v6625_v35 = vadd.f32 %v2549_v63, %v2461_v55  ;;  %v6627_v61 = vadd.f32 %v2548_v54, %v2460_v53  ;;  %v2404_v55 = vadd.f32 %v6542_v29, %v6472_v34  ;;  %v2572_v34 = vmul.f32 %v2571_v17, %v6277_v37 }
 0x341   : > { %v2471_v11 = vpop.permute.xlu1 %2470  ;;  %v2469_v43 = vpop.permute.xlu0 %2468  ;;  %v2419_v29 = vadd.f32 %v6552_v39, %v6481_v20  ;;  %v2579_v20 = vmul.f32 %v2577_v24, %v6279_v15  ;;  %v3160_v17 = vstv %s4181_s29  ;;  %s6856_s29 = sld [smem:[#allocation8 + $0xab]] }
 0x342   : > { %v2475_v2 = vadd.f32 %v2471_v11, %v2363_v18  ;;  %v2474_v12 = vadd.f32 %v2469_v43, %v2362_v21  ;;  %v3014_v18 = vmul.f32 %v3012_v52, %v6510_v9  ;;  %v3013_v21 = vmul.f32 %v3012_v52, %v6508_v32 }
 0x343   : > { %2977 = vrot.lane.b32.xlu1 %v2972_v36, %s7406_s10  ;;  %2975 = vrot.lane.b32.xlu0 %v2971_v8, %s7406_s10  ;;  %v3026_v11 = vstv %s6652_s9  ;;  %v2418_v8 = vadd.f32 %v6554_v59, %v6483_v49  ;;  %v2578_v49 = vmul.f32 %v2577_v24, %v6277_v37  ;;  %v3132_v37 = vstv %s6690_s16  ;;  %s6801_s9 = sld [smem:[#allocation8 + $0x3f]]  ;;  %s6825_s16 = sld [smem:[#allocation8 + $0x8c]] }
 0x344   : > { %v6645_v0 = vadd.f32 %v2555_v27, %v2475_v2  ;;  %v6647_v57 = vadd.f32 %v2554_v56, %v2474_v12  ;;  %v3028_v56 = vmul.f32 %v3026_v11, %v6510_v9  ;;  %v3027_v6 = vmul.f32 %v3026_v11, %v6508_v32 }
 0x345   : > { %v2485_v14 = vpop.permute.xlu1 %2484  ;;  %v2483_v41 = vpop.permute.xlu0 %2482  ;;  %v3244_v52 = vstv %s6730_s26  ;;  %s6849_s26 = sld [smem:[#allocation8 + $0x46]] }
 0x346   : > { %v2489_v38 = vadd.f32 %v2485_v14, %v2377_v62  ;;  %v2488_v44 = vadd.f32 %v2483_v41, %v2376_v23  ;;  %v3040_v62 = vstv %s6672_s11  ;;  %s6817_s11 = sld [smem:[#allocation8 + $0x63]] }
 0x347   : > { %2991 = vrot.lane.b32.xlu1 %v2986_v13, %s7406_s10  ;;  %2989 = vrot.lane.b32.xlu0 %v2985_v45, %s7406_s10  ;;  %v3042_v45 = vmul.f32 %v3040_v62, %v6510_v9  ;;  %v3041_v15 = vmul.f32 %v3040_v62, %v6508_v32 }
 0x348   : > { %v6665_v16 = vadd.f32 %v2561_v51, %v2489_v38  ;;  %v6667_v48 = vadd.f32 %v2560_v7, %v2488_v44  ;;  %v3054_v38 = vstv %s6692_s28  ;;  %v3133_v7 = vmul.f32 %v3132_v37, %v6726_v28  ;;  %s6869_s28 = sld [smem:[#allocation8 + $0x23]] }
 0x349   : > { %v2499_v26 = vpop.permute.xlu1 %2498  ;;  %v2497_v47 = vpop.permute.xlu0 %2496  ;;  %v3055_v58 = vmul.f32 %v3054_v38, %v6508_v32 }
 0x34a   : > { %v2503_v22 = vadd.f32 %v2499_v26, %v2391_v3  ;;  %v2502_v25 = vadd.f32 %v2497_v47, %v2390_v46  ;;  %v6742_v3 = vld [vmem:[#allocation2 + $0x51] sm:$0xff]  ;;  %v3146_v46 = vstv %s6710_s14  ;;  %s6834_s14 = sld [smem:[#allocation8 + $0x87]] }
 0x34b   : > { %3005 = vrot.lane.b32.xlu1 %v3000_v5, %s7406_s10  ;;  %3003 = vrot.lane.b32.xlu0 %v2999_v19, %s7406_s10  ;;  %v3147_v5 = vmul.f32 %v3146_v46, %v6726_v28  ;;  %v3134_v19 = vmul.f32 %v3132_v37, %v6742_v3 }
 0x34c   : > { %v6683_v53 = vadd.f32 %v2567_v40, %v2503_v22  ;;  %v6685_v63 = vadd.f32 %v2566_v33, %v2502_v25  ;;  %v3245_v40 = vmul.f32 %v3244_v52, %v6726_v28  ;;  %v3148_v33 = vmul.f32 %v3146_v46, %v6742_v3  ;;  %v6827_v46 = vld [vmem:[#allocation2 + $0x52] sm:$0xff] }
 0x34d   : > { %v2513_v54 = vpop.permute.xlu1 %2512  ;;  %v2511_v30 = vpop.permute.xlu0 %2510 }
 0x34e   : > { %v2517_v43 = vadd.f32 %v2513_v54, %v2405_v1  ;;  %v2516_v36 = vadd.f32 %v2511_v30, %v2404_v55  ;;  %v3161_v54 = vmul.f32 %v3160_v17, %v6726_v28  ;;  %v3246_v30 = vmul.f32 %v3244_v52, %v6742_v3 }
 0x34f   : > { %3019 = vrot.lane.b32.xlu1 %v3014_v18, %s7406_s10  ;;  %3017 = vrot.lane.b32.xlu0 %v3013_v21, %s7406_s10  ;;  %v3258_v18 = vstv %s6754_s7  ;;  %s6876_s7 = sld [smem:[#allocation8 + $0xcf]] }
 0x350   : > { %v6703_v60 = vadd.f32 %v2573_v31, %v2517_v43  ;;  %v6705_v2 = vadd.f32 %v2572_v34, %v2516_v36  ;;  %v3259_v43 = vmul.f32 %v3258_v18, %v6726_v28  ;;  %v3162_v36 = vmul.f32 %v3160_v17, %v6742_v3 }
 0x351   : > { %v2527_v12 = vpop.permute.xlu1 %2526  ;;  %v2525_v27 = vpop.permute.xlu0 %2524  ;;  %v3174_v31 = vstv %s6764_s25  ;;  %s6889_s25 = sld [smem:[#allocation8 + $0x119]] }
 0x352   : > { %v2531_v23 = vadd.f32 %v2527_v12, %v2419_v29  ;;  %v2530_v14 = vadd.f32 %v2525_v27, %v2418_v8  ;;  %v3175_v29 = vmul.f32 %v3174_v31, %v6726_v28  ;;  %v3260_v8 = vmul.f32 %v3258_v18, %v6742_v3 }
 0x353   : > { %3033 = vrot.lane.b32.xlu1 %v3028_v56, %s7406_s10  ;;  %3031 = vrot.lane.b32.xlu0 %v3027_v6, %s7406_s10  ;;  %v3272_v12 = vstv %s6775_s12  ;;  %v3176_v62 = vmul.f32 %v3174_v31, %v6742_v3  ;;  %s6896_s12 = sld [smem:[#allocation8 + $0xf3]] }
 0x354   : > { %v6716_v39 = vadd.f32 %v2579_v20, %v2531_v23  ;;  %v6718_v59 = vadd.f32 %v2578_v49, %v2530_v14  ;;  %v3273_v6 = vmul.f32 %v3272_v12, %v6726_v28  ;;  %v6811_v23 = vld [vmem:[#allocation2 + $0x4a] sm:$0xff]  ;;  %v3406_v14 = vstv %s6786_s13  ;;  %s6909_s13 = sld [smem:[#allocation8 + $0xd3]] }
 0x355   : > { %v6720_v41 = vpop.permute.xlu1 %2590  ;;  %v6722_v13 = vpop.permute.xlu0 %2588  ;;  %v2810_v20 = vstv %s6790_s8  ;;  %v3408_v18 = vmul.f32 %v3406_v14, %v6827_v46  ;;  %s6916_s8 = sld [smem:[#allocation8 + $0x117]] }
 0x356   : > { %v2595_v49 = vadd.f32 %v6720_v41, %v6585_v50  ;;  %v2812_v52 = vmul.f32 %v2810_v20, %v6510_v9  ;;  %v2811_v50 = vmul.f32 %v2810_v20, %v6508_v32  ;;  %v3286_v20 = vstv %s6825_s16  ;;  %s4185_s16 = sld [smem:[#allocation8 + $0xf7]] }
 0x357   : > { %3047 = vrot.lane.b32.xlu1 %v3042_v45, %s7406_s10  ;;  %3045 = vrot.lane.b32.xlu0 %v3041_v15, %s7406_s10  ;;  %v2594_v45 = vadd.f32 %v6722_v13, %v6587_v42  ;;  %v2816_v42 = vstv %s6801_s9  ;;  %s6929_s9 = sld [smem:[#allocation8 + $0xb0]] }
 0x359   : > { %v6734_v44 = vpop.permute.xlu1 %2604  ;;  %v6736_v51 = vpop.permute.xlu0 %2602 }
 0x35a   : > { %v2609_v41 = vadd.f32 %v6734_v44, %v6605_v4  ;;  %v2608_v13 = vadd.f32 %v6736_v51, %v6607_v10  ;;  %v2818_v44 = vmul.f32 %v2816_v42, %v6510_v9  ;;  %v2817_v10 = vmul.f32 %v2816_v42, %v6508_v32 }
 0x35b   : > { %3137 = vrot.lane.b32.xlu1 %v3133_v7, %s4485_s15  ;;  %3059 = vrot.lane.b32.xlu0 %v3055_v58, %s7406_s10  ;;  %v3407_v7 = vmul.f32 %v3406_v14, %v6811_v23  ;;  %v3274_v58 = vmul.f32 %v3272_v12, %v6742_v3  ;;  %v2822_v51 = vstv %s6817_s11  ;;  %s4212_s11 = sld [smem:[#allocation8 + $0x47]] }
 0x35d   : > { %v6747_v26 = vpop.permute.xlu1 %2618  ;;  %v6749_v47 = vpop.permute.xlu0 %2616 }
 0x35e   : > { %v2622_v31 = vadd.f32 %v6749_v47, %v6627_v61  ;;  %v2823_v61 = vmul.f32 %v2822_v51, %v6508_v32  ;;  %v2828_v47 = vstv %s6834_s14  ;;  %s4192_s14 = sld [smem:[#allocation8 + $0xd4]] }
 0x35f   : > { %3151 = vrot.lane.b32.xlu1 %v3147_v5, %s4485_s15  ;;  %3139 = vrot.lane.b32.xlu0 %v3134_v19, %s4485_s15 }
 0x361   : > { %v6758_v22 = vpop.permute.xlu1 %2632  ;;  %v6760_v25 = vpop.permute.xlu0 %2630 }
 0x363   : > { %3249 = vrot.lane.b32.xlu1 %v3245_v40, %s7406_s10  ;;  %3153 = vrot.lane.b32.xlu0 %v3148_v33, %s4485_s15 }
 0x365   : > { %v6768_v1 = vpop.permute.xlu1 %2646  ;;  %v6770_v55 = vpop.permute.xlu0 %2644 }
 0x367   : > { %3165 = vrot.lane.b32.xlu1 %v3161_v54, %s4485_s15  ;;  %3251 = vrot.lane.b32.xlu0 %v3246_v30, %s7406_s10  ;;  %v3056_v30 = vmul.f32 %v3054_v38, %v6510_v9  ;;  %v2623_v38 = vadd.f32 %v6747_v26, %v6625_v35  ;;  %v2824_v26 = vmul.f32 %v2822_v51, %v6510_v9 }
 0x369   : > { %v6779_v21 = vpop.permute.xlu1 %2660  ;;  %v6781_v11 = vpop.permute.xlu0 %2658 }
 0x36a   : > { %v2664_v51 = vadd.f32 %v6781_v11, %v6685_v63  ;;  %v2846_v11 = vstv %s6896_s12  ;;  %s7028_s12 = sld [smem:[#allocation8 + $0xb2]] }
 0x36b   : > { %3263 = vrot.lane.b32.xlu1 %v3259_v43, %s7406_s10  ;;  %3167 = vrot.lane.b32.xlu0 %v3162_v36, %s4485_s15  ;;  %v3188_v43 = vstv %s6809_s17  ;;  %s6947_s17 = sld [smem:[#allocation8 + $0x6a]] }
 0x36c   : > { %v3189_v14 = vmul.f32 %v3188_v43, %v6726_v28 }
 0x36d   : > { %v6792_v34 = vpop.permute.xlu1 %2674  ;;  %v6794_v24 = vpop.permute.xlu0 %2672 }
 0x36f   : > { %3179 = vrot.lane.b32.xlu1 %v3175_v29, %s4485_s15  ;;  %3265 = vrot.lane.b32.xlu0 %v3260_v8, %s7406_s10 }
 0x371   : > { %v6803_v27 = vpop.permute.xlu1 %2688  ;;  %v6805_v56 = vpop.permute.xlu0 %2686 }
 0x373   : > { %3277 = vrot.lane.b32.xlu1 %v3273_v6, %s7406_s10  ;;  %3181 = vrot.lane.b32.xlu0 %v3176_v62, %s4485_s15  ;;  %v3190_v62 = vmul.f32 %v3188_v43, %v6742_v3 }
 0x375   : > { %v2703_v15 = vpop.permute.xlu1 %2702  ;;  %v2701_v37 = vpop.permute.xlu0 %2700 }
 0x376   : > { %v2707_v5 = vadd.f32 %v2703_v15, %v2595_v49  ;;  %v2706_v19 = vadd.f32 %v2701_v37, %v2594_v45  ;;  %v2637_v45 = vadd.f32 %v6758_v22, %v6645_v0  ;;  %v2636_v15 = vadd.f32 %v6760_v25, %v6647_v57 }
 0x377   : > { %3411 = vrot.lane.b32.xlu1 %v3407_v7, %s4485_s15  ;;  %3279 = vrot.lane.b32.xlu0 %v3274_v58, %s7406_s10  ;;  %v2830_v22 = vmul.f32 %v2828_v47, %v6510_v9  ;;  %v2829_v57 = vmul.f32 %v2828_v47, %v6508_v32  ;;  %v2834_v25 = vstv %s6856_s29  ;;  %s4213_s29 = sld [smem:[#allocation8 + $0x6b]] }
 0x378   : > { %v6840_v40 = vadd.f32 %v2812_v52, %v2707_v5  ;;  %v6842_v33 = vadd.f32 %v2811_v50, %v2706_v19  ;;  %v3288_v19 = vmul.f32 %v3286_v20, %v6742_v3  ;;  %v3287_v52 = vmul.f32 %v3286_v20, %v6726_v28 }
 0x379   : > { %v2717_v17 = vpop.permute.xlu1 %2716  ;;  %v2715_v54 = vpop.permute.xlu0 %2714  ;;  %v3420_v50 = vstv %s6849_s26  ;;  %v3068_v20 = vstv %s6889_s25  ;;  %s4206_s26 = sld [smem:[#allocation8 + $0x8e]] }
 0x37a   : > { %v2721_v36 = vadd.f32 %v2717_v17, %v2609_v41  ;;  %v2720_v4 = vadd.f32 %v2715_v54, %v2608_v13  ;;  %v2651_v41 = vadd.f32 %v6768_v1, %v6665_v16  ;;  %v2650_v13 = vadd.f32 %v6770_v55, %v6667_v48  ;;  %s7022_s25 = sld [smem:[#allocation8 + $0x1e]] }
 0x37b   : > { %3061 = vrot.lane.b32.xlu1 %v3056_v30, %s7406_s10  ;;  %3413 = vrot.lane.b32.xlu0 %v3408_v18, %s4485_s15  ;;  %v3422_v43 = vmul.f32 %v3420_v50, %v6827_v46  ;;  %v2836_v1 = vmul.f32 %v2834_v25, %v6510_v9  ;;  %v2835_v48 = vmul.f32 %v2834_v25, %v6508_v32  ;;  %v2840_v55 = vstv %s6876_s7  ;;  %s4193_s7 = sld [smem:[#allocation8 + $0xf8]] }
 0x37c   : > { %v6862_v29 = vadd.f32 %v2818_v44, %v2721_v36  ;;  %v6864_v8 = vadd.f32 %v2817_v10, %v2720_v4  ;;  %v3421_v36 = vmul.f32 %v3420_v50, %v6811_v23  ;;  %v3518_v4 = vstv %s6869_s28  ;;  %s4186_s28 = sld [smem:[#allocation8 + $0x11b]] }
 0x37d   : > { %v2731_v12 = vpop.permute.xlu1 %2730  ;;  %v2729_v6 = vpop.permute.xlu0 %2728  ;;  %v2665_v10 = vadd.f32 %v6779_v21, %v6683_v53  ;;  %v2842_v21 = vmul.f32 %v2840_v55, %v6510_v9  ;;  %v2841_v63 = vmul.f32 %v2840_v55, %v6508_v32 }
 0x37e   : > { %v2735_v49 = vadd.f32 %v2731_v12, %v2623_v38  ;;  %v2734_v35 = vadd.f32 %v2729_v6, %v2622_v31 }
 0x37f   : > { %3195 = vrot.lane.b32.xlu1 %v3190_v62, %s4485_s15  ;;  %3193 = vrot.lane.b32.xlu0 %v3189_v14, %s4485_s15  ;;  %v3520_v62 = vmul.f32 %v3518_v4, %v6827_v46  ;;  %v3519_v14 = vmul.f32 %v3518_v4, %v6811_v23 }
 0x380   : > { %v6882_v37 = vadd.f32 %v2824_v26, %v2735_v49  ;;  %v6884_v7 = vadd.f32 %v2823_v61, %v2734_v35  ;;  %v2679_v35 = vadd.f32 %v6792_v34, %v6703_v60  ;;  %v2678_v26 = vadd.f32 %v6794_v24, %v6705_v2 }
 0x381   : > { %v2745_v58 = vpop.permute.xlu1 %2744  ;;  %v2743_v5 = vpop.permute.xlu0 %2742  ;;  %v2848_v60 = vmul.f32 %v2846_v11, %v6510_v9  ;;  %v2847_v2 = vmul.f32 %v2846_v11, %v6508_v32  ;;  %v2852_v34 = vstv %s6916_s8  ;;  %v2693_v24 = vadd.f32 %v6803_v27, %v6716_v39  ;;  %s7041_s8 = sld [smem:[#allocation8 + $0x8f]] }
 0x382   : > { %v2749_v42 = vadd.f32 %v2745_v58, %v2637_v45  ;;  %v2748_v0 = vadd.f32 %v2743_v5, %v2636_v15  ;;  %v3070_v58 = vmul.f32 %v3068_v20, %v6510_v9  ;;  %v3069_v5 = vmul.f32 %v3068_v20, %v6508_v32 }
 0x383   : > { %3293 = vrot.lane.b32.xlu1 %v3288_v19, %s7406_s10  ;;  %3291 = vrot.lane.b32.xlu0 %v3287_v52, %s7406_s10  ;;  %v3202_v19 = vstv %s6909_s13  ;;  %v2854_v39 = vmul.f32 %v2852_v34, %v6510_v9  ;;  %v2853_v27 = vmul.f32 %v2852_v34, %v6508_v32  ;;  %s7035_s13 = sld [smem:[#allocation8 + $0x42]] }
 0x384   : > { %v6902_v17 = vadd.f32 %v2830_v22, %v2749_v42  ;;  %v6904_v54 = vadd.f32 %v2829_v57, %v2748_v0  ;;  %v2692_v42 = vadd.f32 %v6805_v56, %v6718_v59 }
 0x385   : > { %v2759_v30 = vpop.permute.xlu1 %2758  ;;  %v2757_v18 = vpop.permute.xlu0 %2756 }
 0x386   : > { %v2763_v44 = vadd.f32 %v2759_v30, %v2651_v41  ;;  %v2762_v16 = vadd.f32 %v2757_v18, %v2650_v13  ;;  %v3204_v41 = vmul.f32 %v3202_v19, %v6742_v3  ;;  %v3203_v13 = vmul.f32 %v3202_v19, %v6726_v28 }
 0x387   : > { %3427 = vrot.lane.b32.xlu1 %v3422_v43, %s4485_s15  ;;  %3425 = vrot.lane.b32.xlu0 %v3421_v36, %s4485_s15  ;;  %v3300_v30 = vstv %s6929_s9  ;;  %s7049_s9 = sld [smem:[#allocation8 + $0x66]] }
 0x388   : > { %v6922_v38 = vadd.f32 %v2836_v1, %v2763_v44  ;;  %v6924_v31 = vadd.f32 %v2835_v48, %v2762_v16  ;;  %v3302_v44 = vmul.f32 %v3300_v30, %v6742_v3  ;;  %v3301_v16 = vmul.f32 %v3300_v30, %v6726_v28 }
 0x389   : > { %v2773_v12 = vpop.permute.xlu1 %2772  ;;  %v2771_v6 = vpop.permute.xlu0 %2770  ;;  %v3434_v1 = vstv %s6947_s17  ;;  %s7058_s17 = sld [smem:[#allocation8 + $0x11c]] }
 0x38a   : > { %v2777_v49 = vadd.f32 %v2773_v12, %v2665_v10  ;;  %v2776_v53 = vadd.f32 %v2771_v6, %v2664_v51  ;;  %v3436_v48 = vmul.f32 %v3434_v1, %v6827_v46  ;;  %v3435_v55 = vmul.f32 %v3434_v1, %v6811_v23 }
 0x38b   : > { %3525 = vrot.lane.b32.xlu1 %v3520_v62, %s7406_s10  ;;  %3523 = vrot.lane.b32.xlu0 %v3519_v14, %s7406_s10  ;;  %v3532_v10 = vstv %s4212_s11  ;;  %v3216_v14 = vstv %s4185_s16  ;;  %s7065_s11 = sld [smem:[#allocation8 + $0x8a]]  ;;  %s7078_s16 = sld [smem:[#allocation8 + $0xd6]] }
 0x38c   : > { %v6940_v61 = vadd.f32 %v2842_v21, %v2777_v49  ;;  %v6942_v47 = vadd.f32 %v2841_v63, %v2776_v53  ;;  %v3534_v6 = vmul.f32 %v3532_v10, %v6827_v46  ;;  %v3533_v62 = vmul.f32 %v3532_v10, %v6811_v23 }
 0x38d   : > { %v2787_v45 = vpop.permute.xlu1 %2786  ;;  %v2785_v15 = vpop.permute.xlu0 %2784  ;;  %v3218_v53 = vmul.f32 %v3216_v14, %v6742_v3  ;;  %v3217_v21 = vmul.f32 %v3216_v14, %v6726_v28  ;;  %v3314_v63 = vstv %s4192_s14  ;;  %s7085_s14 = sld [smem:[#allocation8 + $0xae]] }
 0x38e   : > { %v2791_v52 = vadd.f32 %v2787_v45, %v2679_v35  ;;  %v2790_v50 = vadd.f32 %v2785_v15, %v2678_v26  ;;  %v3316_v26 = vmul.f32 %v3314_v63, %v6742_v3  ;;  %v3315_v45 = vmul.f32 %v3314_v63, %v6726_v28 }
 0x38f   : > { %3075 = vrot.lane.b32.xlu1 %v3070_v58, %s7406_s10  ;;  %3073 = vrot.lane.b32.xlu0 %v3069_v5, %s7406_s10  ;;  %v3448_v15 = vstv %s4206_s26  ;;  %s7098_s26 = sld [smem:[#allocation8 + $0xb3]] }
 0x390   : > { %v6958_v0 = vadd.f32 %v2848_v60, %v2791_v52  ;;  %v6960_v22 = vadd.f32 %v2847_v2, %v2790_v50  ;;  %v3450_v19 = vmul.f32 %v3448_v15, %v6827_v46  ;;  %v3449_v52 = vmul.f32 %v3448_v15, %v6811_v23 }
 0x391   : > { %v2801_v57 = vpop.permute.xlu1 %2800  ;;  %v2799_v25 = vpop.permute.xlu0 %2798  ;;  %v3546_v50 = vstv %s4213_s29  ;;  %s7105_s29 = sld [smem:[#allocation8 + $0xd2]] }
 0x392   : > { %v2805_v18 = vadd.f32 %v2801_v57, %v2693_v24  ;;  %v2804_v43 = vadd.f32 %v2799_v25, %v2692_v42  ;;  %v3548_v34 = vmul.f32 %v3546_v50, %v6827_v46  ;;  %v3547_v24 = vmul.f32 %v3546_v50, %v6811_v23 }
 0x393   : > { %3209 = vrot.lane.b32.xlu1 %v3204_v41, %s4485_s15  ;;  %3207 = vrot.lane.b32.xlu0 %v3203_v13, %s4485_s15  ;;  %v3230_v57 = vstv %s4186_s28  ;;  %s7118_s28 = sld [smem:[#allocation8 + $0xfa]] }
 0x394   : > { %v6969_v59 = vadd.f32 %v2854_v39, %v2805_v18  ;;  %v6971_v56 = vadd.f32 %v2853_v27, %v2804_v43  ;;  %v3232_v13 = vmul.f32 %v3230_v57, %v6742_v3  ;;  %v3231_v30 = vmul.f32 %v3230_v57, %v6726_v28 }
 0x395   : > { %v6973_v36 = vpop.permute.xlu1 %2865  ;;  %v6975_v4 = vpop.permute.xlu0 %2863  ;;  %v3328_v18 = vstv %s4193_s7  ;;  %v3084_v43 = vstv %s7022_s25  ;;  %s7125_s7 = sld [smem:[#allocation8 + $0xf6]]  ;;  %s7138_s25 = sld [smem:[#allocation8 + $0xd7]] }
 0x396   : > { %v2870_v39 = vadd.f32 %v6973_v36, %v6840_v40  ;;  %v2869_v27 = vadd.f32 %v6975_v4, %v6842_v33  ;;  %v3329_v1 = vmul.f32 %v3328_v18, %v6726_v28  ;;  %v3090_v40 = vstv %s7035_s13  ;;  %s7162_s13 = sld [smem:[#allocation8 + $0x21]] }
 0x397   : > { %3307 = vrot.lane.b32.xlu1 %v3302_v44, %s7406_s10  ;;  %3305 = vrot.lane.b32.xlu0 %v3301_v16, %s7406_s10 }
 0x399   : > { %v6982_v32 = vpop.permute.xlu1 %2879  ;;  %v6984_v9 = vpop.permute.xlu0 %2877 }
 0x39a   : > { %v2884_v33 = vadd.f32 %v6982_v32, %v6862_v29  ;;  %v2883_v36 = vadd.f32 %v6984_v9, %v6864_v8  ;;  %v3091_v32 = vmul.f32 %v3090_v40, %v6726_v28  ;;  %v3092_v8 = vmul.f32 %v3090_v40, %v6742_v3 }
 0x39b   : > { %3441 = vrot.lane.b32.xlu1 %v3436_v48, %s4485_s15  ;;  %3439 = vrot.lane.b32.xlu0 %v3435_v55, %s4485_s15  ;;  %v3462_v48 = vstv %s7028_s12  ;;  %v3096_v9 = vstv %s7049_s9  ;;  %s7156_s12 = sld [smem:[#allocation8 + $0x11e]]  ;;  %s7184_s9 = sld [smem:[#allocation8 + $0x11f]] }
 0x39c   : > { %v3464_v63 = vmul.f32 %v3462_v48, %v6827_v46 }
 0x39d   : > { %v6990_v51 = vpop.permute.xlu1 %2893  ;;  %v6992_v12 = vpop.permute.xlu0 %2891 }
 0x39f   : > { %3539 = vrot.lane.b32.xlu1 %v3534_v6, %s7406_s10  ;;  %3537 = vrot.lane.b32.xlu0 %v3533_v62, %s7406_s10  ;;  %v3085_v6 = vmul.f32 %v3084_v43, %v6726_v28  ;;  %v3086_v62 = vmul.f32 %v3084_v43, %v6742_v3 }
 0x3a1   : > { %v6998_v20 = vpop.permute.xlu1 %2907  ;;  %v7000_v49 = vpop.permute.xlu0 %2905 }
 0x3a2   : > { %v2911_v43 = vadd.f32 %v7000_v49, %v6904_v54  ;;  %v3108_v49 = vstv %s7085_s14  ;;  %s4199_s14 = sld [smem:[#allocation8 + $0xb1]] }
 0x3a3   : > { %3223 = vrot.lane.b32.xlu1 %v3218_v53, %s4485_s15  ;;  %3221 = vrot.lane.b32.xlu0 %v3217_v21, %s4485_s15 }
 0x3a5   : > { %v7006_v11 = vpop.permute.xlu1 %2921  ;;  %v7008_v35 = vpop.permute.xlu0 %2919 }
 0x3a7   : > { %3321 = vrot.lane.b32.xlu1 %v3316_v26, %s7406_s10  ;;  %3319 = vrot.lane.b32.xlu0 %v3315_v45, %s7406_s10  ;;  %v3463_v26 = vmul.f32 %v3462_v48, %v6811_v23  ;;  %v3560_v45 = vstv %s7041_s8  ;;  %v3476_v48 = vstv %s7078_s16  ;;  %s4217_s8 = sld [smem:[#allocation8 + $0xfb]]  ;;  %s4178_s16 = sld [smem:[#allocation8 + $0x11a]] }
 0x3a8   : > { %v3562_v57 = vmul.f32 %v3560_v45, %v6827_v46 }
 0x3a9   : > { %v7014_v58 = vpop.permute.xlu1 %2935  ;;  %v7016_v5 = vpop.permute.xlu0 %2933 }
 0x3ab   : > { %3455 = vrot.lane.b32.xlu1 %v3450_v19, %s4485_s15  ;;  %3453 = vrot.lane.b32.xlu0 %v3449_v52, %s4485_s15  ;;  %v2898_v19 = vadd.f32 %v6990_v51, %v6882_v37  ;;  %v2897_v52 = vadd.f32 %v6992_v12, %v6884_v7  ;;  %v3097_v51 = vmul.f32 %v3096_v9, %v6726_v28  ;;  %v3102_v12 = vstv %s7065_s11  ;;  %s3630_s11 = sld [smem:[#allocation9]] }
 0x3ac   : > { %v3098_v7 = vmul.f32 %v3096_v9, %v6742_v3  ;;  %v3104_v54 = vmul.f32 %v3102_v12, %v6742_v3 }
 0x3ad   : > { %v2950_v60 = vpop.permute.xlu1 %2949  ;;  %v7024_v2 = vpop.permute.xlu0 %2947 }
 0x3ae   : > { %v7031_v42 = vadd.f32 %v2950_v60, %v6958_v0 }
 0x3af   : > { %3553 = vrot.lane.b32.xlu1 %v3548_v34, %s7406_s10  ;;  %3551 = vrot.lane.b32.xlu0 %v3547_v24, %s7406_s10 }
 0x3b1   : > { %v2964_v25 = vpop.permute.xlu1 %2963  ;;  %v7037_v41 = vpop.permute.xlu0 %2961 }
 0x3b2   : > { %v7044_v0 = vadd.f32 %v2964_v25, %v6969_v59  ;;  %v3330_v59 = vmul.f32 %v3328_v18, %v6742_v3  ;;  %v3561_v25 = vmul.f32 %v3560_v45, %v6811_v23  ;;  %v2912_v18 = vadd.f32 %v6998_v20, %v6902_v17 }
 0x3b3   : > { %3237 = vrot.lane.b32.xlu1 %v3232_v13, %s4485_s15  ;;  %3235 = vrot.lane.b32.xlu0 %v3231_v30, %s4485_s15  ;;  %v3342_v13 = vstv %s7058_s17  ;;  %v3103_v20 = vmul.f32 %v3102_v12, %v6726_v28  ;;  %s7189_s17 = sld [smem:[#allocation8 + $0x45]] }
 0x3b5   : > { %v2978_v44 = vpop.permute.xlu1 %2977  ;;  %v2976_v16 = vpop.permute.xlu0 %2975 }
 0x3b6   : > { %v2982_v55 = vadd.f32 %v2978_v44, %v2870_v39  ;;  %v2981_v10 = vadd.f32 %v2976_v16, %v2869_v27 }
 0x3b7   : > { %3335 = vrot.lane.b32.xlu1 %v3330_v59, %s7406_s10  ;;  %3333 = vrot.lane.b32.xlu0 %v3329_v1, %s7406_s10  ;;  %v3344_v59 = vmul.f32 %v3342_v13, %v6742_v3  ;;  %v3343_v1 = vmul.f32 %v3342_v13, %v6726_v28 }
 0x3b8   : > { %v7071_v4 = vadd.f32 %v3085_v6, %v2981_v10  ;;  %v7073_v14 = vadd.f32 %v3086_v62, %v2982_v55  ;;  %v2926_v10 = vadd.f32 %v7006_v11, %v6922_v38  ;;  %v2925_v6 = vadd.f32 %v7008_v35, %v6924_v31 }
 0x3b9   : > { %v2992_v53 = vpop.permute.xlu1 %2991  ;;  %v2990_v21 = vpop.permute.xlu0 %2989  ;;  %v3110_v38 = vmul.f32 %v3108_v49, %v6742_v3  ;;  %v3109_v31 = vmul.f32 %v3108_v49, %v6726_v28  ;;  %v3114_v11 = vstv %s7105_s29  ;;  %v2940_v35 = vadd.f32 %v7014_v58, %v6940_v61  ;;  %s4200_s29 = sld [smem:[#allocation8 + $0xd5]] }
 0x3ba   : > { %v2996_v15 = vadd.f32 %v2992_v53, %v2884_v33  ;;  %v2995_v29 = vadd.f32 %v2990_v21, %v2883_v36  ;;  %v3478_v53 = vmul.f32 %v3476_v48, %v6827_v46  ;;  %v3477_v21 = vmul.f32 %v3476_v48, %v6811_v23 }
 0x3bb   : > { %3469 = vrot.lane.b32.xlu1 %v3464_v63, %s4485_s15  ;;  %3467 = vrot.lane.b32.xlu0 %v3463_v26, %s4485_s15  ;;  %v3574_v63 = vstv %s7098_s26  ;;  %v3116_v61 = vmul.f32 %v3114_v11, %v6742_v3  ;;  %v3120_v58 = vstv %s7125_s7  ;;  %s4219_s26 = sld [smem:[#allocation9 + $0x1]] }
 0x3bc   : > { %v7091_v50 = vadd.f32 %v3091_v32, %v2995_v29  ;;  %v7093_v60 = vadd.f32 %v3092_v8, %v2996_v15  ;;  %v2939_v15 = vadd.f32 %v7016_v5, %v6942_v47  ;;  %v3115_v47 = vmul.f32 %v3114_v11, %v6726_v28  ;;  %s4201_s7 = sld [smem:[#allocation8 + $0xf9]] }
 0x3bd   : > { %v3006_v34 = vpop.permute.xlu1 %3005  ;;  %v3004_v24 = vpop.permute.xlu0 %3003  ;;  %v2953_v5 = vadd.f32 %v7024_v2, %v6960_v22  ;;  %v3358_v48 = vstv %s7162_s13  ;;  %s4222_s13 = sld [smem:[#allocation9 + $0x4]] }
 0x3be   : > { %v3010_v30 = vadd.f32 %v3006_v34, %v2898_v19  ;;  %v3009_v37 = vadd.f32 %v3004_v24, %v2897_v52  ;;  %v3576_v19 = vmul.f32 %v3574_v63, %v6827_v46  ;;  %v3575_v52 = vmul.f32 %v3574_v63, %v6811_v23 }
 0x3bf   : > { %3567 = vrot.lane.b32.xlu1 %v3562_v57, %s7406_s10  ;;  %3565 = vrot.lane.b32.xlu0 %v3561_v25, %s7406_s10  ;;  %v3490_v34 = vstv %s7118_s28  ;;  %v3360_v11 = vmul.f32 %v3358_v48, %v6827_v46  ;;  %s4220_s28 = sld [smem:[#allocation9 + $0x2]] }
 0x3c0   : > { %v7111_v39 = vadd.f32 %v3097_v51, %v3009_v37  ;;  %v7113_v27 = vadd.f32 %v3098_v7, %v3010_v30  ;;  %v3492_v51 = vmul.f32 %v3490_v34, %v6827_v46  ;;  %v3491_v7 = vmul.f32 %v3490_v34, %v6811_v23 }
 0x3c1   : > { %v3020_v44 = vpop.permute.xlu1 %3019  ;;  %v3018_v16 = vpop.permute.xlu0 %3017 }
 0x3c2   : > { %v3024_v55 = vadd.f32 %v3020_v44, %v2912_v18  ;;  %v3023_v17 = vadd.f32 %v3018_v16, %v2911_v43  ;;  %v3588_v18 = vstv %s7138_s25  ;;  %v3121_v43 = vmul.f32 %v3120_v58, %v6726_v28  ;;  %s4221_s25 = sld [smem:[#allocation9 + $0x3]] }
 0x3c3   : > { %3349 = vrot.lane.b32.xlu1 %v3344_v59, %s7406_s10  ;;  %3347 = vrot.lane.b32.xlu0 %v3343_v1, %s7406_s10  ;;  %v3590_v16 = vmul.f32 %v3588_v18, %v6827_v46  ;;  %v3589_v59 = vmul.f32 %v3588_v18, %v6811_v23  ;;  %v3504_v1 = vstv %s7156_s12  ;;  %s4202_s12 = sld [smem:[#allocation8 + $0x11d]] }
 0x3c4   : > { %v7131_v62 = vadd.f32 %v3103_v20, %v3023_v17  ;;  %v7133_v40 = vadd.f32 %v3104_v54, %v3024_v55  ;;  %v3506_v54 = vmul.f32 %v3504_v1, %v6827_v46  ;;  %v3505_v49 = vmul.f32 %v3504_v1, %v6811_v23 }
 0x3c5   : > { %v3034_v33 = vpop.permute.xlu1 %3033  ;;  %v3032_v36 = vpop.permute.xlu0 %3031 }
 0x3c6   : > { %v3038_v26 = vadd.f32 %v3034_v33, %v2926_v10  ;;  %v3037_v45 = vadd.f32 %v3032_v36, %v2925_v6  ;;  %v3602_v6 = vstv %s4217_s8  ;;  %v3359_v33 = vmul.f32 %v3358_v48, %v6811_v23  ;;  %s4223_s8 = sld [smem:[#allocation9 + $0x5]] }
 0x3c7   : > { %3483 = vrot.lane.b32.xlu1 %v3478_v53, %s4485_s15  ;;  %3481 = vrot.lane.b32.xlu0 %v3477_v21, %s4485_s15  ;;  %v3604_v63 = vmul.f32 %v3602_v6, %v6827_v46 }
 0x3c8   : > { %v7149_v29 = vadd.f32 %v3110_v38, %v3038_v26  ;;  %v7151_v32 = vadd.f32 %v3109_v31, %v3037_v45  ;;  %v3603_v26 = vmul.f32 %v3602_v6, %v6811_v23  ;;  %v3616_v31 = vstv %s7184_s9  ;;  %s4224_s9 = sld [smem:[#allocation9 + $0x6]] }
 0x3c9   : > { %v3048_v8 = vpop.permute.xlu1 %3047  ;;  %v3046_v9 = vpop.permute.xlu0 %3045 }
 0x3ca   : > { %v3052_v24 = vadd.f32 %v3048_v8, %v2940_v35  ;;  %v3051_v57 = vadd.f32 %v3046_v9, %v2939_v15  ;;  %v3364_v35 = vstv %s7189_s17  ;;  %s4225_s17 = sld [smem:[#allocation9 + $0x7]] }
 0x3cb   : > { %3581 = vrot.lane.b32.xlu1 %v3576_v19, %s7406_s10  ;;  %3579 = vrot.lane.b32.xlu0 %v3575_v52, %s7406_s10  ;;  %v3618_v19 = vmul.f32 %v3616_v31, %v6827_v46  ;;  %v3617_v52 = vmul.f32 %v3616_v31, %v6811_v23  ;;  %v3365_v34 = vmul.f32 %v3364_v35, %v6811_v23 }
 0x3cc   : > { %v7167_v25 = vadd.f32 %v3116_v61, %v3052_v24  ;;  %v7169_v13 = vadd.f32 %v3115_v47, %v3051_v57 }
 0x3cd   : > { %v3138_v30 = vpop.permute.xlu1 %3137  ;;  %v3060_v37 = vpop.permute.xlu0 %3059 }
 0x3ce   : > { %v3065_v12 = vadd.f32 %v3060_v37, %v2953_v5  ;;  %v3143_v55 = vadd.f32 %v3138_v30, %v7071_v4  ;;  %v3366_v30 = vmul.f32 %v3364_v35, %v6827_v46 }
 0x3cf   : > { %3497 = vrot.lane.b32.xlu1 %v3492_v51, %s4485_s15  ;;  %3495 = vrot.lane.b32.xlu0 %v3491_v7, %s4485_s15 }
 0x3d0   : > { %v7179_v22 = vadd.f32 %v3121_v43, %v3065_v12 }
 0x3d1   : > { %v3152_v2 = vpop.permute.xlu1 %3151  ;;  %v3140_v44 = vpop.permute.xlu0 %3139 }
 0x3d2   : > { %v3144_v36 = vadd.f32 %v3140_v44, %v7073_v14  ;;  %v3157_v14 = vadd.f32 %v3152_v2, %v7091_v50 }
 0x3d3   : > { %3595 = vrot.lane.b32.xlu1 %v3590_v16, %s7406_s10  ;;  %3593 = vrot.lane.b32.xlu0 %v3589_v59, %s7406_s10 }
 0x3d5   : > { %v3250_v17 = vpop.permute.xlu1 %3249  ;;  %v3154_v20 = vpop.permute.xlu0 %3153 }
 0x3d6   : > { %v3255_v10 = vadd.f32 %v3250_v17, %v3143_v55  ;;  %v3158_v24 = vadd.f32 %v3154_v20, %v7093_v60 }
 0x3d7   : > { %3511 = vrot.lane.b32.xlu1 %v3506_v54, %s4485_s15  ;;  %3509 = vrot.lane.b32.xlu0 %v3505_v49, %s4485_s15  ;;  %s4197_s15 = sld [smem:[#allocation8 + $0x69]] }
 0x3d8   : > { %v7198_v53 = vadd.f32 %v3359_v33, %v3255_v10 }
 0x3d9   : > { %v3166_v4 = vpop.permute.xlu1 %3165  ;;  %v3252_v21 = vpop.permute.xlu0 %3251 }
 0x3da   : > { %v3171_v45 = vadd.f32 %v3166_v4, %v7111_v39  ;;  %v3256_v38 = vadd.f32 %v3252_v21, %v3144_v36 }
 0x3db   : > { %3609 = vrot.lane.b32.xlu1 %v3604_v63, %s7406_s10  ;;  %3607 = vrot.lane.b32.xlu0 %v3603_v26, %s7406_s10 }
 0x3dc   : > { %v3362_v15 = vadd.f32 %v3360_v11, %v3256_v38  ;;  %v3631_v11 = vstv %s3630_s11 }
 0x3dd   : > { %v3264_v8 = vpop.permute.xlu1 %3263  ;;  %v3168_v9 = vpop.permute.xlu0 %3167  ;;  %v3370_v37 = vstv %s4197_s15 }
 0x3de   : > { %v3269_v39 = vadd.f32 %v3264_v8, %v3157_v14  ;;  %v3371_v60 = vmul.f32 %v3370_v37, %v6811_v23  ;;  %v3172_v2 = vadd.f32 %v3168_v9, %v7113_v27  ;;  %v3372_v1 = vmul.f32 %v3370_v37, %v6827_v46 }
 0x3df   : > { %3623 = vrot.lane.b32.xlu1 %v3618_v19, %s7406_s10  ;;  %3621 = vrot.lane.b32.xlu0 %v3617_v52, %s7406_s10  ;;  %s4198_s10 = sld [smem:[#allocation8 + $0x8d]]  ;;  %v3126_v19 = vstv %s4178_s16  ;;  %v2967_v52 = vadd.f32 %v7037_v41, %v6971_v56  ;;  %s4226_s16 = sshll.u32 %s4539_s22, 4 }
 0x3e0   : > { %v7215_v57 = vadd.f32 %v3365_v34, %v3269_v39  ;;  %s4487_s22 = smov [#allocation10]  }
 0x3e1   : > { %v3180_v61 = vpop.permute.xlu1 %3179  ;;  %v3266_v50 = vpop.permute.xlu0 %3265 }
 0x3e2   : > { %v3185_v47 = vadd.f32 %v3180_v61, %v7131_v62  ;;  %v3270_v5 = vadd.f32 %v3266_v50, %v3158_v24  ;;  %v3128_v50 = vmul.f32 %v3126_v19, %v6742_v3 }
 0x3e4   : > { %v7219_v51 = vadd.f32 %v3366_v30, %v3270_v5 }
 0x3e5   : > { %v3278_v7 = vpop.permute.xlu1 %3277  ;;  %v3182_v12 = vpop.permute.xlu0 %3181  ;;  %v3376_v33 = vstv %s4198_s10 }
 0x3e6   : > { %v3283_v18 = vadd.f32 %v3278_v7, %v3171_v45  ;;  %v3186_v43 = vadd.f32 %v3182_v12, %v7133_v40  ;;  %v3122_v40 = vmul.f32 %v3120_v58, %v6742_v3  ;;  %v3378_v26 = vmul.f32 %v3376_v33, %v6827_v46 }
 0x3e7   : > { %v3382_v3 = vstv %s4199_s14  ;;  %s266_s14 = scalar_lea.vmem [#allocation10], %s4672_s23 }
 0x3e8   : > { %v7224_v44 = vadd.f32 %v3371_v60, %v3283_v18 }
 0x3e9   : > { %v3412_v16 = vpop.permute.xlu1 %3411  ;;  %v3280_v62 = vpop.permute.xlu0 %3279 }
 0x3ea   : > { %v3284_v59 = vadd.f32 %v3280_v62, %v3172_v2 }
 0x3ec   : > { %v7227_v48 = vadd.f32 %v3372_v1, %v3284_v59 }
 0x3ed   : > { %v3062_v55 = vpop.permute.xlu1 %3061  ;;  %v3414_v17 = vpop.permute.xlu0 %3413 }
 0x3ee   : > { %v3066_v20 = vadd.f32 %v3062_v55, %v7031_v42  ;;  %v3377_v42 = vmul.f32 %v3376_v33, %v6811_v23 }
 0x3f0   : > { %v7233_v54 = vadd.f32 %v3122_v40, %v3066_v20  ;;  %v3655_v40 = vstv %s4219_s26  ;;  %s3830_s26 = sshll.u32 %s266_s14, 4  ;;  %s7338_s26 = int_to_ptr.vmem [resolvable:$true] %s3830_s26 }
 0x3f1   : > { %v3196_v27 = vpop.permute.xlu1 %3195  ;;  %v3194_v49 = vpop.permute.xlu0 %3193 }
 0x3f2   : > { %v3200_v10 = vadd.f32 %v3196_v27, %v7149_v29  ;;  %v3199_v6 = vadd.f32 %v3194_v49, %v7151_v32  ;;  %v3417_v29 = vadd.f32 %v3412_v16, %v7198_v53  ;;  %v3418_v32 = vadd.f32 %v3414_v17, %v3362_v15 }
 0x3f3   : > { %v3127_v53 = vmul.f32 %v3126_v19, %v6726_v28  ;;  %v3383_v16 = vmul.f32 %v3382_v3, %v6811_v23 }
 0x3f5   : > { %v3294_v36 = vpop.permute.xlu1 %3293  ;;  %v3292_v4 = vpop.permute.xlu0 %3291 }
 0x3f6   : > { %v3298_v21 = vadd.f32 %v3294_v36, %v3186_v43  ;;  %v3297_v63 = vadd.f32 %v3292_v4, %v3185_v47 }
 0x3f8   : > { %v7239_v58 = vadd.f32 %v3378_v26, %v3298_v21  ;;  %v7241_v45 = vadd.f32 %v3377_v42, %v3297_v63  ;;  %v3388_v26 = vstv %s4200_s29 }
 0x3f9   : > { %v3428_v38 = vpop.permute.xlu1 %3427  ;;  %v3426_v31 = vpop.permute.xlu0 %3425 }
 0x3fa   : > { %v3432_v17 = vadd.f32 %v3428_v38, %v7219_v51  ;;  %v3431_v20 = vadd.f32 %v3426_v31, %v7215_v57 }
 0x3fd   : > { %v3526_v35 = vpop.permute.xlu1 %3525  ;;  %v3524_v14 = vpop.permute.xlu0 %3523 }
 0x3fe   : > { %v3530_v8 = vadd.f32 %v3526_v35, %v3418_v32  ;;  %v3529_v9 = vadd.f32 %v3524_v14, %v3417_v29  ;;  %v3390_v35 = vmul.f32 %v3388_v26, %v6827_v46  ;;  %v3389_v14 = vmul.f32 %v3388_v26, %v6811_v23 }
 0x400   : > { %v3633_v39 = vadd.f32 %v3631_v11, %v3530_v8  ;;  %v3632_v34 = vadd.f32 %v3631_v11, %v3529_v9 }
 0x401   : > { %v3076_v24 = vpop.permute.xlu1 %3075  ;;  %v3074_v61 = vpop.permute.xlu0 %3073 }
 0x402   : > { %v3635_v15 = vmax.f32 %v3633_v39, 0.0  ;;  %v3634_v47 = vmax.f32 %v3632_v34, 0.0  ;;  %v3080_v5 = vadd.f32 %v3076_v24, %v7044_v0  ;;  %v3079_v30 = vadd.f32 %v3074_v61, %v2967_v52 }
 0x403   : > { %v3384_v0 = vmul.f32 %v3382_v3, %v6827_v46  ;;  %v3678_v34 = vstv %s4220_s28 }
 0x404   : > { %v3640_v37 = vsel %vm3636_vm3, %v3635_v15, 0.0  ;;  %v3637_v7 = vsel %vm3636_vm3, %v3634_v47, 0.0  ;;  %v7251_v12 = vadd.f32 %v3128_v50, %v3080_v5  ;;  %v7253_v56 = vadd.f32 %v3127_v53, %v3079_v30 }
 0x405   : > { %v3210_v41 = vpop.permute.xlu1 %3209  ;;  %3641 = vadd.xlane.f32.xlu1 %v3640_v37  ;;  %v3208_v18 = vpop.permute.xlu0 %3207  ;;  %3638 = vadd.xlane.f32.xlu0 %v3637_v7  ;;  %v3394_v7 = vstv %s4201_s7  ;;  %s7336_s7 = scalar_lea.hbm %s7385_s5, %s4226_s16 }
 0x406   : > { %v3214_v42 = vadd.f32 %v3210_v41, %v7167_v25  ;;  %v3213_v29 = vadd.f32 %v3208_v18, %v7169_v13 }
 0x409   : > { %v3308_v43 = vpop.permute.xlu1 %3307  ;;  %v3306_v28 = vpop.permute.xlu0 %3305 }
 0x40a   : > { %v3312_v60 = vadd.f32 %v3308_v43, %v3200_v10  ;;  %v3311_v2 = vadd.f32 %v3306_v28, %v3199_v6 }
 0x40c   : > { %v7257_v62 = vadd.f32 %v3384_v0, %v3312_v60  ;;  %v7259_v59 = vadd.f32 %v3383_v16, %v3311_v2  ;;  %v3396_v2 = vmul.f32 %v3394_v7, %v6827_v46  ;;  %v4342_v0 = vld [vmem:[#allocation2 + $0x4a] sm:$0xff] }
 0x40d   : > { %v3442_v1 = vpop.permute.xlu1 %3441  ;;  %v3440_v55 = vpop.permute.xlu0 %3439  ;;  %v3395_v16 = vmul.f32 %v4342_v0, %v3394_v7 }
 0x40e   : > { %v3446_v52 = vadd.f32 %v3442_v1, %v7227_v48  ;;  %v3445_v39 = vadd.f32 %v3440_v55, %v7224_v44 }
 0x411   : > { %v3540_v27 = vpop.permute.xlu1 %3539  ;;  %v3538_v49 = vpop.permute.xlu0 %3537 }
 0x412   : > { %v3544_v10 = vadd.f32 %v3540_v27, %v3432_v17  ;;  %v3543_v6 = vadd.f32 %v3538_v49, %v3431_v20 }
 0x414   : > { %v3657_v33 = vadd.f32 %v3655_v40, %v3544_v10  ;;  %v3656_v36 = vadd.f32 %v3655_v40, %v3543_v6  ;;  %v3701_v40 = vstv %s4221_s25  ;;  %s3818_s25 = scalar_lea.sflag [#allocation5], %s4672_s23 }
 0x415   : > { %v3224_v4 = vpop.permute.xlu1 %3223  ;;  %v3222_v21 = vpop.permute.xlu0 %3221 }
 0x416   : > { %v3658_v63 = vmax.f32 %v3656_v36, 0.0  ;;  %v3659_v32 = vmax.f32 %v3657_v33, 0.0  ;;  %v3228_v41 = vadd.f32 %v3224_v4, %v7233_v54  ;;  %v3227_v18 = vadd.f32 %v3222_v21, %v7179_v22 }
 0x417   : > { %v3400_v33 = vstv %s4202_s12  ;;  %s4402_s12 = scalar_lea.vmem %s7338_s26, 16 }
 0x418   : > { %v3660_v51 = vsel %vm3636_vm3, %v3658_v63, 0.0  ;;  %v3663_v8 = vsel %vm3636_vm3, %v3659_v32, 0.0  ;;  %p4403_p0 = scmp.ne.s32.totalorder %s7338_s26, %s4402_s12 }
 0x419   : > { %v3322_v38 = vpop.permute.xlu1 %3321  ;;  %v3320_v57 = vpop.permute.xlu0 %3319  ;;  %3661 = vadd.xlane.f32.xlu0 %v3660_v51 }
 0x41a   : > { %v3326_v31 = vadd.f32 %v3322_v38, %v3214_v42  ;;  %v3325_v11 = vadd.f32 %v3320_v57, %v3213_v29  ;;  %v4343_v42 = vld [vmem:[#allocation2 + $0x52] sm:$0xff]  ;;  %p4404_p10 = pnand %p4403_p0, %p7407_p8 }
 0x41b   : > { %v3402_v29 = vmul.f32 %v4343_v42, %v3400_v33 }
 0x41c   : > { %v7269_v9 = vadd.f32 %v3390_v35, %v3326_v31  ;;  %v7271_v25 = vadd.f32 %v3389_v14, %v3325_v11  ;;  %p4405_p4 = pneg %p4404_p10 }
 0x41d   : > { %v3456_v13 = vpop.permute.xlu1 %3455  ;;  %v3454_v19 = vpop.permute.xlu0 %3453  ;;  %3664 = vadd.xlane.f32.xlu0 %v3663_v8 }
 0x41e   : > { %v3460_v17 = vadd.f32 %v3456_v13, %v7239_v58  ;;  %v3459_v20 = vadd.f32 %v3454_v19, %v7241_v45  ;;  %v3401_v58 = vmul.f32 %v4342_v0, %v3400_v33  ;;  %v3724_v13 = vstv %s4222_s13  ;;  %s4406_s13 = sshll.u32 %s4487_s22, 4  ;;  %s4407_s13 = int_to_ptr.vmem [resolvable:$false] %s4406_s13 }
 0x41f   : > { %p4409_p6 = scmp.lt.s32.totalorder %s7338_s26, %s4407_s13 }
 0x421   : > { %v3554_v24 = vpop.permute.xlu1 %3553  ;;  %v3552_v61 = vpop.permute.xlu0 %3551 }
 0x422   : > { %v3558_v50 = vadd.f32 %v3554_v24, %v3446_v52  ;;  %v3557_v53 = vadd.f32 %v3552_v61, %v3445_v39 }
 0x424   : > { %v3680_v23 = vadd.f32 %v3678_v34, %v3558_v50  ;;  %v3679_v15 = vadd.f32 %v3678_v34, %v3557_v53 }
 0x425   : > { %v3238_v47 = vpop.permute.xlu1 %3237  ;;  %v3236_v5 = vpop.permute.xlu0 %3235 }
 0x426   : > { %v3682_v30 = vmax.f32 %v3680_v23, 0.0  ;;  %v3681_v37 = vmax.f32 %v3679_v15, 0.0  ;;  %v3242_v46 = vadd.f32 %v3238_v47, %v7251_v12  ;;  %v3241_v36 = vadd.f32 %v3236_v5, %v7253_v56 }
 0x428   : > { %v3683_v48 = vsel %vm3636_vm3, %v3681_v37, 0.0  ;;  %v3686_v44 = vsel %vm3636_vm3, %v3682_v30, 0.0  ;;  %v3747_v30 = vstv %s4223_s8  ;;  %s4408_s8 = scalar_lea.vmem %s4407_s13, 32 }
 0x429   : > { %v3336_v3 = vpop.permute.xlu1 %3335  ;;  %v3334_v43 = vpop.permute.xlu0 %3333  ;;  %3684 = vadd.xlane.f32.xlu1 %v3683_v48  ;;  %3687 = vadd.xlane.f32.xlu0 %v3686_v44  ;;  %p4410_p12 = scmp.lt.s32.totalorder %s4408_s8, %s4402_s12 }
 0x42a   : > { %v3340_v28 = vadd.f32 %v3336_v3, %v3228_v41  ;;  %v3339_v60 = vadd.f32 %v3334_v43, %v3227_v18 }
 0x42b   : > { %p4411_p1 = por %p4410_p12, %p4409_p6 }
 0x42c   : > { %v7280_v1 = vadd.f32 %v3396_v2, %v3340_v28  ;;  %v7282_v54 = vadd.f32 %v3395_v16, %v3339_v60  ;;  %v3770_v16 = vstv %s4224_s9 }
 0x42d   : > { %v3470_v22 = vpop.permute.xlu1 %3469  ;;  %v3468_v55 = vpop.permute.xlu0 %3467  ;;  %p4412_p7 = pnand %p4411_p1, %p4405_p4 }
 0x42e   : > { %v3474_v14 = vadd.f32 %v3470_v22, %v7257_v62  ;;  %v3473_v8 = vadd.f32 %v3468_v55, %v7259_v59 }
 0x431   : > { %v3568_v27 = vpop.permute.xlu1 %3567  ;;  %v3566_v49 = vpop.permute.xlu0 %3565 }
 0x432   : > { %v3572_v10 = vadd.f32 %v3568_v27, %v3460_v17  ;;  %v3571_v6 = vadd.f32 %v3566_v49, %v3459_v20 }
 0x434   : > { %v3703_v4 = vadd.f32 %v3701_v40, %v3572_v10  ;;  %v3702_v21 = vadd.f32 %v3701_v40, %v3571_v6  ;;  %v3793_v6 = vstv %s4225_s17 }
 0x435   : > { %v3350_v63 = vpop.permute.xlu1 %3349  ;;  %v3348_v26 = vpop.permute.xlu0 %3347 }
 0x436   : > { %v3705_v32 = vmax.f32 %v3703_v4, 0.0  ;;  %v3704_v45 = vmax.f32 %v3702_v21, 0.0  ;;  %v3354_v51 = vadd.f32 %v3350_v63, %v3242_v46  ;;  %v3353_v38 = vadd.f32 %v3348_v26, %v3241_v36 }
 0x438   : > { %v3706_v57 = vsel %vm3636_vm3, %v3704_v45, 0.0  ;;  %v3709_v31 = vsel %vm3636_vm3, %v3705_v32, 0.0  ;;  %v3404_v11 = vadd.f32 %v3402_v29, %v3354_v51  ;;  %v3403_v12 = vadd.f32 %v3401_v58, %v3353_v38 }
 0x439   : > { %v3484_v35 = vpop.permute.xlu1 %3483  ;;  %v3482_v56 = vpop.permute.xlu0 %3481  ;;  %3707 = vadd.xlane.f32.xlu1 %v3706_v57  ;;  %3710 = vadd.xlane.f32.xlu0 %v3709_v31 }
 0x43a   : > { %v3488_v47 = vadd.f32 %v3484_v35, %v7269_v9  ;;  %v3487_v5 = vadd.f32 %v3482_v56, %v7271_v25 }
 0x43d   : > { %v3582_v19 = vpop.permute.xlu1 %3581  ;;  %v3580_v52 = vpop.permute.xlu0 %3579 }
 0x43e   : > { %v3586_v39 = vadd.f32 %v3582_v19, %v3474_v14  ;;  %v3585_v34 = vadd.f32 %v3580_v52, %v3473_v8 }
 0x440   : > { %v3726_v24 = vadd.f32 %v3724_v13, %v3586_v39  ;;  %v3725_v61 = vadd.f32 %v3724_v13, %v3585_v34 }
 0x441   : > { %v3498_v50 = vpop.permute.xlu1 %3497  ;;  %v3496_v53 = vpop.permute.xlu0 %3495 }
 0x442   : > { %v3728_v23 = vmax.f32 %v3726_v24, 0.0  ;;  %v3727_v15 = vmax.f32 %v3725_v61, 0.0  ;;  %v3502_v25 = vadd.f32 %v3498_v50, %v7280_v1  ;;  %v3501_v60 = vadd.f32 %v3496_v53, %v7282_v54 }
 0x444   : > { %v3729_v62 = vsel %vm3636_vm3, %v3727_v15, 0.0  ;;  %v3732_v59 = vsel %vm3636_vm3, %v3728_v23, 0.0 }
 0x445   : > { %v3596_v37 = vpop.permute.xlu1 %3595  ;;  %v3594_v7 = vpop.permute.xlu0 %3593  ;;  %3730 = vadd.xlane.f32.xlu1 %v3729_v62  ;;  %3733 = vadd.xlane.f32.xlu0 %v3732_v59 }
 0x446   : > { %v3600_v41 = vadd.f32 %v3596_v37, %v3488_v47  ;;  %v3599_v18 = vadd.f32 %v3594_v7, %v3487_v5 }
 0x448   : > { %v3749_v48 = vadd.f32 %v3747_v30, %v3600_v41  ;;  %v3748_v44 = vadd.f32 %v3747_v30, %v3599_v18 }
 0x449   : > { %v3512_v3 = vpop.permute.xlu1 %3511  ;;  %v3510_v43 = vpop.permute.xlu0 %3509 }
 0x44a   : > { %v3751_v9 = vmax.f32 %v3749_v48, 0.0  ;;  %v3750_v28 = vmax.f32 %v3748_v44, 0.0  ;;  %v3516_v40 = vadd.f32 %v3512_v3, %v3404_v11  ;;  %v3515_v27 = vadd.f32 %v3510_v43, %v3403_v12 }
 0x44c   : > { %v3752_v2 = vsel %vm3636_vm3, %v3750_v28, 0.0  ;;  %v3755_v0 = vsel %vm3636_vm3, %v3751_v9, 0.0 }
 0x44d   : > { %v3610_v22 = vpop.permute.xlu1 %3609  ;;  %v3608_v55 = vpop.permute.xlu0 %3607  ;;  %3753 = vadd.xlane.f32.xlu1 %v3752_v2  ;;  %3756 = vadd.xlane.f32.xlu0 %v3755_v0 }
 0x44e   : > { %v3614_v17 = vadd.f32 %v3610_v22, %v3502_v25  ;;  %v3613_v20 = vadd.f32 %v3608_v55, %v3501_v60 }
 0x450   : > { %v3772_v49 = vadd.f32 %v3770_v16, %v3614_v17  ;;  %v3771_v10 = vadd.f32 %v3770_v16, %v3613_v20 }
 0x451   : > { %v3624_v33 = vpop.permute.xlu1 %3623  ;;  %v3622_v1 = vpop.permute.xlu0 %3621 }
 0x452   : > { %v3774_v46 = vmax.f32 %v3772_v49, 0.0  ;;  %v3773_v54 = vmax.f32 %v3771_v10, 0.0  ;;  %v3628_v36 = vadd.f32 %v3624_v33, %v3516_v40  ;;  %v3627_v4 = vadd.f32 %v3622_v1, %v3515_v27  ;;  %v3651_v33 = vld [vmem:[%s7383_s3] sm:$0x1] }
 0x454   : > { %v3795_v21 = vadd.f32 %v3793_v6, %v3628_v36  ;;  %v3794_v63 = vadd.f32 %v3793_v6, %v3627_v4  ;;  %v3775_v26 = vsel %vm3636_vm3, %v3773_v54, 0.0  ;;  %v3778_v42 = vsel %vm3636_vm3, %v3774_v46, 0.0 }
 0x455   : > { %3776 = vadd.xlane.f32.xlu1 %v3775_v26  ;;  %3779 = vadd.xlane.f32.xlu0 %v3778_v42 }
 0x456   : > { %v3797_v29 = vmax.f32 %v3795_v21, 0.0  ;;  %v3796_v58 = vmax.f32 %v3794_v63, 0.0  ;;  %v3674_v21 = vld [vmem:[%s7383_s3 + $0x1] sm:$0x1] }
 0x458   : > { %v3798_v32 = vsel %vm3636_vm3, %v3796_v58, 0.0  ;;  %v3801_v45 = vsel %vm3636_vm3, %v3797_v29, 0.0 }
 0x459   : > { %3799 = vadd.xlane.f32.xlu1 %v3798_v32  ;;  %3802 = vadd.xlane.f32.xlu0 %v3801_v45  ;;  %v3629_v45 = vld [vmem:[%s7384_s4] sm:$0x1] }
 0x492   : > { %v3639_v51 = vpop.xlane.xlu0 %3638  ;;  %v3642_v57 = vpop.xlane.xlu1 %3641 }
 0x493   : > { %v3643_v11 = vadd.f32 %v3642_v57, %v3639_v51 }
 0x495   : > { %v3644_v14 = vrot.slane %v3643_v11, 4 }
 0x497   : > { %v3645_v34 = vadd.f32 %v3644_v14, %v3643_v11 }
 0x499   : > { %v3646_v53 = vrot.slane %v3645_v34, 2 }
 0x49b   : > { %v3647_v37 = vadd.f32 %v3646_v53, %v3645_v34 }
 0x49d   : > { %v3648_v44 = vrot.slane %v3647_v37, 1 }
 0x49f   : > { %v3649_v16 = vadd.f32 %v3648_v44, %v3647_v37 }
 0x4a1   : > { %v3650_v49 = vmul.f32 0.00390625, %v3649_v16 }
 0x4a3   : > { %v3652_v29 = vmul.f32 %v3651_v33, %v3650_v49 }
 0x4a6   : > { %v3662_v38 = vpop.xlane.xlu0 %3661 }
 0x4aa   : > { %v3665_v31 = vpop.xlane.xlu0 %3664 }
 0x4ab   : > { %v3666_v56 = vadd.f32 %v3665_v31, %v3662_v38 }
 0x4ad   : > { %v3667_v52 = vrot.slane %v3666_v56, 4 }
 0x4af   : > { %v3668_v61 = vadd.f32 %v3667_v52, %v3666_v56 }
 0x4b1   : > { %v3669_v62 = vrot.slane %v3668_v61, 2 }
 0x4b3   : > { %v3670_v18 = vadd.f32 %v3669_v62, %v3668_v61 }
 0x4b5   : > { %v3671_v60 = vrot.slane %v3670_v18, 1 }
 0x4b6   : > { %v3685_v12 = vpop.xlane.xlu1 %3684  ;;  %v3688_v35 = vpop.xlane.xlu0 %3687 }
 0x4b7   : > { %v3689_v19 = vadd.f32 %v3688_v35, %v3685_v12  ;;  %v3672_v20 = vadd.f32 %v3671_v60, %v3670_v18  ;;  %v3697_v12 = vld [vmem:[%s7383_s3 + $0x2] sm:$0x1] }
 0x4b9   : > { %v3690_v24 = vrot.slane %v3689_v19, 4  ;;  %v3673_v4 = vmul.f32 0.00390625, %v3672_v20 }
 0x4bb   : > { %v3691_v47 = vadd.f32 %v3690_v24, %v3689_v19  ;;  %v3675_v11 = vmul.f32 %v3674_v21, %v3673_v4  ;;  %v3720_v19 = vld [vmem:[%s7383_s3 + $0x3] sm:$0x1] }
 0x4bd   : > { %v3692_v7 = vrot.slane %v3691_v47, 2 }
 0x4bf   : > { %v3693_v9 = vadd.f32 %v3692_v7, %v3691_v47  ;;  %v3789_v7 = vld [vmem:[%s7383_s3 + $0x6] sm:$0x1] }
 0x4c1   : > { %v3694_v22 = vrot.slane %v3693_v9, 1 }
 0x4c3   : > { %v3695_v1 = vadd.f32 %v3694_v22, %v3693_v9 }
 0x4c5   : > { %v3696_v51 = vmul.f32 0.00390625, %v3695_v1 }
 0x4c6   : > { %v3708_v8 = vpop.xlane.xlu1 %3707  ;;  %v3711_v13 = vpop.xlane.xlu0 %3710 }
 0x4c7   : > { %v3712_v39 = vadd.f32 %v3711_v13, %v3708_v8  ;;  %v3653_v13 = vadd.f32 %v3652_v29, %v3629_v45  ;;  %v3698_v52 = vmul.f32 %v3697_v12, %v3696_v51 }
 0x4c9   : > { %v3713_v50 = vrot.slane %v3712_v39, 4  ;;  %v3676_v61 = vadd.f32 %v3675_v11, %v3653_v13 }
 0x4cb   : > { %v3714_v59 = vadd.f32 %v3713_v50, %v3712_v39  ;;  %v3743_v50 = vld [vmem:[%s7383_s3 + $0x4] sm:$0x1]  ;;  %v3699_v62 = vadd.f32 %v3698_v52, %v3676_v61 }
 0x4cd   : > { %v3715_v48 = vrot.slane %v3714_v59, 2 }
 0x4cf   : > { %v3716_v2 = vadd.f32 %v3715_v48, %v3714_v59 }
 0x4d1   : > { %v3717_v40 = vrot.slane %v3716_v2, 1 }
 0x4d2   : > { %v3731_v23 = vpop.xlane.xlu1 %3730  ;;  %v3734_v15 = vpop.xlane.xlu0 %3733 }
 0x4d3   : > { %v3735_v5 = vadd.f32 %v3734_v15, %v3731_v23  ;;  %v3718_v63 = vadd.f32 %v3717_v40, %v3716_v2 }
 0x4d5   : > { %v3736_v30 = vrot.slane %v3735_v5, 4  ;;  %v3719_v35 = vmul.f32 0.00390625, %v3718_v63 }
 0x4d7   : > { %v3737_v41 = vadd.f32 %v3736_v30, %v3735_v5  ;;  %v3721_v53 = vmul.f32 %v3720_v19, %v3719_v35  ;;  %v3766_v5 = vld [vmem:[%s7383_s3 + $0x5] sm:$0x1] }
 0x4d9   : > { %v3738_v28 = vrot.slane %v3737_v41, 2 }
 0x4da   : > { %v3754_v3 = vpop.xlane.xlu1 %3753  ;;  %v3757_v43 = vpop.xlane.xlu0 %3756 }
 0x4db   : > { %v3758_v25 = vadd.f32 %v3757_v43, %v3754_v3  ;;  %v3739_v55 = vadd.f32 %v3738_v28, %v3737_v41  ;;  %v3722_v41 = vadd.f32 %v3721_v53, %v3699_v62  ;;  %v3812_v28 = vld [vmem:[%s7383_s3 + $0x7] sm:$0x1] }
 0x4dd   : > { %v3759_v0 = vrot.slane %v3758_v25, 4  ;;  %v3740_v46 = vrot.slane %v3739_v55, 1 }
 0x4df   : > { %v3760_v17 = vadd.f32 %v3759_v0, %v3758_v25  ;;  %v3741_v38 = vadd.f32 %v3740_v46, %v3739_v55 }
 0x4e1   : > { %v3761_v27 = vrot.slane %v3760_v17, 2  ;;  %v3742_v39 = vmul.f32 0.00390625, %v3741_v38 }
 0x4e2   : > { %v3777_v10 = vpop.xlane.xlu1 %3776  ;;  %v3780_v6 = vpop.xlane.xlu0 %3779 }
 0x4e3   : > { %v3762_v54 = vadd.f32 %v3761_v27, %v3760_v17  ;;  %v3781_v36 = vadd.f32 %v3780_v6, %v3777_v10  ;;  %v3744_v59 = vmul.f32 %v3743_v50, %v3742_v39 }
 0x4e5   : > { %v3763_v26 = vrot.slane %v3762_v54, 1  ;;  %v3782_v42 = vrot.slane %v3781_v36, 4  ;;  %v3745_v3 = vadd.f32 %v3744_v59, %v3722_v41 }
 0x4e6   : > { %v3800_v58 = vpop.xlane.xlu1 %3799  ;;  %v3803_v32 = vpop.xlane.xlu0 %3802 }
 0x4e7   : > { %v3783_v57 = vadd.f32 %v3782_v42, %v3781_v36  ;;  %v3804_v31 = vadd.f32 %v3803_v32, %v3800_v58  ;;  %v3764_v56 = vadd.f32 %v3763_v26, %v3762_v54 }
 0x4e9   : > { %v3784_v14 = vrot.slane %v3783_v57, 2  ;;  %v3805_v8 = vrot.slane %v3804_v31, 4  ;;  %v3765_v23 = vmul.f32 0.00390625, %v3764_v56 }
 0x4eb   : > { %v3785_v34 = vadd.f32 %v3784_v14, %v3783_v57  ;;  %v3806_v24 = vadd.f32 %v3805_v8, %v3804_v31  ;;  %v3767_v18 = vmul.f32 %v3766_v5, %v3765_v23 }
 0x4ed   : > { %v3786_v15 = vrot.slane %v3785_v34, 1  ;;  %v3807_v47 = vrot.slane %v3806_v24, 2  ;;  %v3768_v25 = vadd.f32 %v3767_v18, %v3745_v3 }
 0x4ef   : > { %v3787_v30 = vadd.f32 %v3786_v15, %v3785_v34  ;;  %v3808_v37 = vadd.f32 %v3807_v47, %v3806_v24 }
 0x4f1   : > { %v3788_v48 = vmul.f32 0.00390625, %v3787_v30  ;;  %v3809_v44 = vrot.slane %v3808_v37, 1 }
 0x4f3   : > { %v3790_v43 = vmul.f32 %v3789_v7, %v3788_v48  ;;  %v3810_v9 = vadd.f32 %v3809_v44, %v3808_v37 }
 0x4f5   : > { %v3811_v60 = vmul.f32 0.00390625, %v3810_v9  ;;  %v3791_v0 = vadd.f32 %v3790_v43, %v3768_v25 }
 0x4f7   : > { %v3813_v2 = vmul.f32 %v3812_v28, %v3811_v60 }
 0x4f9   : > { %v3814_v16 = vadd.f32 %v3813_v2, %v3791_v0 }
 0x4fb   : > { %3816 = vst.msk [vmem:[%s266_s14] sm:$0x1] %vm3815_vm4, %v3814_v16 }
 0x4fc   : > { %4415 = shalt.err (!%p4412_p7)
}
 0x4fd   : > { %s4416_s23 = scalar_lea.hbm %s7336_s7, 16  ;;  %s4420_s15 = scalar_lea.hbm %s7385_s5, 32 }
 0x4fe   : > { %p4417_p11 = scmp.ne.s32.totalorder %s7336_s7, %s4416_s23  ;;  %p4421_p3 = scmp.lt.u32.totalorder %s7336_s7, %s7385_s5 }
 0x4ff   : > { %p4422_p2 = scmp.lt.u32.totalorder %s4420_s15, %s4416_s23  ;;  %p4424_p0 = scmp.lt.u32.totalorder %s4416_s23, %s7336_s7 }
 0x500   : > { %p4418_p13 = pnand %p4417_p11, %p7407_p8 }
 0x501   : > { %p4423_p5 = por %p4422_p2, %p4421_p3 }
 0x502   : > { %p4419_p9 = pneg %p4418_p13 }
 0x503   : > { %p4425_p10 = por %p4424_p0, %p4423_p5 }
 0x505   : > { %p4426_p4 = pnand %p4425_p10, %p4419_p9 }
 0x507   : > { %4429 = shalt.err (!%p4426_p4)
}
 0x508   : > { %4259 = dma.vmem_to_hbm [thread:$0]  (%p7407_p8), %s7338_s26, 16, %s7336_s7, %s3818_s25  }
 0x509 PF: > { %s3842_s16 = sand.u32 1, %s4464_s18   ;;  %p7408_p6 = scmp.ne.s32.totalorder %s7395_s6, 0 }
 0x50a   : > { %p7409_p12 = scmp.ge.s32.totalorder %s4476_s21, 2  ;;  %s3843_s14 = scalar_lea.sflag [#allocation5], %s3842_s16 }
 0x50c   : > { %p4273_p1 = pnand %p7409_p12, %p7408_p6 }
 0x50e   : > { %4459 = dma.done.wait (!%p4273_p1), %s3843_s14, 16  }
 0x50f   : > { %4461 = vsyncadd (!%p4273_p1), %s3843_s14, 4294967280  ;;  %p20_p7 = scmp.ge.s32.totalorder %s4543_s24, 4   ;;  %s7410_s18 = smov %s4468_s19 }
 0x510   : > { %s7411_s19 = smov %s4472_s20  ;;  %s7412_s20 = smov %s4555_s27 }
 0x511   : > { %s7413_s21 = smov %s4543_s24  ;;  %22 = sbr.rel (!%p20_p7) target bundleno = 7 (0x7), region = 98 }
 0x518   :  { %3847 = vsyncpa [#allocation4], 1 }
 0x519   :  { %3849 = vsyncpa [#allocation4 + $0x1], 1 }
 0x51a   :  { %3850 = vsyncpa [#allocation5], 1 }
 0x51b   :  { %3852 = vsyncpa [#allocation5 + $0x1], 1 }
 0x51c   :  { %3853 = vsyncpa [#allocation6], 1 }
 0x51d   :  { %3855 = vsyncpa [#allocation6 + $0x1], 1 }
 0x51e   :  { %3856 = vsyncpa [#allocation7], 1 }
 0x51f   :  { %3858 = vsyncpa [#allocation7 + $0x1], 1 }

</bundles_post_ra>
